<compile_context>
chip_gen: v6e
topology: v6e:2x2x1
jax: 0.10.0
libtpu: 0.0.40
codegen_flags: <defaults>
</compile_context>

<pallas_src>
import functools

import jax
import jax.numpy as jnp
from jax.experimental import pallas as pl
from jax.experimental.pallas import tpu as pltpu


def _round_up(x, m):
    return (x + m - 1) // m * m


def _tpu_config():
    """Per-generation MXU N-tile width and a headroom-aware VMEM limit."""
    vmem_cap = 128 * 1024 * 1024
    try:
        info = pltpu.get_tpu_info()
        vmem_cap = int(getattr(info, "vmem_capacity_bytes", vmem_cap))
    except Exception:
        pass
    kind = ""
    try:
        kind = jax.devices()[0].device_kind.lower()
    except Exception:
        pass
    # v2-v5 MXUs are 128 wide; v6e / v7x are 256 wide.
    mxu_n = 128 if any(t in kind for t in ("v2", "v3", "v4", "v5")) else 256
    # ~75% of physical VMEM: ~48 MiB on v7x (64 MiB phys), ~96 MiB on v5e/v6e.
    vmem_limit = min((vmem_cap * 3) // 4, 112 * 1024 * 1024)
    return mxu_n, vmem_limit


_MXU_N, _VMEM_LIMIT = _tpu_config()


# ----------------------------------------------------------------------------
# Pallas kernel: fused conv (+ InstanceNorm) (+ LeakyReLU) for one (batch,
# cout-tile) grid instance.
# ----------------------------------------------------------------------------
def _conv_fused_kernel(x_ref, w_ref, *rest, tap_offsets, wz, wo, n_rows, inv_n,
                       apply_lrelu, apply_instnorm, has_bias):
    """x_ref [Lx, K] bf16   flat (rows*cols, channels) padded input, one image
       w_ref [T, K, CT] bf16 per-tap weights for this cout tile
       b_ref [1, CT] f32     (only when has_bias)
       o_ref [Mo, CT]        flat output rows (incl. wrap columns / padded rows)
    """
    if has_bias:
        b_ref, o_ref = rest
    else:
        (o_ref,) = rest
    mo, _ = o_ref.shape

    # Accumulate all taps on the MXU into an f32 value; init from the first tap
    # (no zeros + add pass).
    acc = jnp.dot(x_ref[pl.ds(tap_offsets[0], mo), :], w_ref[0],
                  preferred_element_type=jnp.float32)
    for t in range(1, len(tap_offsets)):
        acc = acc + jnp.dot(x_ref[pl.ds(tap_offsets[t], mo), :], w_ref[t],
                            preferred_element_type=jnp.float32)

    if has_bias:
        acc = acc + b_ref[...]

    if apply_instnorm:
        # InstanceNorm2d(affine=False, eps=1e-5, biased variance) over valid
        # spatial positions only.  Mask built in-kernel (VPU iota, no operand).
        row = jax.lax.broadcasted_iota(jnp.int32, (mo, 1), 0)
        valid = (row < n_rows) & ((row % wz) < wo)
        mask = jnp.where(valid, 1.0, 0.0)                        # [Mo, 1] f32
        mean = jnp.sum(acc * mask, axis=0, keepdims=True) * inv_n
        xc = (acc - mean) * mask
        var = jnp.sum(xc * xc, axis=0, keepdims=True) * inv_n
        acc = xc * jax.lax.rsqrt(var + 1e-5)

    if apply_lrelu:
        acc = jnp.where(acc >= 0.0, acc, 0.2 * acc)

    o_ref[...] = acc.astype(o_ref.dtype)


# ----------------------------------------------------------------------------
# One discriminator block: Conv2d(k=4, pad=2, stride) [+ InstanceNorm] [+ LReLU]
# ----------------------------------------------------------------------------
def conv_block(x, w, b, *, stride, apply_lrelu, apply_instnorm, out_dtype):
    """x: [B, H, W, Cin_act] NHWC (Cin_act may include carried zero channels)
       w: [4, 4, Cin_real, Cout_real] HWIO; b: [Cout_real]
       Returns [B, Ho, Wo, Cp] with the (small) channel padding kept at zero.
    """
    B, H, W, cin_act = x.shape
    kh, kw, cin_real, cout = w.shape
    pad = 2                                     # ceil((4 - 1) / 2), as in the module
    ho = (H + 2 * pad - kh) // stride + 1
    wo = (W + 2 * pad - kw) // stride + 1

    # Channel storage padding & cout tile width.
    if cout <= 128:
        cp = _round_up(cout, 8)                 # minimal HBM padding
        ct = cp                                 # single cout tile
    else:
        ct = _MXU_N if cout % _MXU_N == 0 else 128
        cp = _round_up(cout, ct)

    has_bias = not apply_instnorm               # bias cancels exactly under InstanceNorm

    # Zero-pad weights for carried input-channel padding and output padding.
    w = jnp.pad(w, ((0, 0), (0, 0), (0, cin_act - cin_real), (0, cp - cout)))

    # Spatial zero padding (PyTorch Conv2d padding=2).
    xp = jnp.pad(x, ((0, 0), (pad, pad), (pad, pad), (0, 0)))

    if stride == 2:
        # Space-to-depth by 2: the stride-2 4x4 conv becomes a stride-1 2x2 conv
        # over 4*Cin channels (1x data rearrangement fused with the pad by XLA).
        hp, wp = xp.shape[1], xp.shape[2]
        he, we = _round_up(hp, 2), _round_up(wp, 2)
        xp = jnp.pad(xp, ((0, 0), (0, he - hp), (0, we - wp), (0, 0)))
        z = xp.reshape(B, he // 2, 2, we // 2, 2, cin_act)
        z = z.transpose(0, 1, 3, 2, 4, 5).reshape(B, he // 2, we // 2, 4 * cin_act)
        kh_e = kw_e = 2
        k_dim = 4 * cin_act
        w_eff = (w.reshape(2, 2, 2, 2, cin_act, cp)      # (P, di, Q, dj, c, o)
                 .transpose(0, 2, 1, 3, 4, 5)            # (P, Q, di, dj, c, o)
                 .reshape(kh_e * kw_e, k_dim, cp))
    else:
        z = xp
        kh_e, kw_e = kh, kw
        k_dim = cin_act
        w_eff = w.reshape(kh_e * kw_e, k_dim, cp)

    hz, wz = z.shape[1], z.shape[2]
    n_rows = ho * wz                            # rows carrying real output positions
    mo = _round_up(n_rows, 16)                  # sublane-dense (bf16 pack) stores
    max_off = (kh_e - 1) * wz + (kw_e - 1)
    hz_need = -(-(max_off + mo) // wz)          # keep flat shifted reads in bounds
    if hz < hz_need:
        z = jnp.pad(z, ((0, 0), (0, hz_need - hz), (0, 0), (0, 0)))
        hz = hz_need
    lx = hz * wz

    zf = z.reshape(B, lx, k_dim).astype(jnp.bfloat16)    # bf16 MXU operands
    w_eff = w_eff.astype(jnp.bfloat16)

    tap_offsets = tuple(p * wz + q for p in range(kh_e) for q in range(kw_e))
    kernel = functools.partial(
        _conv_fused_kernel, tap_offsets=tap_offsets, wz=wz, wo=wo, n_rows=n_rows,
        inv_n=1.0 / float(ho * wo), apply_lrelu=apply_lrelu,
        apply_instnorm=apply_instnorm, has_bias=has_bias)

    in_specs = [
        pl.BlockSpec((None, lx, k_dim), lambda bi, ci: (bi, 0, 0)),
        pl.BlockSpec((kh_e * kw_e, k_dim, ct), lambda bi, ci: (0, 0, ci)),
    ]
    operands = [zf, w_eff]
    if has_bias:
        b2 = jnp.pad(b, (0, cp - cout)).astype(jnp.float32).reshape(1, cp)
        in_specs.append(pl.BlockSpec((1, ct), lambda bi, ci: (0, ci)))
        operands.append(b2)

    out = pl.pallas_call(
        kernel,
        out_shape=jax.ShapeDtypeStruct((B, mo, cp), out_dtype),
        grid_spec=pltpu.PrefetchScalarGridSpec(
            num_scalar_prefetch=0,
            grid=(B, cp // ct),
            in_specs=in_specs,
            out_specs=pl.BlockSpec((None, mo, ct), lambda bi, ci: (bi, 0, ci)),
        ),
        compiler_params=pltpu.CompilerParams(
            dimension_semantics=("parallel", "parallel"),
            vmem_limit_bytes=_VMEM_LIMIT),
    )(*operands)

    # Strip padded rows / wrap columns; keep the small zero channel padding (it is
    # absorbed exactly by zero weight rows in the next layer).
    return out[:, :n_rows, :].reshape(B, ho, wz, cp)[:, :, :wo, :]


# ----------------------------------------------------------------------------
# NLayerDiscriminator forward (input_nc=1, ndf=NDF, n_layers=3, InstanceNorm2d,
# use_sigmoid=False; use_bias=True because norm is InstanceNorm2d).
# ----------------------------------------------------------------------------
INPUT_NC = 1
NDF = 16          # scaled-down ndf for the small synthetic run (module default is 64)
KW = 4


def init_params(key):
    """Deterministic synthetic parameters with the module's layer shapes (HWIO)."""
    dims = [
        (INPUT_NC, NDF),          # conv1  (stride 2) + LReLU
        (NDF, NDF * 2),           # conv2  (stride 2) + InstanceNorm + LReLU
        (NDF * 2, NDF * 4),       # conv3  (stride 2) + InstanceNorm + LReLU
        (NDF * 4, NDF * 8),       # conv4  (stride 1) + InstanceNorm + LReLU
        (NDF * 8, 1),             # conv5  (stride 1), output map
    ]
    params = []
    for li, (cin, cout) in enumerate(dims):
        kw_key, kb_key = jax.random.split(jax.random.fold_in(key, li))
        w = 0.05 * jax.random.normal(kw_key, (KW, KW, cin, cout), jnp.float32)
        b = 0.01 * jax.random.normal(kb_key, (cout,), jnp.float32)
        params.append((w, b))
    return params


@jax.jit
def nlayer_discriminator_forward(x_nchw, params):
    """Forward pass. Input/output are NCHW, matching the PyTorch module."""
    x = jnp.transpose(x_nchw, (0, 2, 3, 1))  # NCHW -> NHWC
    (w1, b1), (w2, b2), (w3, b3), (w4, b4), (w5, b5) = params

    x = conv_block(x, w1, b1, stride=2, apply_lrelu=True, apply_instnorm=False,
                   out_dtype=jnp.bfloat16)
    x = conv_block(x, w2, b2, stride=2, apply_lrelu=True, apply_instnorm=True,
                   out_dtype=jnp.bfloat16)
    x = conv_block(x, w3, b3, stride=2, apply_lrelu=True, apply_instnorm=True,
                   out_dtype=jnp.bfloat16)
    x = conv_block(x, w4, b4, stride=1, apply_lrelu=True, apply_instnorm=True,
                   out_dtype=jnp.bfloat16)
    x = conv_block(x, w5, b5, stride=1, apply_lrelu=False, apply_instnorm=False,
                   out_dtype=jnp.float32)

    x = x[..., :1]                            # real Cout = 1 (storage pad dropped)
    return jnp.transpose(x, (0, 3, 1, 2)).astype(jnp.float32)   # NHWC -> NCHW


# ----------------------------------------------------------------------------
# Pure-JAX f32 reference (mirrors the PyTorch module) for a sanity check.
# ----------------------------------------------------------------------------
@jax.jit
def _ref_forward(x_nchw, params):
    x = jnp.transpose(x_nchw, (0, 2, 3, 1))

    def conv(h, w, b, stride):
        y = jax.lax.conv_general_dilated(
            h, w, window_strides=(stride, stride), padding=((2, 2), (2, 2)),
            dimension_numbers=("NHWC", "HWIO", "NHWC"))
        return y + b

    def inorm_lrelu(h):
        mean = jnp.mean(h, axis=(1, 2), keepdims=True)
        var = jnp.mean((h - mean) ** 2, axis=(1, 2), keepdims=True)
        y = (h - mean) * jax.lax.rsqrt(var + 1e-5)
        return jnp.where(y >= 0, y, 0.2 * y)

    def lrelu(h):
        return jnp.where(h >= 0, h, 0.2 * h)

    (w1, b1), (w2, b2), (w3, b3), (w4, b4), (w5, b5) = params
    x = lrelu(conv(x, w1, b1, 2))
    x = inorm_lrelu(conv(x, w2, b2, 2))
    x = inorm_lrelu(conv(x, w3, b3, 2))
    x = inorm_lrelu(conv(x, w4, b4, 1))
    x = conv(x, w5, b5, 1)
    return jnp.transpose(x, (0, 3, 1, 2))


if __name__ == "__main__":
    key = jax.random.PRNGKey(0)
    pkey, xkey = jax.random.split(key)

    params = init_params(pkey)
    x = jax.random.normal(xkey, (2, INPUT_NC, 16, 16), jnp.float32)  # NCHW input

    out = nlayer_discriminator_forward(x, params)
    out = jax.block_until_ready(out)

    # 16 -> 9 -> 5 -> 3 (stride-2 convs) -> 4 (stride-1) -> 5 (stride-1 output conv)
    assert out.shape == (2, 1, 5, 5), out.shape
    assert out.dtype == jnp.float32
    assert bool(jnp.all(jnp.isfinite(out)))

    # Loose end-to-end check vs. the f32 reference (kernel uses bf16 MXU operands
    # and bf16 intermediate storage).
    ref = _ref_forward(x, params)
    diff = out - ref
    rel = jnp.sqrt(jnp.sum(diff * diff) / (jnp.sum(ref * ref) + 1e-12))
    assert float(rel) < 0.12, float(rel)

    print("KERNEL_OK")
</pallas_src>

<mosaic_0001>
module attributes {stable_mosaic.version = 11 : i64} {
  func.func @_conv_fused_kernel(%arg0: i32, %arg1: i32, %arg2: memref<1x110x4xbf16, #tpu.memory_space<vmem>>, %arg3: memref<4x4x16xbf16, #tpu.memory_space<vmem>>, %arg4: memref<1x16xf32, #tpu.memory_space<vmem>>, %arg5: memref<1x96x16xbf16, #tpu.memory_space<vmem>>) attributes {dimension_semantics = [#tpu.dimension_semantics<parallel>, #tpu.dimension_semantics<parallel>], iteration_bounds = array<i64: 2, 1>, scalar_prefetch = 0 : i64, scratch_operands = 0 : i64, tpu.core_type = #tpu.core_type<tc>, window_params = [{transform_indices = @transform_0, window_bounds = array<i64: 1, 110, 4>}, {transform_indices = @transform_1, window_bounds = array<i64: 4, 4, 16>}, {transform_indices = @transform_2, window_bounds = array<i64: 1, 16>}, {transform_indices = @transform_3, window_bounds = array<i64: 1, 96, 16>}]} {
    %c0 = arith.constant 0 : index
    %c0_0 = arith.constant 0 : index
    %c0_1 = arith.constant 0 : index
    %0 = vector.load %arg2[%c0, %c0_0, %c0_1] : memref<1x110x4xbf16, #tpu.memory_space<vmem>>, vector<1x96x4xbf16>
    %1 = vector.shape_cast %0 : vector<1x96x4xbf16> to vector<96x4xbf16>
    %c0_2 = arith.constant 0 : index
    %c0_3 = arith.constant 0 : index
    %c0_4 = arith.constant 0 : index
    %2 = vector.load %arg3[%c0_2, %c0_3, %c0_4] : memref<4x4x16xbf16, #tpu.memory_space<vmem>>, vector<1x4x16xbf16>
    %3 = vector.shape_cast %2 : vector<1x4x16xbf16> to vector<4x16xbf16>
    %cst = arith.constant dense<0.000000e+00> : vector<96x16xf32>
    %4 = tpu.matmul %1, %3, %cst {dimension_numbers = #tpu.dot_dimension_numbers<[1], [0], [0], [1], [0, 0, 1, 1], [], []>} : vector<96x4xbf16>, vector<4x16xbf16>, vector<96x16xf32> -> vector<96x16xf32>
    %c0_5 = arith.constant 0 : index
    %c1 = arith.constant 1 : index
    %c0_6 = arith.constant 0 : index
    %5 = vector.load %arg2[%c0_5, %c1, %c0_6] : memref<1x110x4xbf16, #tpu.memory_space<vmem>>, vector<1x96x4xbf16>
    %6 = vector.shape_cast %5 : vector<1x96x4xbf16> to vector<96x4xbf16>
    %c1_7 = arith.constant 1 : index
    %c0_8 = arith.constant 0 : index
    %c0_9 = arith.constant 0 : index
    %7 = vector.load %arg3[%c1_7, %c0_8, %c0_9] : memref<4x4x16xbf16, #tpu.memory_space<vmem>>, vector<1x4x16xbf16>
    %8 = vector.shape_cast %7 : vector<1x4x16xbf16> to vector<4x16xbf16>
    %cst_10 = arith.constant dense<0.000000e+00> : vector<96x16xf32>
    %9 = tpu.matmul %6, %8, %cst_10 {dimension_numbers = #tpu.dot_dimension_numbers<[1], [0], [0], [1], [0, 0, 1, 1], [], []>} : vector<96x4xbf16>, vector<4x16xbf16>, vector<96x16xf32> -> vector<96x16xf32>
    %10 = arith.addf %4, %9 : vector<96x16xf32>
    %c0_11 = arith.constant 0 : index
    %c10 = arith.constant 10 : index
    %c0_12 = arith.constant 0 : index
    %11 = vector.load %arg2[%c0_11, %c10, %c0_12] : memref<1x110x4xbf16, #tpu.memory_space<vmem>>, vector<1x96x4xbf16>
    %12 = vector.shape_cast %11 : vector<1x96x4xbf16> to vector<96x4xbf16>
    %c2 = arith.constant 2 : index
    %c0_13 = arith.constant 0 : index
    %c0_14 = arith.constant 0 : index
    %13 = vector.load %arg3[%c2, %c0_13, %c0_14] : memref<4x4x16xbf16, #tpu.memory_space<vmem>>, vector<1x4x16xbf16>
    %14 = vector.shape_cast %13 : vector<1x4x16xbf16> to vector<4x16xbf16>
    %cst_15 = arith.constant dense<0.000000e+00> : vector<96x16xf32>
    %15 = tpu.matmul %12, %14, %cst_15 {dimension_numbers = #tpu.dot_dimension_numbers<[1], [0], [0], [1], [0, 0, 1, 1], [], []>} : vector<96x4xbf16>, vector<4x16xbf16>, vector<96x16xf32> -> vector<96x16xf32>
    %16 = arith.addf %10, %15 : vector<96x16xf32>
    %c0_16 = arith.constant 0 : index
    %c11 = arith.constant 11 : index
    %c0_17 = arith.constant 0 : index
    %17 = vector.load %arg2[%c0_16, %c11, %c0_17] : memref<1x110x4xbf16, #tpu.memory_space<vmem>>, vector<1x96x4xbf16>
    %18 = vector.shape_cast %17 : vector<1x96x4xbf16> to vector<96x4xbf16>
    %c3 = arith.constant 3 : index
    %c0_18 = arith.constant 0 : index
    %c0_19 = arith.constant 0 : index
    %19 = vector.load %arg3[%c3, %c0_18, %c0_19] : memref<4x4x16xbf16, #tpu.memory_space<vmem>>, vector<1x4x16xbf16>
    %20 = vector.shape_cast %19 : vector<1x4x16xbf16> to vector<4x16xbf16>
    %cst_20 = arith.constant dense<0.000000e+00> : vector<96x16xf32>
    %21 = tpu.matmul %18, %20, %cst_20 {dimension_numbers = #tpu.dot_dimension_numbers<[1], [0], [0], [1], [0, 0, 1, 1], [], []>} : vector<96x4xbf16>, vector<4x16xbf16>, vector<96x16xf32> -> vector<96x16xf32>
    %22 = arith.addf %16, %21 : vector<96x16xf32>
    %c0_21 = arith.constant 0 : index
    %c0_22 = arith.constant 0 : index
    %23 = vector.load %arg4[%c0_21, %c0_22] : memref<1x16xf32, #tpu.memory_space<vmem>>, vector<1x16xf32>
    %24 = vector.broadcast %23 : vector<1x16xf32> to vector<96x16xf32>
    %25 = arith.addf %22, %24 : vector<96x16xf32>
    %cst_23 = arith.constant 0.000000e+00 : f32
    %26 = vector.broadcast %cst_23 : f32 to vector<96x16xf32>
    %27 = arith.cmpf oge, %25, %26 : vector<96x16xf32>
    %cst_24 = arith.constant 2.000000e-01 : f32
    %28 = vector.broadcast %cst_24 : f32 to vector<96x16xf32>
    %29 = arith.mulf %28, %25 : vector<96x16xf32>
    %30 = arith.select %27, %25, %29 : vector<96x16xi1>, vector<96x16xf32>
    %31 = arith.truncf %30 : vector<96x16xf32> to vector<96x16xbf16>
    %c0_25 = arith.constant 0 : index
    %c0_26 = arith.constant 0 : index
    %c0_27 = arith.constant 0 : index
    %32 = vector.load %arg5[%c0_25, %c0_26, %c0_27] : memref<1x96x16xbf16, #tpu.memory_space<vmem>>, vector<1x96x16xbf16>
    %33 = vector.shape_cast %32 : vector<1x96x16xbf16> to vector<96x16xbf16>
    %34 = vector.shape_cast %31 : vector<96x16xbf16> to vector<1x96x16xbf16>
    tpu.vector_store %arg5[%c0_25, %c0_26, %c0_27], %34 {strides = array<i32>} : memref<1x96x16xbf16, #tpu.memory_space<vmem>>, vector<1x96x16xbf16>,
    return
  }
  func.func @transform_0(%arg0: i32, %arg1: i32) -> (i32, i32, i32) {
    %c0_i32 = arith.constant 0 : i32
    %c0_i32_0 = arith.constant 0 : i32
    %c0_i32_1 = arith.constant 0 : i32
    return %arg0, %c0_i32, %c0_i32_0 : i32, i32, i32
  }
  func.func @transform_1(%arg0: i32, %arg1: i32) -> (i32, i32, i32) {
    %c0_i32 = arith.constant 0 : i32
    %c0_i32_0 = arith.constant 0 : i32
    %c0_i32_1 = arith.constant 0 : i32
    return %c0_i32, %c0_i32_0, %arg1 : i32, i32, i32
  }
  func.func @transform_2(%arg0: i32, %arg1: i32) -> (i32, i32) {
    %c0_i32 = arith.constant 0 : i32
    %c0_i32_0 = arith.constant 0 : i32
    return %c0_i32, %arg1 : i32, i32
  }
  func.func @transform_3(%arg0: i32, %arg1: i32) -> (i32, i32, i32) {
    %c0_i32 = arith.constant 0 : i32
    %c0_i32_0 = arith.constant 0 : i32
    return %arg0, %c0_i32, %arg1 : i32, i32, i32
  }
}

module attributes {stable_mosaic.version = 11 : i64} {
  func.func @_conv_fused_kernel(%arg0: i32, %arg1: i32, %arg2: memref<1x56x64xbf16, #tpu.memory_space<vmem>>, %arg3: memref<4x64x32xbf16, #tpu.memory_space<vmem>>, %arg4: memref<1x48x32xbf16, #tpu.memory_space<vmem>>) attributes {dimension_semantics = [#tpu.dimension_semantics<parallel>, #tpu.dimension_semantics<parallel>], iteration_bounds = array<i64: 2, 1>, scalar_prefetch = 0 : i64, scratch_operands = 0 : i64, tpu.core_type = #tpu.core_type<tc>, window_params = [{transform_indices = @transform_0, window_bounds = array<i64: 1, 56, 64>}, {transform_indices = @transform_1, window_bounds = array<i64: 4, 64, 32>}, {transform_indices = @transform_2, window_bounds = array<i64: 1, 48, 32>}]} {
    %c0 = arith.constant 0 : index
    %c0_0 = arith.constant 0 : index
    %c0_1 = arith.constant 0 : index
    %0 = vector.load %arg2[%c0, %c0_0, %c0_1] : memref<1x56x64xbf16, #tpu.memory_space<vmem>>, vector<1x48x64xbf16>
    %1 = vector.shape_cast %0 : vector<1x48x64xbf16> to vector<48x64xbf16>
    %c0_2 = arith.constant 0 : index
    %c0_3 = arith.constant 0 : index
    %c0_4 = arith.constant 0 : index
    %2 = vector.load %arg3[%c0_2, %c0_3, %c0_4] : memref<4x64x32xbf16, #tpu.memory_space<vmem>>, vector<1x64x32xbf16>
    %3 = vector.shape_cast %2 : vector<1x64x32xbf16> to vector<64x32xbf16>
    %cst = arith.constant dense<0.000000e+00> : vector<48x32xf32>
    %4 = tpu.matmul %1, %3, %cst {dimension_numbers = #tpu.dot_dimension_numbers<[1], [0], [0], [1], [0, 0, 1, 1], [], []>} : vector<48x64xbf16>, vector<64x32xbf16>, vector<48x32xf32> -> vector<48x32xf32>
    %c0_5 = arith.constant 0 : index
    %c1 = arith.constant 1 : index
    %c0_6 = arith.constant 0 : index
    %5 = vector.load %arg2[%c0_5, %c1, %c0_6] : memref<1x56x64xbf16, #tpu.memory_space<vmem>>, vector<1x48x64xbf16>
    %6 = vector.shape_cast %5 : vector<1x48x64xbf16> to vector<48x64xbf16>
    %c1_7 = arith.constant 1 : index
    %c0_8 = arith.constant 0 : index
    %c0_9 = arith.constant 0 : index
    %7 = vector.load %arg3[%c1_7, %c0_8, %c0_9] : memref<4x64x32xbf16, #tpu.memory_space<vmem>>, vector<1x64x32xbf16>
    %8 = vector.shape_cast %7 : vector<1x64x32xbf16> to vector<64x32xbf16>
    %cst_10 = arith.constant dense<0.000000e+00> : vector<48x32xf32>
    %9 = tpu.matmul %6, %8, %cst_10 {dimension_numbers = #tpu.dot_dimension_numbers<[1], [0], [0], [1], [0, 0, 1, 1], [], []>} : vector<48x64xbf16>, vector<64x32xbf16>, vector<48x32xf32> -> vector<48x32xf32>
    %10 = arith.addf %4, %9 : vector<48x32xf32>
    %c0_11 = arith.constant 0 : index
    %c7 = arith.constant 7 : index
    %c0_12 = arith.constant 0 : index
    %11 = vector.load %arg2[%c0_11, %c7, %c0_12] : memref<1x56x64xbf16, #tpu.memory_space<vmem>>, vector<1x48x64xbf16>
    %12 = vector.shape_cast %11 : vector<1x48x64xbf16> to vector<48x64xbf16>
    %c2 = arith.constant 2 : index
    %c0_13 = arith.constant 0 : index
    %c0_14 = arith.constant 0 : index
    %13 = vector.load %arg3[%c2, %c0_13, %c0_14] : memref<4x64x32xbf16, #tpu.memory_space<vmem>>, vector<1x64x32xbf16>
    %14 = vector.shape_cast %13 : vector<1x64x32xbf16> to vector<64x32xbf16>
    %cst_15 = arith.constant dense<0.000000e+00> : vector<48x32xf32>
    %15 = tpu.matmul %12, %14, %cst_15 {dimension_numbers = #tpu.dot_dimension_numbers<[1], [0], [0], [1], [0, 0, 1, 1], [], []>} : vector<48x64xbf16>, vector<64x32xbf16>, vector<48x32xf32> -> vector<48x32xf32>
    %16 = arith.addf %10, %15 : vector<48x32xf32>
    %c0_16 = arith.constant 0 : index
    %c8 = arith.constant 8 : index
    %c0_17 = arith.constant 0 : index
    %17 = vector.load %arg2[%c0_16, %c8, %c0_17] : memref<1x56x64xbf16, #tpu.memory_space<vmem>>, vector<1x48x64xbf16>
    %18 = vector.shape_cast %17 : vector<1x48x64xbf16> to vector<48x64xbf16>
    %c3 = arith.constant 3 : index
    %c0_18 = arith.constant 0 : index
    %c0_19 = arith.constant 0 : index
    %19 = vector.load %arg3[%c3, %c0_18, %c0_19] : memref<4x64x32xbf16, #tpu.memory_space<vmem>>, vector<1x64x32xbf16>
    %20 = vector.shape_cast %19 : vector<1x64x32xbf16> to vector<64x32xbf16>
    %cst_20 = arith.constant dense<0.000000e+00> : vector<48x32xf32>
    %21 = tpu.matmul %18, %20, %cst_20 {dimension_numbers = #tpu.dot_dimension_numbers<[1], [0], [0], [1], [0, 0, 1, 1], [], []>} : vector<48x64xbf16>, vector<64x32xbf16>, vector<48x32xf32> -> vector<48x32xf32>
    %22 = arith.addf %16, %21 : vector<48x32xf32>
    %23 = tpu.iota {dimensions = array<i32: 0>} : vector<48x1xi32>
    %c35_i32 = arith.constant 35 : i32
    %24 = vector.broadcast %c35_i32 : i32 to vector<48x1xi32>
    %25 = arith.cmpi slt, %23, %24 : vector<48x1xi32>
    %c7_i32 = arith.constant 7 : i32
    %c0_i32 = arith.constant 0 : i32
    %26 = arith.cmpi eq, %c7_i32, %c0_i32 : i32
    %c1_i32 = arith.constant 1 : i32
    %27 = arith.select %26, %c1_i32, %c7_i32 : i32
    %28 = vector.broadcast %27 : i32 to vector<48x1xi32>
    %29 = arith.remsi %23, %28 : vector<48x1xi32>
    %c0_i32_21 = arith.constant 0 : i32
    %30 = vector.broadcast %c0_i32_21 : i32 to vector<48x1xi32>
    %31 = arith.cmpi ne, %29, %30 : vector<48x1xi32>
    %c0_i32_22 = arith.constant 0 : i32
    %32 = vector.broadcast %c0_i32_22 : i32 to vector<48x1xi32>
    %33 = arith.cmpi slt, %29, %32 : vector<48x1xi32>
    %c0_i32_23 = arith.constant 0 : i32
    %34 = arith.cmpi slt, %27, %c0_i32_23 : i32
    %35 = vector.broadcast %34 : i1 to vector<48x1xi1>
    %36 = vector.broadcast %35 : vector<48x1xi1> to vector<48x1xi1>
    %37 = arith.xori %33, %36 : vector<48x1xi1>
    %38 = arith.andi %37, %31 : vector<48x1xi1>
    %39 = vector.broadcast %27 : i32 to vector<48x1xi32>
    %40 = arith.addi %29, %39 : vector<48x1xi32>
    %41 = arith.select %38, %40, %29 : vector<48x1xi1>, vector<48x1xi32>
    %c5_i32 = arith.constant 5 : i32
    %42 = vector.broadcast %c5_i32 : i32 to vector<48x1xi32>
    %43 = arith.cmpi slt, %41, %42 : vector<48x1xi32>
    %44 = arith.andi %25, %43 : vector<48x1xi1>
    %cst_24 = arith.constant 1.000000e+00 : f32
    %cst_25 = arith.constant 0.000000e+00 : f32
    %45 = vector.broadcast %cst_24 : f32 to vector<48x1xf32>
    %46 = vector.broadcast %cst_25 : f32 to vector<48x1xf32>
    %47 = arith.select %44, %45, %46 : vector<48x1xi1>, vector<48x1xf32>
    %48 = vector.broadcast %47 : vector<48x1xf32> to vector<48x32xf32>
    %49 = arith.mulf %22, %48 : vector<48x32xf32>
    %cst_26 = arith.constant dense<0.000000e+00> : vector<32xf32>
    %50 = vector.multi_reduction <add>, %49, %cst_26 [0] : vector<48x32xf32> to vector<32xf32>
    %51 = vector.shape_cast %50 : vector<32xf32> to vector<1x32xf32>
    %cst_27 = arith.constant 4.000000e-02 : f32
    %52 = vector.broadcast %cst_27 : f32 to vector<1x32xf32>
    %53 = arith.mulf %51, %52 : vector<1x32xf32>
    %54 = vector.broadcast %53 : vector<1x32xf32> to vector<48x32xf32>
    %55 = arith.subf %22, %54 : vector<48x32xf32>
    %56 = vector.broadcast %47 : vector<48x1xf32> to vector<48x32xf32>
    %57 = arith.mulf %55, %56 : vector<48x32xf32>
    %58 = arith.mulf %57, %57 : vector<48x32xf32>
    %cst_28 = arith.constant dense<0.000000e+00> : vector<32xf32>
    %59 = vector.multi_reduction <add>, %58, %cst_28 [0] : vector<48x32xf32> to vector<32xf32>
    %60 = vector.shape_cast %59 : vector<32xf32> to vector<1x32xf32>
    %cst_29 = arith.constant 4.000000e-02 : f32
    %61 = vector.broadcast %cst_29 : f32 to vector<1x32xf32>
    %62 = arith.mulf %60, %61 : vector<1x32xf32>
    %cst_30 = arith.constant 9.99999974E-6 : f32
    %63 = vector.broadcast %cst_30 : f32 to vector<1x32xf32>
    %64 = arith.addf %62, %63 : vector<1x32xf32>
    %65 = math.rsqrt %64 : vector<1x32xf32>
    %66 = vector.broadcast %65 : vector<1x32xf32> to vector<48x32xf32>
    %67 = arith.mulf %57, %66 : vector<48x32xf32>
    %cst_31 = arith.constant 0.000000e+00 : f32
    %68 = vector.broadcast %cst_31 : f32 to vector<48x32xf32>
    %69 = arith.cmpf oge, %67, %68 : vector<48x32xf32>
    %cst_32 = arith.constant 2.000000e-01 : f32
    %70 = vector.broadcast %cst_32 : f32 to vector<48x32xf32>
    %71 = arith.mulf %70, %67 : vector<48x32xf32>
    %72 = arith.select %69, %67, %71 : vector<48x32xi1>, vector<48x32xf32>
    %73 = arith.truncf %72 : vector<48x32xf32> to vector<48x32xbf16>
    %c0_33 = arith.constant 0 : index
    %c0_34 = arith.constant 0 : index
    %c0_35 = arith.constant 0 : index
    %74 = vector.load %arg4[%c0_33, %c0_34, %c0_35] : memref<1x48x32xbf16, #tpu.memory_space<vmem>>, vector<1x48x32xbf16>
    %75 = vector.shape_cast %74 : vector<1x48x32xbf16> to vector<48x32xbf16>
    %76 = vector.shape_cast %73 : vector<48x32xbf16> to vector<1x48x32xbf16>
    tpu.vector_store %arg4[%c0_33, %c0_34, %c0_35], %76 {strides = array<i32>} : memref<1x48x32xbf16, #tpu.memory_space<vmem>>, vector<1x48x32xbf16>,
    return
  }
  func.func @transform_0(%arg0: i32, %arg1: i32) -> (i32, i32, i32) {
    %c0_i32 = arith.constant 0 : i32
    %c0_i32_0 = arith.constant 0 : i32
    %c0_i32_1 = arith.constant 0 : i32
    return %arg0, %c0_i32, %c0_i32_0 : i32, i32, i32
  }
  func.func @transform_1(%arg0: i32, %arg1: i32) -> (i32, i32, i32) {
    %c0_i32 = arith.constant 0 : i32
    %c0_i32_0 = arith.constant 0 : i32
    %c0_i32_1 = arith.constant 0 : i32
    return %c0_i32, %c0_i32_0, %arg1 : i32, i32, i32
  }
  func.func @transform_2(%arg0: i32, %arg1: i32) -> (i32, i32, i32) {
    %c0_i32 = arith.constant 0 : i32
    %c0_i32_0 = arith.constant 0 : i32
    return %arg0, %c0_i32, %arg1 : i32, i32, i32
  }
}

module attributes {stable_mosaic.version = 11 : i64} {
  func.func @_conv_fused_kernel(%arg0: i32, %arg1: i32, %arg2: memref<1x25x128xbf16, #tpu.memory_space<vmem>>, %arg3: memref<4x128x64xbf16, #tpu.memory_space<vmem>>, %arg4: memref<1x16x64xbf16, #tpu.memory_space<vmem>>) attributes {dimension_semantics = [#tpu.dimension_semantics<parallel>, #tpu.dimension_semantics<parallel>], iteration_bounds = array<i64: 2, 1>, scalar_prefetch = 0 : i64, scratch_operands = 0 : i64, tpu.core_type = #tpu.core_type<tc>, window_params = [{transform_indices = @transform_0, window_bounds = array<i64: 1, 25, 128>}, {transform_indices = @transform_1, window_bounds = array<i64: 4, 128, 64>}, {transform_indices = @transform_2, window_bounds = array<i64: 1, 16, 64>}]} {
    %c0 = arith.constant 0 : index
    %c0_0 = arith.constant 0 : index
    %c0_1 = arith.constant 0 : index
    %0 = vector.load %arg2[%c0, %c0_0, %c0_1] : memref<1x25x128xbf16, #tpu.memory_space<vmem>>, vector<1x16x128xbf16>
    %1 = vector.shape_cast %0 : vector<1x16x128xbf16> to vector<16x128xbf16>
    %c0_2 = arith.constant 0 : index
    %c0_3 = arith.constant 0 : index
    %c0_4 = arith.constant 0 : index
    %2 = vector.load %arg3[%c0_2, %c0_3, %c0_4] : memref<4x128x64xbf16, #tpu.memory_space<vmem>>, vector<1x128x64xbf16>
    %3 = vector.shape_cast %2 : vector<1x128x64xbf16> to vector<128x64xbf16>
    %cst = arith.constant dense<0.000000e+00> : vector<16x64xf32>
    %4 = tpu.matmul %1, %3, %cst {dimension_numbers = #tpu.dot_dimension_numbers<[1], [0], [0], [1], [0, 0, 1, 1], [], []>} : vector<16x128xbf16>, vector<128x64xbf16>, vector<16x64xf32> -> vector<16x64xf32>
    %c0_5 = arith.constant 0 : index
    %c1 = arith.constant 1 : index
    %c0_6 = arith.constant 0 : index
    %5 = vector.load %arg2[%c0_5, %c1, %c0_6] : memref<1x25x128xbf16, #tpu.memory_space<vmem>>, vector<1x16x128xbf16>
    %6 = vector.shape_cast %5 : vector<1x16x128xbf16> to vector<16x128xbf16>
    %c1_7 = arith.constant 1 : index
    %c0_8 = arith.constant 0 : index
    %c0_9 = arith.constant 0 : index
    %7 = vector.load %arg3[%c1_7, %c0_8, %c0_9] : memref<4x128x64xbf16, #tpu.memory_space<vmem>>, vector<1x128x64xbf16>
    %8 = vector.shape_cast %7 : vector<1x128x64xbf16> to vector<128x64xbf16>
    %cst_10 = arith.constant dense<0.000000e+00> : vector<16x64xf32>
    %9 = tpu.matmul %6, %8, %cst_10 {dimension_numbers = #tpu.dot_dimension_numbers<[1], [0], [0], [1], [0, 0, 1, 1], [], []>} : vector<16x128xbf16>, vector<128x64xbf16>, vector<16x64xf32> -> vector<16x64xf32>
    %10 = arith.addf %4, %9 : vector<16x64xf32>
    %c0_11 = arith.constant 0 : index
    %c5 = arith.constant 5 : index
    %c0_12 = arith.constant 0 : index
    %11 = vector.load %arg2[%c0_11, %c5, %c0_12] : memref<1x25x128xbf16, #tpu.memory_space<vmem>>, vector<1x16x128xbf16>
    %12 = vector.shape_cast %11 : vector<1x16x128xbf16> to vector<16x128xbf16>
    %c2 = arith.constant 2 : index
    %c0_13 = arith.constant 0 : index
    %c0_14 = arith.constant 0 : index
    %13 = vector.load %arg3[%c2, %c0_13, %c0_14] : memref<4x128x64xbf16, #tpu.memory_space<vmem>>, vector<1x128x64xbf16>
    %14 = vector.shape_cast %13 : vector<1x128x64xbf16> to vector<128x64xbf16>
    %cst_15 = arith.constant dense<0.000000e+00> : vector<16x64xf32>
    %15 = tpu.matmul %12, %14, %cst_15 {dimension_numbers = #tpu.dot_dimension_numbers<[1], [0], [0], [1], [0, 0, 1, 1], [], []>} : vector<16x128xbf16>, vector<128x64xbf16>, vector<16x64xf32> -> vector<16x64xf32>
    %16 = arith.addf %10, %15 : vector<16x64xf32>
    %c0_16 = arith.constant 0 : index
    %c6 = arith.constant 6 : index
    %c0_17 = arith.constant 0 : index
    %17 = vector.load %arg2[%c0_16, %c6, %c0_17] : memref<1x25x128xbf16, #tpu.memory_space<vmem>>, vector<1x16x128xbf16>
    %18 = vector.shape_cast %17 : vector<1x16x128xbf16> to vector<16x128xbf16>
    %c3 = arith.constant 3 : index
    %c0_18 = arith.constant 0 : index
    %c0_19 = arith.constant 0 : index
    %19 = vector.load %arg3[%c3, %c0_18, %c0_19] : memref<4x128x64xbf16, #tpu.memory_space<vmem>>, vector<1x128x64xbf16>
    %20 = vector.shape_cast %19 : vector<1x128x64xbf16> to vector<128x64xbf16>
    %cst_20 = arith.constant dense<0.000000e+00> : vector<16x64xf32>
    %21 = tpu.matmul %18, %20, %cst_20 {dimension_numbers = #tpu.dot_dimension_numbers<[1], [0], [0], [1], [0, 0, 1, 1], [], []>} : vector<16x128xbf16>, vector<128x64xbf16>, vector<16x64xf32> -> vector<16x64xf32>
    %22 = arith.addf %16, %21 : vector<16x64xf32>
    %23 = tpu.iota {dimensions = array<i32: 0>} : vector<16x1xi32>
    %c15_i32 = arith.constant 15 : i32
    %24 = vector.broadcast %c15_i32 : i32 to vector<16x1xi32>
    %25 = arith.cmpi slt, %23, %24 : vector<16x1xi32>
    %c5_i32 = arith.constant 5 : i32
    %c0_i32 = arith.constant 0 : i32
    %26 = arith.cmpi eq, %c5_i32, %c0_i32 : i32
    %c1_i32 = arith.constant 1 : i32
    %27 = arith.select %26, %c1_i32, %c5_i32 : i32
    %28 = vector.broadcast %27 : i32 to vector<16x1xi32>
    %29 = arith.remsi %23, %28 : vector<16x1xi32>
    %c0_i32_21 = arith.constant 0 : i32
    %30 = vector.broadcast %c0_i32_21 : i32 to vector<16x1xi32>
    %31 = arith.cmpi ne, %29, %30 : vector<16x1xi32>
    %c0_i32_22 = arith.constant 0 : i32
    %32 = vector.broadcast %c0_i32_22 : i32 to vector<16x1xi32>
    %33 = arith.cmpi slt, %29, %32 : vector<16x1xi32>
    %c0_i32_23 = arith.constant 0 : i32
    %34 = arith.cmpi slt, %27, %c0_i32_23 : i32
    %35 = vector.broadcast %34 : i1 to vector<16x1xi1>
    %36 = vector.broadcast %35 : vector<16x1xi1> to vector<16x1xi1>
    %37 = arith.xori %33, %36 : vector<16x1xi1>
    %38 = arith.andi %37, %31 : vector<16x1xi1>
    %39 = vector.broadcast %27 : i32 to vector<16x1xi32>
    %40 = arith.addi %29, %39 : vector<16x1xi32>
    %41 = arith.select %38, %40, %29 : vector<16x1xi1>, vector<16x1xi32>
    %c3_i32 = arith.constant 3 : i32
    %42 = vector.broadcast %c3_i32 : i32 to vector<16x1xi32>
    %43 = arith.cmpi slt, %41, %42 : vector<16x1xi32>
    %44 = arith.andi %25, %43 : vector<16x1xi1>
    %cst_24 = arith.constant 1.000000e+00 : f32
    %cst_25 = arith.constant 0.000000e+00 : f32
    %45 = vector.broadcast %cst_24 : f32 to vector<16x1xf32>
    %46 = vector.broadcast %cst_25 : f32 to vector<16x1xf32>
    %47 = arith.select %44, %45, %46 : vector<16x1xi1>, vector<16x1xf32>
    %48 = vector.broadcast %47 : vector<16x1xf32> to vector<16x64xf32>
    %49 = arith.mulf %22, %48 : vector<16x64xf32>
    %cst_26 = arith.constant dense<0.000000e+00> : vector<64xf32>
    %50 = vector.multi_reduction <add>, %49, %cst_26 [0] : vector<16x64xf32> to vector<64xf32>
    %51 = vector.shape_cast %50 : vector<64xf32> to vector<1x64xf32>
    %cst_27 = arith.constant 0.111111112 : f32
    %52 = vector.broadcast %cst_27 : f32 to vector<1x64xf32>
    %53 = arith.mulf %51, %52 : vector<1x64xf32>
    %54 = vector.broadcast %53 : vector<1x64xf32> to vector<16x64xf32>
    %55 = arith.subf %22, %54 : vector<16x64xf32>
    %56 = vector.broadcast %47 : vector<16x1xf32> to vector<16x64xf32>
    %57 = arith.mulf %55, %56 : vector<16x64xf32>
    %58 = arith.mulf %57, %57 : vector<16x64xf32>
    %cst_28 = arith.constant dense<0.000000e+00> : vector<64xf32>
    %59 = vector.multi_reduction <add>, %58, %cst_28 [0] : vector<16x64xf32> to vector<64xf32>
    %60 = vector.shape_cast %59 : vector<64xf32> to vector<1x64xf32>
    %cst_29 = arith.constant 0.111111112 : f32
    %61 = vector.broadcast %cst_29 : f32 to vector<1x64xf32>
    %62 = arith.mulf %60, %61 : vector<1x64xf32>
    %cst_30 = arith.constant 9.99999974E-6 : f32
    %63 = vector.broadcast %cst_30 : f32 to vector<1x64xf32>
    %64 = arith.addf %62, %63 : vector<1x64xf32>
    %65 = math.rsqrt %64 : vector<1x64xf32>
    %66 = vector.broadcast %65 : vector<1x64xf32> to vector<16x64xf32>
    %67 = arith.mulf %57, %66 : vector<16x64xf32>
    %cst_31 = arith.constant 0.000000e+00 : f32
    %68 = vector.broadcast %cst_31 : f32 to vector<16x64xf32>
    %69 = arith.cmpf oge, %67, %68 : vector<16x64xf32>
    %cst_32 = arith.constant 2.000000e-01 : f32
    %70 = vector.broadcast %cst_32 : f32 to vector<16x64xf32>
    %71 = arith.mulf %70, %67 : vector<16x64xf32>
    %72 = arith.select %69, %67, %71 : vector<16x64xi1>, vector<16x64xf32>
    %73 = arith.truncf %72 : vector<16x64xf32> to vector<16x64xbf16>
    %c0_33 = arith.constant 0 : index
    %c0_34 = arith.constant 0 : index
    %c0_35 = arith.constant 0 : index
    %74 = vector.load %arg4[%c0_33, %c0_34, %c0_35] : memref<1x16x64xbf16, #tpu.memory_space<vmem>>, vector<1x16x64xbf16>
    %75 = vector.shape_cast %74 : vector<1x16x64xbf16> to vector<16x64xbf16>
    %76 = vector.shape_cast %73 : vector<16x64xbf16> to vector<1x16x64xbf16>
    tpu.vector_store %arg4[%c0_33, %c0_34, %c0_35], %76 {strides = array<i32>} : memref<1x16x64xbf16, #tpu.memory_space<vmem>>, vector<1x16x64xbf16>,
    return
  }
  func.func @transform_0(%arg0: i32, %arg1: i32) -> (i32, i32, i32) {
    %c0_i32 = arith.constant 0 : i32
    %c0_i32_0 = arith.constant 0 : i32
    %c0_i32_1 = arith.constant 0 : i32
    return %arg0, %c0_i32, %c0_i32_0 : i32, i32, i32
  }
  func.func @transform_1(%arg0: i32, %arg1: i32) -> (i32, i32, i32) {
    %c0_i32 = arith.constant 0 : i32
    %c0_i32_0 = arith.constant 0 : i32
    %c0_i32_1 = arith.constant 0 : i32
    return %c0_i32, %c0_i32_0, %arg1 : i32, i32, i32
  }
  func.func @transform_2(%arg0: i32, %arg1: i32) -> (i32, i32, i32) {
    %c0_i32 = arith.constant 0 : i32
    %c0_i32_0 = arith.constant 0 : i32
    return %arg0, %c0_i32, %arg1 : i32, i32, i32
  }
}

module attributes {stable_mosaic.version = 11 : i64} {
  func.func @_conv_fused_kernel(%arg0: i32, %arg1: i32, %arg2: memref<1x56x64xbf16, #tpu.memory_space<vmem>>, %arg3: memref<16x64x128xbf16, #tpu.memory_space<vmem>>, %arg4: memref<1x32x128xbf16, #tpu.memory_space<vmem>>) attributes {dimension_semantics = [#tpu.dimension_semantics<parallel>, #tpu.dimension_semantics<parallel>], iteration_bounds = array<i64: 2, 1>, scalar_prefetch = 0 : i64, scratch_operands = 0 : i64, tpu.core_type = #tpu.core_type<tc>, window_params = [{transform_indices = @transform_0, window_bounds = array<i64: 1, 56, 64>}, {transform_indices = @transform_1, window_bounds = array<i64: 16, 64, 128>}, {transform_indices = @transform_2, window_bounds = array<i64: 1, 32, 128>}]} {
    %c0 = arith.constant 0 : index
    %c0_0 = arith.constant 0 : index
    %c0_1 = arith.constant 0 : index
    %0 = vector.load %arg2[%c0, %c0_0, %c0_1] : memref<1x56x64xbf16, #tpu.memory_space<vmem>>, vector<1x32x64xbf16>
    %1 = vector.shape_cast %0 : vector<1x32x64xbf16> to vector<32x64xbf16>
    %c0_2 = arith.constant 0 : index
    %c0_3 = arith.constant 0 : index
    %c0_4 = arith.constant 0 : index
    %2 = vector.load %arg3[%c0_2, %c0_3, %c0_4] : memref<16x64x128xbf16, #tpu.memory_space<vmem>>, vector<1x64x128xbf16>
    %3 = vector.shape_cast %2 : vector<1x64x128xbf16> to vector<64x128xbf16>
    %cst = arith.constant dense<0.000000e+00> : vector<32x128xf32>
    %4 = tpu.matmul %1, %3, %cst {dimension_numbers = #tpu.dot_dimension_numbers<[1], [0], [0], [1], [0, 0, 1, 1], [], []>} : vector<32x64xbf16>, vector<64x128xbf16>, vector<32x128xf32> -> vector<32x128xf32>
    %c0_5 = arith.constant 0 : index
    %c1 = arith.constant 1 : index
    %c0_6 = arith.constant 0 : index
    %5 = vector.load %arg2[%c0_5, %c1, %c0_6] : memref<1x56x64xbf16, #tpu.memory_space<vmem>>, vector<1x32x64xbf16>
    %6 = vector.shape_cast %5 : vector<1x32x64xbf16> to vector<32x64xbf16>
    %c1_7 = arith.constant 1 : index
    %c0_8 = arith.constant 0 : index
    %c0_9 = arith.constant 0 : index
    %7 = vector.load %arg3[%c1_7, %c0_8, %c0_9] : memref<16x64x128xbf16, #tpu.memory_space<vmem>>, vector<1x64x128xbf16>
    %8 = vector.shape_cast %7 : vector<1x64x128xbf16> to vector<64x128xbf16>
    %cst_10 = arith.constant dense<0.000000e+00> : vector<32x128xf32>
    %9 = tpu.matmul %6, %8, %cst_10 {dimension_numbers = #tpu.dot_dimension_numbers<[1], [0], [0], [1], [0, 0, 1, 1], [], []>} : vector<32x64xbf16>, vector<64x128xbf16>, vector<32x128xf32> -> vector<32x128xf32>
    %10 = arith.addf %4, %9 : vector<32x128xf32>
    %c0_11 = arith.constant 0 : index
    %c2 = arith.constant 2 : index
    %c0_12 = arith.constant 0 : index
    %11 = vector.load %arg2[%c0_11, %c2, %c0_12] : memref<1x56x64xbf16, #tpu.memory_space<vmem>>, vector<1x32x64xbf16>
    %12 = vector.shape_cast %11 : vector<1x32x64xbf16> to vector<32x64xbf16>
    %c2_13 = arith.constant 2 : index
    %c0_14 = arith.constant 0 : index
    %c0_15 = arith.constant 0 : index
    %13 = vector.load %arg3[%c2_13, %c0_14, %c0_15] : memref<16x64x128xbf16, #tpu.memory_space<vmem>>, vector<1x64x128xbf16>
    %14 = vector.shape_cast %13 : vector<1x64x128xbf16> to vector<64x128xbf16>
    %cst_16 = arith.constant dense<0.000000e+00> : vector<32x128xf32>
    %15 = tpu.matmul %12, %14, %cst_16 {dimension_numbers = #tpu.dot_dimension_numbers<[1], [0], [0], [1], [0, 0, 1, 1], [], []>} : vector<32x64xbf16>, vector<64x128xbf16>, vector<32x128xf32> -> vector<32x128xf32>
    %16 = arith.addf %10, %15 : vector<32x128xf32>
    %c0_17 = arith.constant 0 : index
    %c3 = arith.constant 3 : index
    %c0_18 = arith.constant 0 : index
    %17 = vector.load %arg2[%c0_17, %c3, %c0_18] : memref<1x56x64xbf16, #tpu.memory_space<vmem>>, vector<1x32x64xbf16>
    %18 = vector.shape_cast %17 : vector<1x32x64xbf16> to vector<32x64xbf16>
    %c3_19 = arith.constant 3 : index
    %c0_20 = arith.constant 0 : index
    %c0_21 = arith.constant 0 : index
    %19 = vector.load %arg3[%c3_19, %c0_20, %c0_21] : memref<16x64x128xbf16, #tpu.memory_space<vmem>>, vector<1x64x128xbf16>
    %20 = vector.shape_cast %19 : vector<1x64x128xbf16> to vector<64x128xbf16>
    %cst_22 = arith.constant dense<0.000000e+00> : vector<32x128xf32>
    %21 = tpu.matmul %18, %20, %cst_22 {dimension_numbers = #tpu.dot_dimension_numbers<[1], [0], [0], [1], [0, 0, 1, 1], [], []>} : vector<32x64xbf16>, vector<64x128xbf16>, vector<32x128xf32> -> vector<32x128xf32>
    %22 = arith.addf %16, %21 : vector<32x128xf32>
    %c0_23 = arith.constant 0 : index
    %c7 = arith.constant 7 : index
    %c0_24 = arith.constant 0 : index
    %23 = vector.load %arg2[%c0_23, %c7, %c0_24] : memref<1x56x64xbf16, #tpu.memory_space<vmem>>, vector<1x32x64xbf16>
    %24 = vector.shape_cast %23 : vector<1x32x64xbf16> to vector<32x64xbf16>
    %c4 = arith.constant 4 : index
    %c0_25 = arith.constant 0 : index
    %c0_26 = arith.constant 0 : index
    %25 = vector.load %arg3[%c4, %c0_25, %c0_26] : memref<16x64x128xbf16, #tpu.memory_space<vmem>>, vector<1x64x128xbf16>
    %26 = vector.shape_cast %25 : vector<1x64x128xbf16> to vector<64x128xbf16>
    %cst_27 = arith.constant dense<0.000000e+00> : vector<32x128xf32>
    %27 = tpu.matmul %24, %26, %cst_27 {dimension_numbers = #tpu.dot_dimension_numbers<[1], [0], [0], [1], [0, 0, 1, 1], [], []>} : vector<32x64xbf16>, vector<64x128xbf16>, vector<32x128xf32> -> vector<32x128xf32>
    %28 = arith.addf %22, %27 : vector<32x128xf32>
    %c0_28 = arith.constant 0 : index
    %c8 = arith.constant 8 : index
    %c0_29 = arith.constant 0 : index
    %29 = vector.load %arg2[%c0_28, %c8, %c0_29] : memref<1x56x64xbf16, #tpu.memory_space<vmem>>, vector<1x32x64xbf16>
    %30 = vector.shape_cast %29 : vector<1x32x64xbf16> to vector<32x64xbf16>
    %c5 = arith.constant 5 : index
    %c0_30 = arith.constant 0 : index
    %c0_31 = arith.constant 0 : index
    %31 = vector.load %arg3[%c5, %c0_30, %c0_31] : memref<16x64x128xbf16, #tpu.memory_space<vmem>>, vector<1x64x128xbf16>
    %32 = vector.shape_cast %31 : vector<1x64x128xbf16> to vector<64x128xbf16>
    %cst_32 = arith.constant dense<0.000000e+00> : vector<32x128xf32>
    %33 = tpu.matmul %30, %32, %cst_32 {dimension_numbers = #tpu.dot_dimension_numbers<[1], [0], [0], [1], [0, 0, 1, 1], [], []>} : vector<32x64xbf16>, vector<64x128xbf16>, vector<32x128xf32> -> vector<32x128xf32>
    %34 = arith.addf %28, %33 : vector<32x128xf32>
    %c0_33 = arith.constant 0 : index
    %c9 = arith.constant 9 : index
    %c0_34 = arith.constant 0 : index
    %35 = vector.load %arg2[%c0_33, %c9, %c0_34] : memref<1x56x64xbf16, #tpu.memory_space<vmem>>, vector<1x32x64xbf16>
    %36 = vector.shape_cast %35 : vector<1x32x64xbf16> to vector<32x64xbf16>
    %c6 = arith.constant 6 : index
    %c0_35 = arith.constant 0 : index
    %c0_36 = arith.constant 0 : index
    %37 = vector.load %arg3[%c6, %c0_35, %c0_36] : memref<16x64x128xbf16, #tpu.memory_space<vmem>>, vector<1x64x128xbf16>
    %38 = vector.shape_cast %37 : vector<1x64x128xbf16> to vector<64x128xbf16>
    %cst_37 = arith.constant dense<0.000000e+00> : vector<32x128xf32>
    %39 = tpu.matmul %36, %38, %cst_37 {dimension_numbers = #tpu.dot_dimension_numbers<[1], [0], [0], [1], [0, 0, 1, 1], [], []>} : vector<32x64xbf16>, vector<64x128xbf16>, vector<32x128xf32> -> vector<32x128xf32>
    %40 = arith.addf %34, %39 : vector<32x128xf32>
    %c0_38 = arith.constant 0 : index
    %c10 = arith.constant 10 : index
    %c0_39 = arith.constant 0 : index
    %41 = vector.load %arg2[%c0_38, %c10, %c0_39] : memref<1x56x64xbf16, #tpu.memory_space<vmem>>, vector<1x32x64xbf16>
    %42 = vector.shape_cast %41 : vector<1x32x64xbf16> to vector<32x64xbf16>
    %c7_40 = arith.constant 7 : index
    %c0_41 = arith.constant 0 : index
    %c0_42 = arith.constant 0 : index
    %43 = vector.load %arg3[%c7_40, %c0_41, %c0_42] : memref<16x64x128xbf16, #tpu.memory_space<vmem>>, vector<1x64x128xbf16>
    %44 = vector.shape_cast %43 : vector<1x64x128xbf16> to vector<64x128xbf16>
    %cst_43 = arith.constant dense<0.000000e+00> : vector<32x128xf32>
    %45 = tpu.matmul %42, %44, %cst_43 {dimension_numbers = #tpu.dot_dimension_numbers<[1], [0], [0], [1], [0, 0, 1, 1], [], []>} : vector<32x64xbf16>, vector<64x128xbf16>, vector<32x128xf32> -> vector<32x128xf32>
    %46 = arith.addf %40, %45 : vector<32x128xf32>
    %c0_44 = arith.constant 0 : index
    %c14 = arith.constant 14 : index
    %c0_45 = arith.constant 0 : index
    %47 = vector.load %arg2[%c0_44, %c14, %c0_45] : memref<1x56x64xbf16, #tpu.memory_space<vmem>>, vector<1x32x64xbf16>
    %48 = vector.shape_cast %47 : vector<1x32x64xbf16> to vector<32x64xbf16>
    %c8_46 = arith.constant 8 : index
    %c0_47 = arith.constant 0 : index
    %c0_48 = arith.constant 0 : index
    %49 = vector.load %arg3[%c8_46, %c0_47, %c0_48] : memref<16x64x128xbf16, #tpu.memory_space<vmem>>, vector<1x64x128xbf16>
    %50 = vector.shape_cast %49 : vector<1x64x128xbf16> to vector<64x128xbf16>
    %cst_49 = arith.constant dense<0.000000e+00> : vector<32x128xf32>
    %51 = tpu.matmul %48, %50, %cst_49 {dimension_numbers = #tpu.dot_dimension_numbers<[1], [0], [0], [1], [0, 0, 1, 1], [], []>} : vector<32x64xbf16>, vector<64x128xbf16>, vector<32x128xf32> -> vector<32x128xf32>
    %52 = arith.addf %46, %51 : vector<32x128xf32>
    %c0_50 = arith.constant 0 : index
    %c15 = arith.constant 15 : index
    %c0_51 = arith.constant 0 : index
    %53 = vector.load %arg2[%c0_50, %c15, %c0_51] : memref<1x56x64xbf16, #tpu.memory_space<vmem>>, vector<1x32x64xbf16>
    %54 = vector.shape_cast %53 : vector<1x32x64xbf16> to vector<32x64xbf16>
    %c9_52 = arith.constant 9 : index
    %c0_53 = arith.constant 0 : index
    %c0_54 = arith.constant 0 : index
    %55 = vector.load %arg3[%c9_52, %c0_53, %c0_54] : memref<16x64x128xbf16, #tpu.memory_space<vmem>>, vector<1x64x128xbf16>
    %56 = vector.shape_cast %55 : vector<1x64x128xbf16> to vector<64x128xbf16>
    %cst_55 = arith.constant dense<0.000000e+00> : vector<32x128xf32>
    %57 = tpu.matmul %54, %56, %cst_55 {dimension_numbers = #tpu.dot_dimension_numbers<[1], [0], [0], [1], [0, 0, 1, 1], [], []>} : vector<32x64xbf16>, vector<64x128xbf16>, vector<32x128xf32> -> vector<32x128xf32>
    %58 = arith.addf %52, %57 : vector<32x128xf32>
    %c0_56 = arith.constant 0 : index
    %c16 = arith.constant 16 : index
    %c0_57 = arith.constant 0 : index
    %59 = vector.load %arg2[%c0_56, %c16, %c0_57] : memref<1x56x64xbf16, #tpu.memory_space<vmem>>, vector<1x32x64xbf16>
    %60 = vector.shape_cast %59 : vector<1x32x64xbf16> to vector<32x64xbf16>
    %c10_58 = arith.constant 10 : index
    %c0_59 = arith.constant 0 : index
    %c0_60 = arith.constant 0 : index
    %61 = vector.load %arg3[%c10_58, %c0_59, %c0_60] : memref<16x64x128xbf16, #tpu.memory_space<vmem>>, vector<1x64x128xbf16>
    %62 = vector.shape_cast %61 : vector<1x64x128xbf16> to vector<64x128xbf16>
    %cst_61 = arith.constant dense<0.000000e+00> : vector<32x128xf32>
    %63 = tpu.matmul %60, %62, %cst_61 {dimension_numbers = #tpu.dot_dimension_numbers<[1], [0], [0], [1], [0, 0, 1, 1], [], []>} : vector<32x64xbf16>, vector<64x128xbf16>, vector<32x128xf32> -> vector<32x128xf32>
    %64 = arith.addf %58, %63 : vector<32x128xf32>
    %c0_62 = arith.constant 0 : index
    %c17 = arith.constant 17 : index
    %c0_63 = arith.constant 0 : index
    %65 = vector.load %arg2[%c0_62, %c17, %c0_63] : memref<1x56x64xbf16, #tpu.memory_space<vmem>>, vector<1x32x64xbf16>
    %66 = vector.shape_cast %65 : vector<1x32x64xbf16> to vector<32x64xbf16>
    %c11 = arith.constant 11 : index
    %c0_64 = arith.constant 0 : index
    %c0_65 = arith.constant 0 : index
    %67 = vector.load %arg3[%c11, %c0_64, %c0_65] : memref<16x64x128xbf16, #tpu.memory_space<vmem>>, vector<1x64x128xbf16>
    %68 = vector.shape_cast %67 : vector<1x64x128xbf16> to vector<64x128xbf16>
    %cst_66 = arith.constant dense<0.000000e+00> : vector<32x128xf32>
    %69 = tpu.matmul %66, %68, %cst_66 {dimension_numbers = #tpu.dot_dimension_numbers<[1], [0], [0], [1], [0, 0, 1, 1], [], []>} : vector<32x64xbf16>, vector<64x128xbf16>, vector<32x128xf32> -> vector<32x128xf32>
    %70 = arith.addf %64, %69 : vector<32x128xf32>
    %c0_67 = arith.constant 0 : index
    %c21 = arith.constant 21 : index
    %c0_68 = arith.constant 0 : index
    %71 = vector.load %arg2[%c0_67, %c21, %c0_68] : memref<1x56x64xbf16, #tpu.memory_space<vmem>>, vector<1x32x64xbf16>
    %72 = vector.shape_cast %71 : vector<1x32x64xbf16> to vector<32x64xbf16>
    %c12 = arith.constant 12 : index
    %c0_69 = arith.constant 0 : index
    %c0_70 = arith.constant 0 : index
    %73 = vector.load %arg3[%c12, %c0_69, %c0_70] : memref<16x64x128xbf16, #tpu.memory_space<vmem>>, vector<1x64x128xbf16>
    %74 = vector.shape_cast %73 : vector<1x64x128xbf16> to vector<64x128xbf16>
    %cst_71 = arith.constant dense<0.000000e+00> : vector<32x128xf32>
    %75 = tpu.matmul %72, %74, %cst_71 {dimension_numbers = #tpu.dot_dimension_numbers<[1], [0], [0], [1], [0, 0, 1, 1], [], []>} : vector<32x64xbf16>, vector<64x128xbf16>, vector<32x128xf32> -> vector<32x128xf32>
    %76 = arith.addf %70, %75 : vector<32x128xf32>
    %c0_72 = arith.constant 0 : index
    %c22 = arith.constant 22 : index
    %c0_73 = arith.constant 0 : index
    %77 = vector.load %arg2[%c0_72, %c22, %c0_73] : memref<1x56x64xbf16, #tpu.memory_space<vmem>>, vector<1x32x64xbf16>
    %78 = vector.shape_cast %77 : vector<1x32x64xbf16> to vector<32x64xbf16>
    %c13 = arith.constant 13 : index
    %c0_74 = arith.constant 0 : index
    %c0_75 = arith.constant 0 : index
    %79 = vector.load %arg3[%c13, %c0_74, %c0_75] : memref<16x64x128xbf16, #tpu.memory_space<vmem>>, vector<1x64x128xbf16>
    %80 = vector.shape_cast %79 : vector<1x64x128xbf16> to vector<64x128xbf16>
    %cst_76 = arith.constant dense<0.000000e+00> : vector<32x128xf32>
    %81 = tpu.matmul %78, %80, %cst_76 {dimension_numbers = #tpu.dot_dimension_numbers<[1], [0], [0], [1], [0, 0, 1, 1], [], []>} : vector<32x64xbf16>, vector<64x128xbf16>, vector<32x128xf32> -> vector<32x128xf32>
    %82 = arith.addf %76, %81 : vector<32x128xf32>
    %c0_77 = arith.constant 0 : index
    %c23 = arith.constant 23 : index
    %c0_78 = arith.constant 0 : index
    %83 = vector.load %arg2[%c0_77, %c23, %c0_78] : memref<1x56x64xbf16, #tpu.memory_space<vmem>>, vector<1x32x64xbf16>
    %84 = vector.shape_cast %83 : vector<1x32x64xbf16> to vector<32x64xbf16>
    %c14_79 = arith.constant 14 : index
    %c0_80 = arith.constant 0 : index
    %c0_81 = arith.constant 0 : index
    %85 = vector.load %arg3[%c14_79, %c0_80, %c0_81] : memref<16x64x128xbf16, #tpu.memory_space<vmem>>, vector<1x64x128xbf16>
    %86 = vector.shape_cast %85 : vector<1x64x128xbf16> to vector<64x128xbf16>
    %cst_82 = arith.constant dense<0.000000e+00> : vector<32x128xf32>
    %87 = tpu.matmul %84, %86, %cst_82 {dimension_numbers = #tpu.dot_dimension_numbers<[1], [0], [0], [1], [0, 0, 1, 1], [], []>} : vector<32x64xbf16>, vector<64x128xbf16>, vector<32x128xf32> -> vector<32x128xf32>
    %88 = arith.addf %82, %87 : vector<32x128xf32>
    %c0_83 = arith.constant 0 : index
    %c24 = arith.constant 24 : index
    %c0_84 = arith.constant 0 : index
    %89 = vector.load %arg2[%c0_83, %c24, %c0_84] : memref<1x56x64xbf16, #tpu.memory_space<vmem>>, vector<1x32x64xbf16>
    %90 = vector.shape_cast %89 : vector<1x32x64xbf16> to vector<32x64xbf16>
    %c15_85 = arith.constant 15 : index
    %c0_86 = arith.constant 0 : index
    %c0_87 = arith.constant 0 : index
    %91 = vector.load %arg3[%c15_85, %c0_86, %c0_87] : memref<16x64x128xbf16, #tpu.memory_space<vmem>>, vector<1x64x128xbf16>
    %92 = vector.shape_cast %91 : vector<1x64x128xbf16> to vector<64x128xbf16>
    %cst_88 = arith.constant dense<0.000000e+00> : vector<32x128xf32>
    %93 = tpu.matmul %90, %92, %cst_88 {dimension_numbers = #tpu.dot_dimension_numbers<[1], [0], [0], [1], [0, 0, 1, 1], [], []>} : vector<32x64xbf16>, vector<64x128xbf16>, vector<32x128xf32> -> vector<32x128xf32>
    %94 = arith.addf %88, %93 : vector<32x128xf32>
    %95 = tpu.iota {dimensions = array<i32: 0>} : vector<32x1xi32>
    %c28_i32 = arith.constant 28 : i32
    %96 = vector.broadcast %c28_i32 : i32 to vector<32x1xi32>
    %97 = arith.cmpi slt, %95, %96 : vector<32x1xi32>
    %c7_i32 = arith.constant 7 : i32
    %c0_i32 = arith.constant 0 : i32
    %98 = arith.cmpi eq, %c7_i32, %c0_i32 : i32
    %c1_i32 = arith.constant 1 : i32
    %99 = arith.select %98, %c1_i32, %c7_i32 : i32
    %100 = vector.broadcast %99 : i32 to vector<32x1xi32>
    %101 = arith.remsi %95, %100 : vector<32x1xi32>
    %c0_i32_89 = arith.constant 0 : i32
    %102 = vector.broadcast %c0_i32_89 : i32 to vector<32x1xi32>
    %103 = arith.cmpi ne, %101, %102 : vector<32x1xi32>
    %c0_i32_90 = arith.constant 0 : i32
    %104 = vector.broadcast %c0_i32_90 : i32 to vector<32x1xi32>
    %105 = arith.cmpi slt, %101, %104 : vector<32x1xi32>
    %c0_i32_91 = arith.constant 0 : i32
    %106 = arith.cmpi slt, %99, %c0_i32_91 : i32
    %107 = vector.broadcast %106 : i1 to vector<32x1xi1>
    %108 = vector.broadcast %107 : vector<32x1xi1> to vector<32x1xi1>
    %109 = arith.xori %105, %108 : vector<32x1xi1>
    %110 = arith.andi %109, %103 : vector<32x1xi1>
    %111 = vector.broadcast %99 : i32 to vector<32x1xi32>
    %112 = arith.addi %101, %111 : vector<32x1xi32>
    %113 = arith.select %110, %112, %101 : vector<32x1xi1>, vector<32x1xi32>
    %c4_i32 = arith.constant 4 : i32
    %114 = vector.broadcast %c4_i32 : i32 to vector<32x1xi32>
    %115 = arith.cmpi slt, %113, %114 : vector<32x1xi32>
    %116 = arith.andi %97, %115 : vector<32x1xi1>
    %cst_92 = arith.constant 1.000000e+00 : f32
    %cst_93 = arith.constant 0.000000e+00 : f32
    %117 = vector.broadcast %cst_92 : f32 to vector<32x1xf32>
    %118 = vector.broadcast %cst_93 : f32 to vector<32x1xf32>
    %119 = arith.select %116, %117, %118 : vector<32x1xi1>, vector<32x1xf32>
    %120 = vector.broadcast %119 : vector<32x1xf32> to vector<32x128xf32>
    %121 = arith.mulf %94, %120 : vector<32x128xf32>
    %cst_94 = arith.constant dense<0.000000e+00> : vector<128xf32>
    %122 = vector.multi_reduction <add>, %121, %cst_94 [0] : vector<32x128xf32> to vector<128xf32>
    %123 = vector.shape_cast %122 : vector<128xf32> to vector<1x128xf32>
    %cst_95 = arith.constant 6.250000e-02 : f32
    %124 = vector.broadcast %cst_95 : f32 to vector<1x128xf32>
    %125 = arith.mulf %123, %124 : vector<1x128xf32>
    %126 = vector.broadcast %125 : vector<1x128xf32> to vector<32x128xf32>
    %127 = arith.subf %94, %126 : vector<32x128xf32>
    %128 = vector.broadcast %119 : vector<32x1xf32> to vector<32x128xf32>
    %129 = arith.mulf %127, %128 : vector<32x128xf32>
    %130 = arith.mulf %129, %129 : vector<32x128xf32>
    %cst_96 = arith.constant dense<0.000000e+00> : vector<128xf32>
    %131 = vector.multi_reduction <add>, %130, %cst_96 [0] : vector<32x128xf32> to vector<128xf32>
    %132 = vector.shape_cast %131 : vector<128xf32> to vector<1x128xf32>
    %cst_97 = arith.constant 6.250000e-02 : f32
    %133 = vector.broadcast %cst_97 : f32 to vector<1x128xf32>
    %134 = arith.mulf %132, %133 : vector<1x128xf32>
    %cst_98 = arith.constant 9.99999974E-6 : f32
    %135 = vector.broadcast %cst_98 : f32 to vector<1x128xf32>
    %136 = arith.addf %134, %135 : vector<1x128xf32>
    %137 = math.rsqrt %136 : vector<1x128xf32>
    %138 = vector.broadcast %137 : vector<1x128xf32> to vector<32x128xf32>
    %139 = arith.mulf %129, %138 : vector<32x128xf32>
    %cst_99 = arith.constant 0.000000e+00 : f32
    %140 = vector.broadcast %cst_99 : f32 to vector<32x128xf32>
    %141 = arith.cmpf oge, %139, %140 : vector<32x128xf32>
    %cst_100 = arith.constant 2.000000e-01 : f32
    %142 = vector.broadcast %cst_100 : f32 to vector<32x128xf32>
    %143 = arith.mulf %142, %139 : vector<32x128xf32>
    %144 = arith.select %141, %139, %143 : vector<32x128xi1>, vector<32x128xf32>
    %145 = arith.truncf %144 : vector<32x128xf32> to vector<32x128xbf16>
    %c0_101 = arith.constant 0 : index
    %c0_102 = arith.constant 0 : index
    %c0_103 = arith.constant 0 : index
    %146 = vector.load %arg4[%c0_101, %c0_102, %c0_103] : memref<1x32x128xbf16, #tpu.memory_space<vmem>>, vector<1x32x128xbf16>
    %147 = vector.shape_cast %146 : vector<1x32x128xbf16> to vector<32x128xbf16>
    %148 = vector.shape_cast %145 : vector<32x128xbf16> to vector<1x32x128xbf16>
    tpu.vector_store %arg4[%c0_101, %c0_102, %c0_103], %148 {strides = array<i32>} : memref<1x32x128xbf16, #tpu.memory_space<vmem>>, vector<1x32x128xbf16>,
    return
  }
  func.func @transform_0(%arg0: i32, %arg1: i32) -> (i32, i32, i32) {
    %c0_i32 = arith.constant 0 : i32
    %c0_i32_0 = arith.constant 0 : i32
    %c0_i32_1 = arith.constant 0 : i32
    return %arg0, %c0_i32, %c0_i32_0 : i32, i32, i32
  }
  func.func @transform_1(%arg0: i32, %arg1: i32) -> (i32, i32, i32) {
    %c0_i32 = arith.constant 0 : i32
    %c0_i32_0 = arith.constant 0 : i32
    %c0_i32_1 = arith.constant 0 : i32
    return %c0_i32, %c0_i32_0, %arg1 : i32, i32, i32
  }
  func.func @transform_2(%arg0: i32, %arg1: i32) -> (i32, i32, i32) {
    %c0_i32 = arith.constant 0 : i32
    %c0_i32_0 = arith.constant 0 : i32
    return %arg0, %c0_i32, %arg1 : i32, i32, i32
  }
}

module attributes {stable_mosaic.version = 11 : i64} {
  func.func @_conv_fused_kernel(%arg0: i32, %arg1: i32, %arg2: memref<1x80x128xbf16, #tpu.memory_space<vmem>>, %arg3: memref<16x128x8xbf16, #tpu.memory_space<vmem>>, %arg4: memref<1x8xf32, #tpu.memory_space<vmem>>, %arg5: memref<1x48x8xf32, #tpu.memory_space<vmem>>) attributes {dimension_semantics = [#tpu.dimension_semantics<parallel>, #tpu.dimension_semantics<parallel>], iteration_bounds = array<i64: 2, 1>, scalar_prefetch = 0 : i64, scratch_operands = 0 : i64, tpu.core_type = #tpu.core_type<tc>, window_params = [{transform_indices = @transform_0, window_bounds = array<i64: 1, 80, 128>}, {transform_indices = @transform_1, window_bounds = array<i64: 16, 128, 8>}, {transform_indices = @transform_2, window_bounds = array<i64: 1, 8>}, {transform_indices = @transform_3, window_bounds = array<i64: 1, 48, 8>}]} {
    %c0 = arith.constant 0 : index
    %c0_0 = arith.constant 0 : index
    %c0_1 = arith.constant 0 : index
    %0 = vector.load %arg2[%c0, %c0_0, %c0_1] : memref<1x80x128xbf16, #tpu.memory_space<vmem>>, vector<1x48x128xbf16>
    %1 = vector.shape_cast %0 : vector<1x48x128xbf16> to vector<48x128xbf16>
    %c0_2 = arith.constant 0 : index
    %c0_3 = arith.constant 0 : index
    %c0_4 = arith.constant 0 : index
    %2 = vector.load %arg3[%c0_2, %c0_3, %c0_4] : memref<16x128x8xbf16, #tpu.memory_space<vmem>>, vector<1x128x8xbf16>
    %3 = vector.shape_cast %2 : vector<1x128x8xbf16> to vector<128x8xbf16>
    %cst = arith.constant dense<0.000000e+00> : vector<48x8xf32>
    %4 = tpu.matmul %1, %3, %cst {dimension_numbers = #tpu.dot_dimension_numbers<[1], [0], [0], [1], [0, 0, 1, 1], [], []>} : vector<48x128xbf16>, vector<128x8xbf16>, vector<48x8xf32> -> vector<48x8xf32>
    %c0_5 = arith.constant 0 : index
    %c1 = arith.constant 1 : index
    %c0_6 = arith.constant 0 : index
    %5 = vector.load %arg2[%c0_5, %c1, %c0_6] : memref<1x80x128xbf16, #tpu.memory_space<vmem>>, vector<1x48x128xbf16>
    %6 = vector.shape_cast %5 : vector<1x48x128xbf16> to vector<48x128xbf16>
    %c1_7 = arith.constant 1 : index
    %c0_8 = arith.constant 0 : index
    %c0_9 = arith.constant 0 : index
    %7 = vector.load %arg3[%c1_7, %c0_8, %c0_9] : memref<16x128x8xbf16, #tpu.memory_space<vmem>>, vector<1x128x8xbf16>
    %8 = vector.shape_cast %7 : vector<1x128x8xbf16> to vector<128x8xbf16>
    %cst_10 = arith.constant dense<0.000000e+00> : vector<48x8xf32>
    %9 = tpu.matmul %6, %8, %cst_10 {dimension_numbers = #tpu.dot_dimension_numbers<[1], [0], [0], [1], [0, 0, 1, 1], [], []>} : vector<48x128xbf16>, vector<128x8xbf16>, vector<48x8xf32> -> vector<48x8xf32>
    %10 = arith.addf %4, %9 : vector<48x8xf32>
    %c0_11 = arith.constant 0 : index
    %c2 = arith.constant 2 : index
    %c0_12 = arith.constant 0 : index
    %11 = vector.load %arg2[%c0_11, %c2, %c0_12] : memref<1x80x128xbf16, #tpu.memory_space<vmem>>, vector<1x48x128xbf16>
    %12 = vector.shape_cast %11 : vector<1x48x128xbf16> to vector<48x128xbf16>
    %c2_13 = arith.constant 2 : index
    %c0_14 = arith.constant 0 : index
    %c0_15 = arith.constant 0 : index
    %13 = vector.load %arg3[%c2_13, %c0_14, %c0_15] : memref<16x128x8xbf16, #tpu.memory_space<vmem>>, vector<1x128x8xbf16>
    %14 = vector.shape_cast %13 : vector<1x128x8xbf16> to vector<128x8xbf16>
    %cst_16 = arith.constant dense<0.000000e+00> : vector<48x8xf32>
    %15 = tpu.matmul %12, %14, %cst_16 {dimension_numbers = #tpu.dot_dimension_numbers<[1], [0], [0], [1], [0, 0, 1, 1], [], []>} : vector<48x128xbf16>, vector<128x8xbf16>, vector<48x8xf32> -> vector<48x8xf32>
    %16 = arith.addf %10, %15 : vector<48x8xf32>
    %c0_17 = arith.constant 0 : index
    %c3 = arith.constant 3 : index
    %c0_18 = arith.constant 0 : index
    %17 = vector.load %arg2[%c0_17, %c3, %c0_18] : memref<1x80x128xbf16, #tpu.memory_space<vmem>>, vector<1x48x128xbf16>
    %18 = vector.shape_cast %17 : vector<1x48x128xbf16> to vector<48x128xbf16>
    %c3_19 = arith.constant 3 : index
    %c0_20 = arith.constant 0 : index
    %c0_21 = arith.constant 0 : index
    %19 = vector.load %arg3[%c3_19, %c0_20, %c0_21] : memref<16x128x8xbf16, #tpu.memory_space<vmem>>, vector<1x128x8xbf16>
    %20 = vector.shape_cast %19 : vector<1x128x8xbf16> to vector<128x8xbf16>
    %cst_22 = arith.constant dense<0.000000e+00> : vector<48x8xf32>
    %21 = tpu.matmul %18, %20, %cst_22 {dimension_numbers = #tpu.dot_dimension_numbers<[1], [0], [0], [1], [0, 0, 1, 1], [], []>} : vector<48x128xbf16>, vector<128x8xbf16>, vector<48x8xf32> -> vector<48x8xf32>
    %22 = arith.addf %16, %21 : vector<48x8xf32>
    %c0_23 = arith.constant 0 : index
    %c8 = arith.constant 8 : index
    %c0_24 = arith.constant 0 : index
    %23 = vector.load %arg2[%c0_23, %c8, %c0_24] : memref<1x80x128xbf16, #tpu.memory_space<vmem>>, vector<1x48x128xbf16>
    %24 = vector.shape_cast %23 : vector<1x48x128xbf16> to vector<48x128xbf16>
    %c4 = arith.constant 4 : index
    %c0_25 = arith.constant 0 : index
    %c0_26 = arith.constant 0 : index
    %25 = vector.load %arg3[%c4, %c0_25, %c0_26] : memref<16x128x8xbf16, #tpu.memory_space<vmem>>, vector<1x128x8xbf16>
    %26 = vector.shape_cast %25 : vector<1x128x8xbf16> to vector<128x8xbf16>
    %cst_27 = arith.constant dense<0.000000e+00> : vector<48x8xf32>
    %27 = tpu.matmul %24, %26, %cst_27 {dimension_numbers = #tpu.dot_dimension_numbers<[1], [0], [0], [1], [0, 0, 1, 1], [], []>} : vector<48x128xbf16>, vector<128x8xbf16>, vector<48x8xf32> -> vector<48x8xf32>
    %28 = arith.addf %22, %27 : vector<48x8xf32>
    %c0_28 = arith.constant 0 : index
    %c9 = arith.constant 9 : index
    %c0_29 = arith.constant 0 : index
    %29 = vector.load %arg2[%c0_28, %c9, %c0_29] : memref<1x80x128xbf16, #tpu.memory_space<vmem>>, vector<1x48x128xbf16>
    %30 = vector.shape_cast %29 : vector<1x48x128xbf16> to vector<48x128xbf16>
    %c5 = arith.constant 5 : index
    %c0_30 = arith.constant 0 : index
    %c0_31 = arith.constant 0 : index
    %31 = vector.load %arg3[%c5, %c0_30, %c0_31] : memref<16x128x8xbf16, #tpu.memory_space<vmem>>, vector<1x128x8xbf16>
    %32 = vector.shape_cast %31 : vector<1x128x8xbf16> to vector<128x8xbf16>
    %cst_32 = arith.constant dense<0.000000e+00> : vector<48x8xf32>
    %33 = tpu.matmul %30, %32, %cst_32 {dimension_numbers = #tpu.dot_dimension_numbers<[1], [0], [0], [1], [0, 0, 1, 1], [], []>} : vector<48x128xbf16>, vector<128x8xbf16>, vector<48x8xf32> -> vector<48x8xf32>
    %34 = arith.addf %28, %33 : vector<48x8xf32>
    %c0_33 = arith.constant 0 : index
    %c10 = arith.constant 10 : index
    %c0_34 = arith.constant 0 : index
    %35 = vector.load %arg2[%c0_33, %c10, %c0_34] : memref<1x80x128xbf16, #tpu.memory_space<vmem>>, vector<1x48x128xbf16>
    %36 = vector.shape_cast %35 : vector<1x48x128xbf16> to vector<48x128xbf16>
    %c6 = arith.constant 6 : index
    %c0_35 = arith.constant 0 : index
    %c0_36 = arith.constant 0 : index
    %37 = vector.load %arg3[%c6, %c0_35, %c0_36] : memref<16x128x8xbf16, #tpu.memory_space<vmem>>, vector<1x128x8xbf16>
    %38 = vector.shape_cast %37 : vector<1x128x8xbf16> to vector<128x8xbf16>
    %cst_37 = arith.constant dense<0.000000e+00> : vector<48x8xf32>
    %39 = tpu.matmul %36, %38, %cst_37 {dimension_numbers = #tpu.dot_dimension_numbers<[1], [0], [0], [1], [0, 0, 1, 1], [], []>} : vector<48x128xbf16>, vector<128x8xbf16>, vector<48x8xf32> -> vector<48x8xf32>
    %40 = arith.addf %34, %39 : vector<48x8xf32>
    %c0_38 = arith.constant 0 : index
    %c11 = arith.constant 11 : index
    %c0_39 = arith.constant 0 : index
    %41 = vector.load %arg2[%c0_38, %c11, %c0_39] : memref<1x80x128xbf16, #tpu.memory_space<vmem>>, vector<1x48x128xbf16>
    %42 = vector.shape_cast %41 : vector<1x48x128xbf16> to vector<48x128xbf16>
    %c7 = arith.constant 7 : index
    %c0_40 = arith.constant 0 : index
    %c0_41 = arith.constant 0 : index
    %43 = vector.load %arg3[%c7, %c0_40, %c0_41] : memref<16x128x8xbf16, #tpu.memory_space<vmem>>, vector<1x128x8xbf16>
    %44 = vector.shape_cast %43 : vector<1x128x8xbf16> to vector<128x8xbf16>
    %cst_42 = arith.constant dense<0.000000e+00> : vector<48x8xf32>
    %45 = tpu.matmul %42, %44, %cst_42 {dimension_numbers = #tpu.dot_dimension_numbers<[1], [0], [0], [1], [0, 0, 1, 1], [], []>} : vector<48x128xbf16>, vector<128x8xbf16>, vector<48x8xf32> -> vector<48x8xf32>
    %46 = arith.addf %40, %45 : vector<48x8xf32>
    %c0_43 = arith.constant 0 : index
    %c16 = arith.constant 16 : index
    %c0_44 = arith.constant 0 : index
    %47 = vector.load %arg2[%c0_43, %c16, %c0_44] : memref<1x80x128xbf16, #tpu.memory_space<vmem>>, vector<1x48x128xbf16>
    %48 = vector.shape_cast %47 : vector<1x48x128xbf16> to vector<48x128xbf16>
    %c8_45 = arith.constant 8 : index
    %c0_46 = arith.constant 0 : index
    %c0_47 = arith.constant 0 : index
    %49 = vector.load %arg3[%c8_45, %c0_46, %c0_47] : memref<16x128x8xbf16, #tpu.memory_space<vmem>>, vector<1x128x8xbf16>
    %50 = vector.shape_cast %49 : vector<1x128x8xbf16> to vector<128x8xbf16>
    %cst_48 = arith.constant dense<0.000000e+00> : vector<48x8xf32>
    %51 = tpu.matmul %48, %50, %cst_48 {dimension_numbers = #tpu.dot_dimension_numbers<[1], [0], [0], [1], [0, 0, 1, 1], [], []>} : vector<48x128xbf16>, vector<128x8xbf16>, vector<48x8xf32> -> vector<48x8xf32>
    %52 = arith.addf %46, %51 : vector<48x8xf32>
    %c0_49 = arith.constant 0 : index
    %c17 = arith.constant 17 : index
    %c0_50 = arith.constant 0 : index
    %53 = vector.load %arg2[%c0_49, %c17, %c0_50] : memref<1x80x128xbf16, #tpu.memory_space<vmem>>, vector<1x48x128xbf16>
    %54 = vector.shape_cast %53 : vector<1x48x128xbf16> to vector<48x128xbf16>
    %c9_51 = arith.constant 9 : index
    %c0_52 = arith.constant 0 : index
    %c0_53 = arith.constant 0 : index
    %55 = vector.load %arg3[%c9_51, %c0_52, %c0_53] : memref<16x128x8xbf16, #tpu.memory_space<vmem>>, vector<1x128x8xbf16>
    %56 = vector.shape_cast %55 : vector<1x128x8xbf16> to vector<128x8xbf16>
    %cst_54 = arith.constant dense<0.000000e+00> : vector<48x8xf32>
    %57 = tpu.matmul %54, %56, %cst_54 {dimension_numbers = #tpu.dot_dimension_numbers<[1], [0], [0], [1], [0, 0, 1, 1], [], []>} : vector<48x128xbf16>, vector<128x8xbf16>, vector<48x8xf32> -> vector<48x8xf32>
    %58 = arith.addf %52, %57 : vector<48x8xf32>
    %c0_55 = arith.constant 0 : index
    %c18 = arith.constant 18 : index
    %c0_56 = arith.constant 0 : index
    %59 = vector.load %arg2[%c0_55, %c18, %c0_56] : memref<1x80x128xbf16, #tpu.memory_space<vmem>>, vector<1x48x128xbf16>
    %60 = vector.shape_cast %59 : vector<1x48x128xbf16> to vector<48x128xbf16>
    %c10_57 = arith.constant 10 : index
    %c0_58 = arith.constant 0 : index
    %c0_59 = arith.constant 0 : index
    %61 = vector.load %arg3[%c10_57, %c0_58, %c0_59] : memref<16x128x8xbf16, #tpu.memory_space<vmem>>, vector<1x128x8xbf16>
    %62 = vector.shape_cast %61 : vector<1x128x8xbf16> to vector<128x8xbf16>
    %cst_60 = arith.constant dense<0.000000e+00> : vector<48x8xf32>
    %63 = tpu.matmul %60, %62, %cst_60 {dimension_numbers = #tpu.dot_dimension_numbers<[1], [0], [0], [1], [0, 0, 1, 1], [], []>} : vector<48x128xbf16>, vector<128x8xbf16>, vector<48x8xf32> -> vector<48x8xf32>
    %64 = arith.addf %58, %63 : vector<48x8xf32>
    %c0_61 = arith.constant 0 : index
    %c19 = arith.constant 19 : index
    %c0_62 = arith.constant 0 : index
    %65 = vector.load %arg2[%c0_61, %c19, %c0_62] : memref<1x80x128xbf16, #tpu.memory_space<vmem>>, vector<1x48x128xbf16>
    %66 = vector.shape_cast %65 : vector<1x48x128xbf16> to vector<48x128xbf16>
    %c11_63 = arith.constant 11 : index
    %c0_64 = arith.constant 0 : index
    %c0_65 = arith.constant 0 : index
    %67 = vector.load %arg3[%c11_63, %c0_64, %c0_65] : memref<16x128x8xbf16, #tpu.memory_space<vmem>>, vector<1x128x8xbf16>
    %68 = vector.shape_cast %67 : vector<1x128x8xbf16> to vector<128x8xbf16>
    %cst_66 = arith.constant dense<0.000000e+00> : vector<48x8xf32>
    %69 = tpu.matmul %66, %68, %cst_66 {dimension_numbers = #tpu.dot_dimension_numbers<[1], [0], [0], [1], [0, 0, 1, 1], [], []>} : vector<48x128xbf16>, vector<128x8xbf16>, vector<48x8xf32> -> vector<48x8xf32>
    %70 = arith.addf %64, %69 : vector<48x8xf32>
    %c0_67 = arith.constant 0 : index
    %c24 = arith.constant 24 : index
    %c0_68 = arith.constant 0 : index
    %71 = vector.load %arg2[%c0_67, %c24, %c0_68] : memref<1x80x128xbf16, #tpu.memory_space<vmem>>, vector<1x48x128xbf16>
    %72 = vector.shape_cast %71 : vector<1x48x128xbf16> to vector<48x128xbf16>
    %c12 = arith.constant 12 : index
    %c0_69 = arith.constant 0 : index
    %c0_70 = arith.constant 0 : index
    %73 = vector.load %arg3[%c12, %c0_69, %c0_70] : memref<16x128x8xbf16, #tpu.memory_space<vmem>>, vector<1x128x8xbf16>
    %74 = vector.shape_cast %73 : vector<1x128x8xbf16> to vector<128x8xbf16>
    %cst_71 = arith.constant dense<0.000000e+00> : vector<48x8xf32>
    %75 = tpu.matmul %72, %74, %cst_71 {dimension_numbers = #tpu.dot_dimension_numbers<[1], [0], [0], [1], [0, 0, 1, 1], [], []>} : vector<48x128xbf16>, vector<128x8xbf16>, vector<48x8xf32> -> vector<48x8xf32>
    %76 = arith.addf %70, %75 : vector<48x8xf32>
    %c0_72 = arith.constant 0 : index
    %c25 = arith.constant 25 : index
    %c0_73 = arith.constant 0 : index
    %77 = vector.load %arg2[%c0_72, %c25, %c0_73] : memref<1x80x128xbf16, #tpu.memory_space<vmem>>, vector<1x48x128xbf16>
    %78 = vector.shape_cast %77 : vector<1x48x128xbf16> to vector<48x128xbf16>
    %c13 = arith.constant 13 : index
    %c0_74 = arith.constant 0 : index
    %c0_75 = arith.constant 0 : index
    %79 = vector.load %arg3[%c13, %c0_74, %c0_75] : memref<16x128x8xbf16, #tpu.memory_space<vmem>>, vector<1x128x8xbf16>
    %80 = vector.shape_cast %79 : vector<1x128x8xbf16> to vector<128x8xbf16>
    %cst_76 = arith.constant dense<0.000000e+00> : vector<48x8xf32>
    %81 = tpu.matmul %78, %80, %cst_76 {dimension_numbers = #tpu.dot_dimension_numbers<[1], [0], [0], [1], [0, 0, 1, 1], [], []>} : vector<48x128xbf16>, vector<128x8xbf16>, vector<48x8xf32> -> vector<48x8xf32>
    %82 = arith.addf %76, %81 : vector<48x8xf32>
    %c0_77 = arith.constant 0 : index
    %c26 = arith.constant 26 : index
    %c0_78 = arith.constant 0 : index
    %83 = vector.load %arg2[%c0_77, %c26, %c0_78] : memref<1x80x128xbf16, #tpu.memory_space<vmem>>, vector<1x48x128xbf16>
    %84 = vector.shape_cast %83 : vector<1x48x128xbf16> to vector<48x128xbf16>
    %c14 = arith.constant 14 : index
    %c0_79 = arith.constant 0 : index
    %c0_80 = arith.constant 0 : index
    %85 = vector.load %arg3[%c14, %c0_79, %c0_80] : memref<16x128x8xbf16, #tpu.memory_space<vmem>>, vector<1x128x8xbf16>
    %86 = vector.shape_cast %85 : vector<1x128x8xbf16> to vector<128x8xbf16>
    %cst_81 = arith.constant dense<0.000000e+00> : vector<48x8xf32>
    %87 = tpu.matmul %84, %86, %cst_81 {dimension_numbers = #tpu.dot_dimension_numbers<[1], [0], [0], [1], [0, 0, 1, 1], [], []>} : vector<48x128xbf16>, vector<128x8xbf16>, vector<48x8xf32> -> vector<48x8xf32>
    %88 = arith.addf %82, %87 : vector<48x8xf32>
    %c0_82 = arith.constant 0 : index
    %c27 = arith.constant 27 : index
    %c0_83 = arith.constant 0 : index
    %89 = vector.load %arg2[%c0_82, %c27, %c0_83] : memref<1x80x128xbf16, #tpu.memory_space<vmem>>, vector<1x48x128xbf16>
    %90 = vector.shape_cast %89 : vector<1x48x128xbf16> to vector<48x128xbf16>
    %c15 = arith.constant 15 : index
    %c0_84 = arith.constant 0 : index
    %c0_85 = arith.constant 0 : index
    %91 = vector.load %arg3[%c15, %c0_84, %c0_85] : memref<16x128x8xbf16, #tpu.memory_space<vmem>>, vector<1x128x8xbf16>
    %92 = vector.shape_cast %91 : vector<1x128x8xbf16> to vector<128x8xbf16>
    %cst_86 = arith.constant dense<0.000000e+00> : vector<48x8xf32>
    %93 = tpu.matmul %90, %92, %cst_86 {dimension_numbers = #tpu.dot_dimension_numbers<[1], [0], [0], [1], [0, 0, 1, 1], [], []>} : vector<48x128xbf16>, vector<128x8xbf16>, vector<48x8xf32> -> vector<48x8xf32>
    %94 = arith.addf %88, %93 : vector<48x8xf32>
    %c0_87 = arith.constant 0 : index
    %c0_88 = arith.constant 0 : index
    %95 = vector.load %arg4[%c0_87, %c0_88] : memref<1x8xf32, #tpu.memory_space<vmem>>, vector<1x8xf32>
    %96 = vector.broadcast %95 : vector<1x8xf32> to vector<48x8xf32>
    %97 = arith.addf %94, %96 : vector<48x8xf32>
    %c0_89 = arith.constant 0 : index
    %c0_90 = arith.constant 0 : index
    %c0_91 = arith.constant 0 : index
    %98 = vector.load %arg5[%c0_89, %c0_90, %c0_91] : memref<1x48x8xf32, #tpu.memory_space<vmem>>, vector<1x48x8xf32>
    %99 = vector.shape_cast %98 : vector<1x48x8xf32> to vector<48x8xf32>
    %100 = vector.shape_cast %97 : vector<48x8xf32> to vector<1x48x8xf32>
    tpu.vector_store %arg5[%c0_89, %c0_90, %c0_91], %100 {strides = array<i32>} : memref<1x48x8xf32, #tpu.memory_space<vmem>>, vector<1x48x8xf32>,
    return
  }
  func.func @transform_0(%arg0: i32, %arg1: i32) -> (i32, i32, i32) {
    %c0_i32 = arith.constant 0 : i32
    %c0_i32_0 = arith.constant 0 : i32
    %c0_i32_1 = arith.constant 0 : i32
    return %arg0, %c0_i32, %c0_i32_0 : i32, i32, i32
  }
  func.func @transform_1(%arg0: i32, %arg1: i32) -> (i32, i32, i32) {
    %c0_i32 = arith.constant 0 : i32
    %c0_i32_0 = arith.constant 0 : i32
    %c0_i32_1 = arith.constant 0 : i32
    return %c0_i32, %c0_i32_0, %arg1 : i32, i32, i32
  }
  func.func @transform_2(%arg0: i32, %arg1: i32) -> (i32, i32) {
    %c0_i32 = arith.constant 0 : i32
    %c0_i32_0 = arith.constant 0 : i32
    return %c0_i32, %arg1 : i32, i32
  }
  func.func @transform_3(%arg0: i32, %arg1: i32) -> (i32, i32, i32) {
    %c0_i32 = arith.constant 0 : i32
    %c0_i32_0 = arith.constant 0 : i32
    return %arg0, %c0_i32, %arg1 : i32, i32, i32
  }
}

</mosaic_0001>

<bundles_post_ra>
// kernel: nlayer_discriminator_forward.5
= control target key start
LH: loop header
LB: loop body
LE: loop exit
PB: predicated region body
PF: predicated region fallthrough
CT: control target
= control target key end

     0   :  { %s1356_s12 = smov 0   ;;  %s1358_s13 = smov 0   ;;  %s1557_s0 = inlined_call_operand.vmem [shape: bf16[2,110,4], index: 0, kind: input, shape index: {}]   ;;  %s1558_s1 = inlined_call_operand.vmem [shape: bf16[4,4,16], index: 1, kind: input, shape index: {}]   ;;  %s1559_s2 = inlined_call_operand.vmem [shape: f32[1,16], index: 2, kind: input, shape index: {}]   ;;  %s1560_s3 = inlined_call_operand.vmem [shape: bf16[2,96,16], index: 3, kind: output, shape index: {}]  }
   0x1   :  { %s1360_s14 = smov 0  }
   0x2 LB: > { %s25_s15 = sadd.s32 1, %s1330_s13  ;;  %p1111_p0 = scmp.ge.s32.totalorder %s1334_s14, 1  ;;  %s1334_s14 = sphi %s1360_s14, %s13_s14   ;;  %s1330_s13 = sphi %s1358_s13, %s1562_s13   ;;  %s1326_s12 = sphi %s1356_s12, %s1561_s12  }
   0x3   : > { %p27_p1 = scmp.ge.s32.totalorder %s25_s15, 2  ;;  %p168_p2 = scmp.lt.s32.totalorder %s1334_s14, 3 }
   0x5   : > { %s1564_s15 = smov (%p27_p1, %s25_s15), 0  ;;  %p169_p3 = pnand %p1111_p0, %p168_p2 }
   0x6   : > { %p202_p4 = scmp.lt.s32.totalorder (!%p169_p3), %s1326_s12, 1 }
   0x7   : > { %172 = sbr.rel (%p169_p3) target bundleno = 278 (0x116), region = 32 }
   0xc   : > { %v235_v0 = vld [vmem:[%s1558_s1] sm:$0x3]  ;;  %vm344_vm0 = vcmask 1041408   ;;  %v1114_v1 = vld [vmem:[%s1558_s1 + $0x2] sm:$0x3]  ;;  %s1566_s12 = smov (!%p202_p4, %s1326_s12), 1 }
   0xd   : > { %1268 = vmatprep.subr.msk.bf16.mxu1 %vm344_vm0, %v235_v0  ;;  %v442_v2 = vsel %vm344_vm0, %v235_v0, 0  ;;  %1267 = vmatprep.subr.msk.bf16.mxu0 %vm344_vm0, %v1114_v1  ;;  %v346_v3 = vsel %vm344_vm0, %v1114_v1, 0  ;;  %v1134_v4 = vld [vmem:[%s1558_s1 + $0x4] sm:$0x3]  ;;  %v1148_v5 = vld [vmem:[%s1558_s1 + $0x6] sm:$0x3] }
   0xe   : > { %1226 = vmatpush3.bf16.msra.mxu1 %v442_v2  ;;  %1212 = vmatpush3.bf16.msra.mxu0 %v346_v3  ;;  %s1271_s24 = smul.u32 56, %s1566_s12  ;;  %vm325_vm1 = vcmask 31744   ;;  %vm272_vm2 = vsmask.f32 7424  ;;  %v789_v8 = vsel %vm344_vm0, %v1148_v5, 0  ;;  %v606_v30 = vsel %vm344_vm0, %v1134_v4, 0 }
   0xf   : > { %1269 = vmatprep.subr.msk.bf16.mxu0 %vm344_vm0, %v1134_v4  ;;  %1270 = vmatprep.subr.msk.bf16.mxu1 %vm344_vm0, %v1148_v5  ;;  %vm707_vm3 = vsmask.f32 6400  ;;  %vm573_vm4 = vcmask 1046528   ;;  %s1272_s30 = smul.u32 48, %s1566_s12  ;;  %vm987_vm6 = vcmask 125952  }
  0x10   : > { %s1398_s27 = scalar_lea.vmem %s1557_s0, %s1271_s24 }
  0x11   : > { %v1297_v6 = vld [vmem:[%s1398_s27] sm:$0xff]   ;;  %v1298_v7 = vld [vmem:[%s1398_s27 + $0x8] sm:$0xff]   ;;  %v1299_v13 = vld [vmem:[%s1398_s27 + $0x10] sm:$0xff]   ;;  %s1503_s6 = scalar_lea.vmem %s1560_s3, %s1272_s30 }
  0x12   : > { %1227 = vmatprep.mubr.msk.bf16.mxu1 %vm325_vm1, %v1297_v6  ;;  %v274_v9 = vshrl.u32 %v1297_v6, 16  ;;  %v276_v10 = vshll.u32 %v1297_v6, 16  ;;  %v281_v11 = vshll.u32 %v1298_v7, 16  ;;  %v285_v12 = vshrl.u32 %v1298_v7, 16  ;;  %v1300_v14 = vld [vmem:[%s1398_s27 + $0x18] sm:$0xff]   ;;  %v1301_v16 = vld [vmem:[%s1398_s27 + $0x20] sm:$0xff]  }
  0x13   : > { %1228 = vmatmul.mubr.msk.bf16.vlgmr.msra.gmra.mxu1 %vm325_vm1, %v1298_v7  ;;  %v289_v18 = vshll.u32 %v1299_v13, 16  ;;  %v293_v19 = vshrl.u32 %v1299_v13, 16  ;;  %v297_v20 = vshll.u32 %v1300_v14, 16  ;;  %v301_v22 = vshrl.u32 %v1300_v14, 16  ;;  %v1302_v27 = vld [vmem:[%s1398_s27 + $0x28] sm:$0xff]   ;;  %v1306_v46 = vld [vmem:[%s1398_s27 + $0x14] sm:$0xff]  }
  0x14   : > { %v278_v15 = vrot.slane %v276_v10, 1  ;;  %1254 = vmatpush3.bf16.msra.mxu1 %v789_v8  ;;  %v283_v17 = vrot.slane %v281_v11, 1  ;;  %1231 = vmatprep.mubr.msk.bf16.mxu1 %vm325_vm1, %v1299_v13  ;;  %v305_v23 = vshll.u32 %v1301_v16, 16  ;;  %v309_v28 = vshrl.u32 %v1301_v16, 16  ;;  %v1416_v36 = vld [vmem:[%s1398_s27 + $0xc] sm:$0xff]   ;;  %v1428_v47 = vld [vmem:[%s1398_s27 + $0x1c] sm:$0xff]  }
  0x15   : > { %v291_v25 = vrot.slane %v289_v18, 1  ;;  %v299_v26 = vrot.slane %v297_v20, 1  ;;  %v313_v34 = vshll.u32 %v1302_v27, 16  ;;  %v1303_v35 = vld [vmem:[%s1398_s27 + $0x30] ss:$0 sps:$4 sm:$0x11]  }
  0x16   : > { %v279_v21 = vor.u32 %v278_v15, %v274_v9  ;;  %v287_v24 = vor.u32 %v285_v12, %v283_v17  ;;  %v307_v31 = vrot.slane %v305_v23, 1  ;;  %v1304_v38 = vld [vmem:[%s1398_s27 + $0x4] sm:$0xfe]   ;;  %v717_v42 = vshrl.u32 %v1416_v36, 16  ;;  %v1309_v1 = vld [vmem:[%s1398_s27 + $0x2c] sm:$0xff]  }
  0x17   : > { %v295_v33 = vor.u32 %v293_v19, %v291_v25  ;;  %v303_v37 = vor.u32 %v301_v22, %v299_v26  ;;  %v315_v41 = vrot.slane %v313_v34, 1  ;;  %v709_v43 = vshrl.u32 %v1304_v38, 16  ;;  %v1433_v58 = vld [vmem:[%s1398_s27 + $0x24] sm:$0xff]   ;;  %v1310_v20 = vld [vmem:[%s1398_s27 + $0x34] ss:$0 sps:$4 sm:$0x33]  }
  0x18   : > { %v284_v29 = vsel %vm272_vm2, %v279_v21, %v283_v17  ;;  %v292_v32 = vsel %vm272_vm2, %v287_v24, %v291_v25  ;;  %v311_v40 = vor.u32 %v309_v28, %v307_v31  ;;  %v712_v44 = vshll.u32 %v1304_v38, 16 }
  0x19   : > { %1213 = vmatprep.mubr.msk.bf16.mxu0 %vm325_vm1, %v284_v29  ;;  %v300_v39 = vsel %vm272_vm2, %v295_v33, %v299_v26  ;;  %v720_v45 = vshll.u32 %v1416_v36, 16  ;;  %v317_v48 = vshrl.u32 %v1302_v27, 16  ;;  %v719_v49 = vrot.slane %v717_v42, 1 }
  0x1a   : > { %1214 = vmatmul.mubr.msk.bf16.vlgmr.msra.gmra.mxu0 %vm325_vm1, %v292_v32  ;;  %v711_v50 = vrot.slane %v709_v43, 1  ;;  %v714_v51 = vrot.slane %v712_v44, 2  ;;  %v726_v53 = vshrl.u32 %v1306_v46, 16  ;;  %v308_v54 = vsel %vm272_vm2, %v303_v37, %v307_v31 }
  0x1b   : > { %1240 = vmatpush3.bf16.msra.mxu0 %v606_v30  ;;  %1232 = vmatmul.mubr.msk.bf16.gmra.mxu1 %vm325_vm1, %v1300_v14  ;;  %v722_v52 = vrot.slane %v720_v45, 2  ;;  %v316_v55 = vsel %vm272_vm2, %v311_v40, %v315_v41  ;;  %v321_v56 = vshll.u32 %v1303_v35, 16  ;;  %v729_v57 = vshll.u32 %v1306_v46, 16  ;;  %v1311_v40 = vld [vmem:[%s1398_s27 + $0x34] ss:$0 sps:$4 sm:$0x11]  }
  0x1c   : > { %1217 = vmatprep.mubr.msk.bf16.mxu0 %vm325_vm1, %v300_v39  ;;  %1235 = vmatprep.mubr.msk.bf16.mxu1 %vm325_vm1, %v1301_v16  ;;  %v715_v59 = vor.u32 %v714_v51, %v711_v50  ;;  %v728_v61 = vrot.slane %v726_v53, 1  ;;  %v735_v62 = vshrl.u32 %v1428_v47, 16  ;;  %v738_v0 = vshll.u32 %v1428_v47, 16 }
  0x1d   : > { %v723_v60 = vor.u32 %v722_v52, %v719_v49  ;;  %v731_v63 = vrot.slane %v729_v57, 2  ;;  %v319_v4 = vor.u32 %v317_v48, %v315_v41  ;;  %v323_v5 = vrot.slane %v321_v56, 1 }
  0x1e   : > { %v737_v3 = vrot.slane %v735_v62, 1  ;;  %v574_v6 = vrot.slane %v1304_v38, 1  ;;  %v740_v7 = vrot.slane %v738_v0, 2  ;;  %v575_v9 = vrot.slane %v1416_v36, 1 }
  0x1f   : > { %v724_v2 = vsel %vm707_vm3, %v715_v59, %v723_v60  ;;  %v732_v8 = vor.u32 %v731_v63, %v728_v61  ;;  %v744_v10 = vshrl.u32 %v1433_v58, 16  ;;  %v747_v11 = vshll.u32 %v1433_v58, 16 }
  0x20   : > { %v741_v12 = vor.u32 %v740_v7, %v737_v3  ;;  %v753_v13 = vshrl.u32 %v1309_v1, 16  ;;  %v756_v14 = vshll.u32 %v1309_v1, 16  ;;  %v324_v15 = vsel %vm272_vm2, %v319_v4, %v323_v5 }
  0x21   : > { %v733_v16 = vsel %vm707_vm3, %v723_v60, %v732_v8  ;;  %v576_v17 = vsel %vm573_vm4, %v574_v6, %v575_v9  ;;  %v746_v18 = vrot.slane %v744_v10, 1  ;;  %v749_v19 = vrot.slane %v747_v11, 2 }
  0x22   : > { %1218 = vmatmul.mubr.msk.bf16.gmra.mxu0 %vm325_vm1, %v308_v54  ;;  %v742_v21 = vsel %vm707_vm3, %v732_v8, %v741_v12  ;;  %v755_v22 = vrot.slane %v753_v13, 1  ;;  %v758_v23 = vrot.slane %v756_v14, 2  ;;  %v577_v24 = vrot.slane %v1306_v46, 1  ;;  %v1495_v14 = vld [vmem:[%s1559_s2] ss:$0 sm:$0xff] }
  0x23   : > { %1236 = vmatmul.mubr.msk.bf16.gmra.mxu1 %vm325_vm1, %v1302_v27  ;;  %1221 = vmatprep.mubr.msk.bf16.mxu0 %vm325_vm1, %v316_v55  ;;  %v750_v25 = vor.u32 %v749_v19, %v746_v18  ;;  %v579_v26 = vrot.slane %v1428_v47, 1  ;;  %v762_v27 = vshrl.u32 %v1310_v20, 16  ;;  %v765_v28 = vshll.u32 %v1310_v20, 16 }
  0x24   : > { %1255 = vmatprep.mubr.msk.bf16.mxu1 %vm325_vm1, %v724_v2  ;;  %v759_v29 = vor.u32 %v758_v23, %v755_v22  ;;  %v578_v30 = vsel %vm573_vm4, %v575_v9, %v577_v24  ;;  %v581_v36 = vrot.slane %v1433_v58, 1  ;;  %v583_v38 = vrot.slane %v1309_v1, 1 }
  0x25   : > { %v751_v31 = vsel %vm707_vm3, %v741_v12, %v750_v25  ;;  %v580_v32 = vsel %vm573_vm4, %v577_v24, %v579_v26  ;;  %v764_v33 = vrot.slane %v762_v27, 1  ;;  %v767_v34 = vrot.slane %v765_v28, 2 }
  0x26   : > { %v760_v35 = vsel %vm707_vm3, %v750_v25, %v759_v29  ;;  %v582_v39 = vsel %vm573_vm4, %v579_v26, %v581_v36  ;;  %v584_v42 = vsel %vm573_vm4, %v581_v36, %v583_v38  ;;  %v585_v43 = vrot.slane %v1311_v40, 1 }
  0x27   : > { %v768_v37 = vor.u32 %v767_v34, %v764_v33 }
  0x28   : > { %v586_v44 = vsel %vm573_vm4, %v583_v38, %v585_v43 }
  0x29   : > { %v769_v41 = vsel %vm707_vm3, %v759_v29, %v768_v37 }
  0x2a   : > { %1222 = vmatmul.mubr.msk.bf16.gmra.mxu0 %vm325_vm1, %v324_v15 }
  0x2b   : > { %1256 = vmatmul.mubr.msk.bf16.vlgmr.msra.gmra.mxu1 %vm325_vm1, %v733_v16  ;;  %1241 = vmatprep.mubr.msk.bf16.mxu0 %vm325_vm1, %v576_v17 }
  0x2c   : > { %1259 = vmatprep.mubr.msk.bf16.mxu1 %vm325_vm1, %v742_v21 }
  0x32   : > { %1242 = vmatmul.mubr.msk.bf16.vlgmr.msra.gmra.mxu0 %vm325_vm1, %v578_v30 }
  0x33   : > { %1260 = vmatmul.mubr.msk.bf16.gmra.mxu1 %vm325_vm1, %v751_v31  ;;  %1245 = vmatprep.mubr.msk.bf16.mxu0 %vm325_vm1, %v580_v32 }
  0x34   : > { %1263 = vmatprep.mubr.msk.bf16.mxu1 %vm325_vm1, %v760_v35 }
  0x3a   : > { %1246 = vmatmul.mubr.msk.bf16.gmra.mxu0 %vm325_vm1, %v582_v39 }
  0x3b   : > { %1264 = vmatmul.mubr.msk.bf16.gmra.mxu1 %vm325_vm1, %v769_v41  ;;  %1249 = vmatprep.mubr.msk.bf16.mxu0 %vm325_vm1, %v584_v42 }
  0x42   : > { %1250 = vmatmul.mubr.msk.bf16.gmra.mxu0 %vm325_vm1, %v586_v44 }
  0xd3   : > { %v1229_v45 = vpop.f32.mrf.mxu1 }
  0xd5   : > { %v478_v46 = vpop.f32.mrf.mxu1 }
  0xd7   : > { %v1230_v47 = vpop.f32.mrf.mxu1 }
  0xd9   : > { %v481_v48 = vpop.f32.mrf.mxu1 }
  0xda   : > { %v1215_v49 = vpop.f32.mrf.mxu0 }
  0xdb   : > { %v1233_v50 = vpop.f32.mrf.mxu1  ;;  %v487_v8 = vadd.f32 %v1229_v45, %v1215_v49 }
  0xdc   : > { %v382_v51 = vpop.f32.mrf.mxu0 }
  0xdd   : > { %v494_v52 = vpop.f32.mrf.mxu1  ;;  %v479_v11 = vadd.f32 %v478_v46, %v382_v51 }
  0xde   : > { %v1216_v53 = vpop.f32.mrf.mxu0 }
  0xdf   : > { %v1234_v54 = vpop.f32.mrf.mxu1  ;;  %v490_v16 = vadd.f32 %v1230_v47, %v1216_v53 }
  0xe0   : > { %v385_v55 = vpop.f32.mrf.mxu0 }
  0xe1   : > { %v1474_v56 = vpop.f32.mrf.mxu1  ;;  %v482_v25 = vadd.f32 %v481_v48, %v385_v55 }
  0xe2   : > { %v1219_v57 = vpop.f32.mrf.mxu0 }
  0xe3   : > { %v1476_v58 = vpop.f32.mrf.mxu1  ;;  %v503_v30 = vadd.f32 %v1233_v50, %v1219_v57 }
  0xe4   : > { %v398_v59 = vpop.f32.mrf.mxu0 }
  0xe5   : > { %v1478_v60 = vpop.f32.mrf.mxu1  ;;  %v495_v31 = vadd.f32 %v494_v52, %v398_v59 }
  0xe6   : > { %v1220_v61 = vpop.f32.mrf.mxu0 }
  0xe7   : > { %v1480_v62 = vpop.f32.mrf.mxu1  ;;  %v506_v38 = vadd.f32 %v1234_v54, %v1220_v61 }
  0xe8   : > { %v401_v63 = vpop.f32.mrf.mxu0 }
  0xe9   : > { %v1482_v0 = vpop.f32.mrf.mxu1  ;;  %v498_v51 = vadd.f32 %v1474_v56, %v401_v63 }
  0xea   : > { %v1484_v1 = vpop.f32.mrf.mxu0 }
  0xeb   : > { %v1257_v2 = vpop.f32.mrf.mxu1 }
  0xec   : > { %v1486_v3 = vpop.f32.mrf.mxu0 }
  0xed   : > { %v825_v4 = vpop.f32.mrf.mxu1  ;;  %v511_v56 = vadd.f32 %v1478_v60, %v1486_v3 }
  0xee   : > { %v1488_v5 = vpop.f32.mrf.mxu0 }
  0xef   : > { %v1258_v6 = vpop.f32.mrf.mxu1 }
  0xf0   : > { %v1490_v7 = vpop.f32.mrf.mxu0 }
  0xf1   : > { %v828_v9 = vpop.f32.mrf.mxu1 }
  0xf2   : > { %v1243_v10 = vpop.f32.mrf.mxu0 }
  0xf3   : > { %v691_v12 = vadd.f32 %v1243_v10, %v487_v8  ;;  %v1261_v13 = vpop.f32.mrf.mxu1 }
  0xf4   : > { %v642_v15 = vpop.f32.mrf.mxu0 }
  0xf5   : > { %v874_v17 = vadd.f32 %v1257_v2, %v691_v12  ;;  %v689_v18 = vadd.f32 %v642_v15, %v479_v11  ;;  %v841_v19 = vpop.f32.mrf.mxu1  ;;  %v519_v2 = vadd.f32 %v1476_v58, %v1484_v1  ;;  %v522_v1 = vadd.f32 %v1480_v62, %v1488_v5 }
  0xf6   : > { %v1244_v20 = vpop.f32.mrf.mxu0  ;;  %v514_v5 = vadd.f32 %v1482_v0, %v1490_v7 }
  0xf7   : > { %v893_v21 = vadd.f32 %v1495_v14, %v874_v17  ;;  %v872_v22 = vadd.f32 %v825_v4, %v689_v18  ;;  %v692_v23 = vadd.f32 %v1244_v20, %v490_v16  ;;  %v1262_v24 = vpop.f32.mrf.mxu1 }
  0xf8   : > { %v645_v26 = vpop.f32.mrf.mxu0 }
  0xf9   : > { %vm905_vm5 = vcmp.ge.f32.partialorder %v893_v21, 0.0  ;;  %v917_v27 = vmul.f32 0.2, %v893_v21  ;;  %v891_v28 = vadd.f32 %v1495_v14, %v872_v22  ;;  %v875_v29 = vadd.f32 %v1258_v6, %v692_v23  ;;  %v844_v34 = vpop.f32.mrf.mxu1 }
  0xfa   : > { %v690_v32 = vadd.f32 %v645_v26, %v482_v25  ;;  %v1247_v33 = vpop.f32.mrf.mxu0 }
  0xfb   : > { %v929_v35 = vsel %vm905_vm5, %v893_v21, %v917_v27  ;;  %vm903_vm7 = vcmp.ge.f32.partialorder %v891_v28, 0.0  ;;  %v915_v36 = vmul.f32 0.2, %v891_v28  ;;  %v894_v37 = vadd.f32 %v1495_v14, %v875_v29  ;;  %v1265_v50 = vpop.f32.mrf.mxu1 }
  0xfc   : > { %v1173_v39 = vpack.c.bf16 %v929_v35, %v929_v35  ;;  %v873_v40 = vadd.f32 %v828_v9, %v690_v32  ;;  %v695_v41 = vadd.f32 %v1247_v33, %v503_v30  ;;  %v658_v42 = vpop.f32.mrf.mxu0 }
  0xfd   : > { %v927_v43 = vsel %vm903_vm7, %v891_v28, %v915_v36  ;;  %vm906_vm8 = vcmp.ge.f32.partialorder %v894_v37, 0.0  ;;  %v918_v44 = vmul.f32 0.2, %v894_v37  ;;  %v693_v45 = vadd.f32 %v658_v42, %v495_v31  ;;  %v857_v10 = vpop.f32.mrf.mxu1 }
  0xfe   : > { %990 = vst.msk [vmem:[%s1503_s6 + $0x8] sm:$0xf] %vm987_vm6, %v1173_v39  ;;  %v1171_v46 = vpack.c.bf16 %v927_v43, %v927_v43  ;;  %v892_v47 = vadd.f32 %v1495_v14, %v873_v40  ;;  %v878_v48 = vadd.f32 %v1261_v13, %v695_v41  ;;  %v1248_v49 = vpop.f32.mrf.mxu0 }
  0xff   : > { %v930_v52 = vsel %vm906_vm8, %v894_v37, %v918_v44  ;;  %v876_v53 = vadd.f32 %v841_v19, %v693_v45  ;;  %v696_v54 = vadd.f32 %v1248_v49, %v506_v38  ;;  %v1266_v23 = vpop.f32.mrf.mxu1 }
 0x100   : > { %988 = vst.msk [vmem:[%s1503_s6] sm:$0xf] %vm987_vm6, %v1171_v46  ;;  %v1174_v55 = vpack.c.bf16 %v930_v52, %v930_v52  ;;  %vm904_vm9 = vcmp.ge.f32.partialorder %v892_v47, 0.0  ;;  %v916_v57 = vmul.f32 0.2, %v892_v47  ;;  %v897_v59 = vadd.f32 %v1495_v14, %v878_v48  ;;  %v661_v61 = vpop.f32.mrf.mxu0 }
 0x101   : > { %v895_v4 = vadd.f32 %v1495_v14, %v876_v53  ;;  %v879_v6 = vadd.f32 %v1262_v24, %v696_v54  ;;  %v694_v8 = vadd.f32 %v661_v61, %v498_v51  ;;  %v860_v7 = vpop.f32.mrf.mxu1 }
 0x102   : > { %991 = vst.msk [vmem:[%s1503_s6 + $0xc] sm:$0xf] %vm987_vm6, %v1174_v55  ;;  %v928_v63 = vsel %vm904_vm9, %v892_v47, %v916_v57  ;;  %vm909_vm10 = vcmp.ge.f32.partialorder %v897_v59, 0.0  ;;  %v921_v9 = vmul.f32 0.2, %v897_v59  ;;  %v1251_v11 = vpop.f32.mrf.mxu0 }
 0x103   : > { %v1172_v12 = vpack.c.bf16 %v928_v63, %v928_v63  ;;  %vm907_vm11 = vcmp.ge.f32.partialorder %v895_v4, 0.0  ;;  %v919_v13 = vmul.f32 0.2, %v895_v4  ;;  %v898_v58 = vadd.f32 %v1495_v14, %v879_v6 }
 0x104   : > { %v933_v15 = vsel %vm909_vm10, %v897_v59, %v921_v9  ;;  %v877_v16 = vadd.f32 %v844_v34, %v694_v8  ;;  %v699_v60 = vadd.f32 %v1251_v11, %v519_v2  ;;  %v674_v3 = vpop.f32.mrf.mxu0 }
 0x105   : > { %989 = vst.msk [vmem:[%s1503_s6 + $0x4] sm:$0xf] %vm987_vm6, %v1172_v12  ;;  %v1177_v17 = vpack.c.bf16 %v933_v15, %v933_v15  ;;  %v931_v18 = vsel %vm907_vm11, %v895_v4, %v919_v13  ;;  %vm910_vm12 = vcmp.ge.f32.partialorder %v898_v58, 0.0  ;;  %v922_v19 = vmul.f32 0.2, %v898_v58 }
 0x106   : > { %v1175_v20 = vpack.c.bf16 %v931_v18, %v931_v18  ;;  %v896_v21 = vadd.f32 %v1495_v14, %v877_v16  ;;  %v882_v22 = vadd.f32 %v1265_v50, %v699_v60  ;;  %v697_v24 = vadd.f32 %v674_v3, %v511_v56  ;;  %v1252_v62 = vpop.f32.mrf.mxu0 }
 0x107   : > { %994 = vst.msk [vmem:[%s1503_s6 + $0x18] sm:$0xf] %vm987_vm6, %v1177_v17  ;;  %v934_v25 = vsel %vm910_vm12, %v898_v58, %v922_v19  ;;  %v700_v26 = vadd.f32 %v1252_v62, %v522_v1 }
 0x108   : > { %992 = vst.msk [vmem:[%s1503_s6 + $0x10] sm:$0xf] %vm987_vm6, %v1175_v20  ;;  %v1178_v27 = vpack.c.bf16 %v934_v25, %v934_v25  ;;  %vm908_vm13 = vcmp.ge.f32.partialorder %v896_v21, 0.0  ;;  %v920_v28 = vmul.f32 0.2, %v896_v21  ;;  %v901_v29 = vadd.f32 %v1495_v14, %v882_v22  ;;  %v677_v30 = vpop.f32.mrf.mxu0 }
 0x109   : > { %v880_v31 = vadd.f32 %v857_v10, %v697_v24  ;;  %v883_v32 = vadd.f32 %v1266_v23, %v700_v26  ;;  %v698_v33 = vadd.f32 %v677_v30, %v514_v5 }
 0x10a   : > { %995 = vst.msk [vmem:[%s1503_s6 + $0x1c] sm:$0xf] %vm987_vm6, %v1178_v27  ;;  %v932_v34 = vsel %vm908_vm13, %v896_v21, %v920_v28  ;;  %vm913_vm14 = vcmp.ge.f32.partialorder %v901_v29, 0.0  ;;  %v925_v0 = vmul.f32 0.2, %v901_v29 }
 0x10b   : > { %v1176_v35 = vpack.c.bf16 %v932_v34, %v932_v34  ;;  %v899_v36 = vadd.f32 %v1495_v14, %v880_v31  ;;  %v902_v37 = vadd.f32 %v1495_v14, %v883_v32  ;;  %v881_v38 = vadd.f32 %v860_v7, %v698_v33 }
 0x10c   : > { %v937_v39 = vsel %vm913_vm14, %v901_v29, %v925_v0 }
 0x10d   : > { %993 = vst.msk [vmem:[%s1503_s6 + $0x14] sm:$0xf] %vm987_vm6, %v1176_v35  ;;  %v1181_v40 = vpack.c.bf16 %v937_v39, %v937_v39  ;;  %vm911_vm15 = vcmp.ge.f32.partialorder %v899_v36, 0.0  ;;  %v923_v41 = vmul.f32 0.2, %v899_v36  ;;  %vm914_vm0 = vcmp.ge.f32.partialorder %v902_v37, 0.0 }
 0x10e   : > { %v926_v42 = vmul.f32 0.2, %v902_v37  ;;  %v900_v43 = vadd.f32 %v1495_v14, %v881_v38 }
 0x10f   : > { %998 = vst.msk [vmem:[%s1503_s6 + $0x28] sm:$0xf] %vm987_vm6, %v1181_v40  ;;  %v935_v44 = vsel %vm911_vm15, %v899_v36, %v923_v41 }
 0x110   : > { %v1179_v45 = vpack.c.bf16 %v935_v44, %v935_v44  ;;  %v938_v46 = vsel %vm914_vm0, %v902_v37, %v926_v42  ;;  %vm912_vm1 = vcmp.ge.f32.partialorder %v900_v43, 0.0  ;;  %v924_v47 = vmul.f32 0.2, %v900_v43 }
 0x111   : > { %v1182_v48 = vpack.c.bf16 %v938_v46, %v938_v46 }
 0x112   : > { %996 = vst.msk [vmem:[%s1503_s6 + $0x20] sm:$0xf] %vm987_vm6, %v1179_v45  ;;  %v936_v49 = vsel %vm912_vm1, %v900_v43, %v924_v47 }
 0x113   : > { %999 = vst.msk [vmem:[%s1503_s6 + $0x2c] sm:$0xf] %vm987_vm6, %v1182_v48  ;;  %v1180_v50 = vpack.c.bf16 %v936_v49, %v936_v49 }
 0x115   : > { %997 = vst.msk [vmem:[%s1503_s6 + $0x24] sm:$0xf] %vm987_vm6, %v1180_v50 }
 0x116 PF: > { %s13_s14 = sadd.s32 1, %s1334_s14   ;;  %s1561_s12 = smov %s1330_s13 }
 0x117   : > { %p10_p5 = scmp.ge.s32.totalorder %s13_s14, 4   ;;  %s1562_s13 = smov %s1564_s15 }
 0x119   :  { %12 = sbr.rel (!%p10_p5) target bundleno = 2 (0x2), region = 71 }

// kernel: nlayer_discriminator_forward.6
= control target key start
LH: loop header
LB: loop body
LE: loop exit
PB: predicated region body
PF: predicated region fallthrough
CT: control target
= control target key end

     0   :  { %s1333_s9 = smov 0   ;;  %s1335_s10 = smov 0   ;;  %s1647_s0 = inlined_call_operand.vmem [shape: bf16[2,56,64], index: 0, kind: input, shape index: {}]   ;;  %s1648_s1 = inlined_call_operand.vmem [shape: bf16[4,64,32], index: 1, kind: input, shape index: {}]   ;;  %s1649_s2 = inlined_call_operand.vmem [shape: bf16[2,48,32], index: 2, kind: output, shape index: {}]  }
   0x1   :  { %s1337_s11 = smov 0  }
   0x2 LB: > { %s24_s12 = sadd.s32 1, %s1309_s10  ;;  %p1039_p0 = scmp.ge.s32.totalorder %s1313_s11, 1  ;;  %s1313_s11 = sphi %s1337_s11, %s12_s11   ;;  %s1309_s10 = sphi %s1335_s10, %s1661_s10   ;;  %s1305_s9 = sphi %s1333_s9, %s1660_s9  }
   0x3   : > { %p26_p1 = scmp.ge.s32.totalorder %s24_s12, 2  ;;  %p135_p2 = scmp.lt.s32.totalorder %s1313_s11, 3 }
   0x5   : > { %s1663_s12 = smov (%p26_p1, %s24_s12), 0  ;;  %p136_p3 = pnand %p1039_p0, %p135_p2 }
   0x6   : > { %p164_p4 = scmp.lt.s32.totalorder (!%p136_p3), %s1305_s9, 1 }
   0x7   : > { %139 = sbr.rel (%p136_p3) target bundleno = 348 (0x15c), region = 28 }
   0xc   : > { %v1264_v0 = vld [vmem:[%s1648_s1 + $0x38] sm:$0xff]   ;;  %v1315_v1 = vmov 0.0   ;;  %v1266_v3 = vld [vmem:[%s1648_s1 + $0x30] sm:$0xff]   ;;  %vm1316_vm0 = vmmov 0   ;;  %s1665_s9 = smov (!%p164_p4, %s1305_s9), 1  ;;  %v1268_v5 = vld [vmem:[%s1648_s1 + $0x28] sm:$0xff]  }
   0xd   : > { %1145 = vmatprep.subr.bf16.mxu0 %v1315_v1  ;;  %1165 = vmatprep.subr.bf16.mxu1 %v1315_v1  ;;  %v1265_v2 = vld [vmem:[%s1648_s1 + $0x18] sm:$0xff]   ;;  %v1267_v4 = vld [vmem:[%s1648_s1 + $0x10] sm:$0xff]   ;;  %s1225_s23 = smul.u32 28, %s1665_s9  ;;  %v1269_v6 = vld [vmem:[%s1648_s1 + $0x8] sm:$0xff]   ;;  %vm224_vm1 = vsmask.f32 7424 }
   0xe   : > { %1146 = vmatpush3.bf16.msra.mxu0 %v1264_v0  ;;  %1153 = vmatprep.mubr.msk.bf16.mxu0 %vm1316_vm0, %v1315_v1  ;;  %v1270_v10 = vld [vmem:[%s1648_s1 + $0x20] sm:$0xff]   ;;  %vm277_vm2 = vcmask 523264   ;;  %v1275_v23 = vld [vmem:[%s1648_s1 + $0x58] sm:$0xff]   ;;  %v1279_v29 = vld [vmem:[%s1648_s1 + $0x70] sm:$0xff]   ;;  %vm448_vm3 = vsmask.f32 4352 }
   0xf   : > { %1166 = vmatpush3.bf16.msra.mxu1 %v1265_v2  ;;  %1147 = vmatprep.subr.bf16.mxu0 %v1315_v1  ;;  %s1385_s28 = scalar_lea.vmem %s1647_s0, %s1225_s23  ;;  %v1271_v13 = vld [vmem:[%s1648_s1] sm:$0xff]   ;;  %v1276_v24 = vld [vmem:[%s1648_s1 + $0x78] sm:$0xff]   ;;  %v1277_v30 = vld [vmem:[%s1648_s1 + $0x50] sm:$0xff]   ;;  %s1226_s25 = smul.u32 24, %s1665_s9 }
  0x10   : > { %1167 = vmatprep.subr.bf16.mxu1 %v1315_v1  ;;  %1173 = vmatprep.mubr.msk.bf16.mxu1 %vm1316_vm0, %v1315_v1  ;;  %v182_v7 = vld [vmem:[%s1385_s28] sm:$0xf]  ;;  %v1389_v8 = vld [vmem:[%s1385_s28 + $0x4] sm:$0xf]  ;;  %v1392_v9 = vld [vmem:[%s1385_s28 + $0x8] sm:$0xf] }
  0x11   : > { %v1398_v11 = vld [vmem:[%s1385_s28 + $0xc] sm:$0xf]  ;;  %v1050_v12 = vcombine.low %v182_v7, %v1389_v8  ;;  %v1409_v18 = vld [vmem:[%s1385_s28 + $0x10] sm:$0xf]  ;;  %v1412_v19 = vld [vmem:[%s1385_s28 + $0x14] sm:$0xf]  ;;  %v1093_v55 = vcombine.low %v1389_v8, %v1392_v9  ;;  %v678_v7 = vlaneseq }
  0x12   : > { %1148 = vmatpush3.bf16.msra.mxu0 %v1266_v3  ;;  %v1051_v14 = vcombine.low %v1392_v9, %v1398_v11  ;;  %v1416_v21 = vcombine.low %v1409_v18, %v1412_v19  ;;  %v1282_v33 = vld [vmem:[%s1385_s28 + $0x18] ss:$0 sps:$4 sm:$0x11]   ;;  %v431_v34 = vld [vmem:[%s1385_s28] sm:$0x8]  ;;  %v1280_v36 = vld [vmem:[%s1648_s1 + $0x48] sm:$0xff]   ;;  %v1094_v63 = vcombine.low %v1398_v11, %v1409_v18 }
  0x13   : > { %1168 = vmatpush3.bf16.msra.mxu1 %v1267_v4  ;;  %1149 = vmatprep.subr.bf16.mxu0 %v1315_v1  ;;  %v226_v15 = vshrl.u32 %v1050_v12, 16  ;;  %v228_v16 = vshll.u32 %v1050_v12, 16  ;;  %v249_v38 = vshll.u32 %v1282_v33, 16  ;;  %v1076_v39 = vcombine.low %v431_v34, %v1389_v8  ;;  %v1281_v40 = vld [vmem:[%s1648_s1 + $0x68] sm:$0xff]   ;;  %v1283_v43 = vld [vmem:[%s1648_s1 + $0x40] sm:$0xff]  }
  0x14   : > { %1169 = vmatprep.subr.bf16.mxu1 %v1315_v1  ;;  %v233_v17 = vshll.u32 %v1051_v14, 16  ;;  %v237_v26 = vshrl.u32 %v1051_v14, 16  ;;  %v241_v27 = vshll.u32 %v1416_v21, 16  ;;  %v245_v37 = vshrl.u32 %v1416_v21, 16  ;;  %v1284_v46 = vld [vmem:[%s1648_s1 + $0x60] sm:$0xff]  }
  0x15   : > { %v230_v20 = vrot.slane %v228_v16, 1  ;;  %v251_v42 = vrot.slane %v249_v38, 1  ;;  %v450_v44 = vshrl.u32 %v1076_v39, 16  ;;  %v453_v45 = vshll.u32 %v1076_v39, 16  ;;  %v432_v54 = vld [vmem:[%s1385_s28 + $0x18] sm:$0xf]  ;;  %s180_s28 = scalar_lea.vmem %s1649_s2, %s1226_s25 }
  0x16   : > { %1150 = vmatpush3.bf16.msra.mxu0 %v1268_v5  ;;  %v235_v22 = vrot.slane %v233_v17, 1  ;;  %v243_v32 = vrot.slane %v241_v27, 1  ;;  %v458_v47 = vrot.slane %v233_v17, 4  ;;  %v457_v48 = vrot.slane %v237_v26, 3 }
  0x17   : > { %1170 = vmatpush3.bf16.msra.mxu1 %v1269_v6  ;;  %1151 = vmatprep.subr.bf16.mxu0 %v1315_v1  ;;  %v231_v25 = vor.u32 %v230_v20, %v226_v15  ;;  %v452_v50 = vrot.slane %v450_v44, 3  ;;  %v455_v51 = vrot.slane %v453_v45, 4  ;;  %v461_v57 = vrot.slane %v245_v37, 3 }
  0x18   : > { %1171 = vmatprep.subr.bf16.mxu1 %v1315_v1  ;;  %v239_v31 = vor.u32 %v237_v26, %v235_v22  ;;  %v247_v41 = vor.u32 %v245_v37, %v243_v32  ;;  %v459_v53 = vor.u32 %v458_v47, %v457_v48  ;;  %v462_v58 = vrot.slane %v241_v27, 4 }
  0x19   : > { %v236_v28 = vsel %vm224_vm1, %v231_v25, %v235_v22  ;;  %v456_v52 = vor.u32 %v455_v51, %v452_v50  ;;  %v1077_v59 = vcombine.low %v432_v54, %v432_v54  ;;  %v1095_v5 = vcombine.low %v1412_v19, %v432_v54 }
  0x1a   : > { %1152 = vmatpush3.bf16.msra.mxu0 %v1270_v10  ;;  %v244_v35 = vsel %vm224_vm1, %v239_v31, %v243_v32  ;;  %v252_v49 = vsel %vm224_vm1, %v247_v41, %v251_v42  ;;  %v463_v60 = vor.u32 %v462_v58, %v461_v57  ;;  %v679_v8 = vshrl.u32 %v678_v7, 7 }
  0x1b   : > { %1172 = vmatpush3.bf16.msra.mxu1 %v1271_v13  ;;  %1185 = vmatprep.subr.bf16.mxu0 %v1315_v1  ;;  %v460_v56 = vsel %vm448_vm3, %v456_v52, %v459_v53  ;;  %v466_v61 = vshrl.u32 %v1077_v59, 16  ;;  %v469_v62 = vshll.u32 %v1077_v59, 16 }
  0x1c   : > { %1205 = vmatprep.subr.bf16.mxu1 %v1315_v1  ;;  %v464_v0 = vsel %vm448_vm3, %v459_v53, %v463_v60  ;;  %v680_v9 = vadd.s32 8, %v679_v8  ;;  %v1500_v10 = vadd.s32 16, %v679_v8  ;;  %v1505_v13 = vadd.s32 24, %v679_v8 }
  0x1d   : > { %1154 = vmatmul.mubr.msk.bf16.vlgmr.msra.gmra.mxu0 %vm277_vm2, %v236_v28  ;;  %v468_v2 = vrot.slane %v466_v61, 3  ;;  %v471_v3 = vrot.slane %v469_v62, 4  ;;  %v1510_v16 = vadd.s32 32, %v679_v8  ;;  %v1317_v28 = vmov 0  }
  0x1e   : > { %1174 = vmatmul.mubr.msk.bf16.vlgmr.msra.gmra.mxu1 %vm277_vm2, %v1050_v12  ;;  %1186 = vmatpush3.bf16.msra.mxu0 %v1275_v23  ;;  %v1502_v11 = vmul.u32.u64.low 2454267026, %v680_v9  ;;  %v1503_v12 = vmul.u32.u64.high 2454267026, %v680_v9, %v1502_v11  ;;  %v1513_v17 = vmul.u32.u64.low 2454267026, %v1500_v10  ;;  %v1514_v18 = vmul.u32.u64.high 2454267026, %v1500_v10, %v1513_v17 }
  0x1f   : > { %1206 = vmatpush3.bf16.msra.mxu1 %v1276_v24  ;;  %1157 = vmatprep.mubr.msk.bf16.mxu0 %vm1316_vm0, %v1315_v1  ;;  %v472_v4 = vor.u32 %v471_v3, %v468_v2  ;;  %v1525_v24 = vmul.u32.u64.low 2454267026, %v1510_v16  ;;  %v1526_v25 = vmul.u32.u64.high 2454267026, %v1510_v16, %v1525_v24 }
  0x20   : > { %1187 = vmatprep.subr.bf16.mxu0 %v1315_v1  ;;  %1177 = vmatprep.mubr.msk.bf16.mxu1 %vm1316_vm0, %v1315_v1  ;;  %vm711_vm4 = vc.u32 %v1502_v11, 2454267026  ;;  %vm725_vm6 = vc.u32 %v1513_v17, 2454267026 }
  0x21   : > { %1207 = vmatprep.subr.bf16.mxu1 %v1315_v1  ;;  %v473_v6 = vsel %vm448_vm3, %v463_v60, %v472_v4  ;;  %v726_v33 = vsel %vm725_vm6, 1, %v1317_v28  ;;  %vm753_vm8 = vc.u32 %v1525_v24, 2454267026 }
  0x22   : > { %1188 = vmatpush3.bf16.msra.mxu0 %v1277_v30  ;;  %v754_v41 = vsel %vm753_vm8, 1, %v1317_v28 }
  0x23   : > { %1208 = vmatpush3.bf16.msra.mxu1 %v1279_v29  ;;  %1189 = vmatprep.subr.bf16.mxu0 %v1315_v1  ;;  %v712_v29 = vsel %vm711_vm4, 1, %v1317_v28  ;;  %v755_v48 = vadd.s32 %v1526_v25, %v754_v41 }
  0x24   : > { %1209 = vmatprep.subr.bf16.mxu1 %v1315_v1 }
  0x25   : > { %1158 = vmatmul.mubr.msk.bf16.gmra.mxu0 %vm277_vm2, %v244_v35  ;;  %v713_v35 = vadd.s32 %v1503_v12, %v712_v29  ;;  %v756_v57 = vshrl.u32 %v755_v48, 2 }
  0x26   : > { %1178 = vmatmul.mubr.msk.bf16.gmra.mxu1 %vm277_vm2, %v1051_v14  ;;  %1190 = vmatpush3.bf16.msra.mxu0 %v1280_v36  ;;  %v1507_v14 = vmul.u32.u64.low 2454267026, %v679_v8  ;;  %v1508_v15 = vmul.u32.u64.high 2454267026, %v679_v8, %v1507_v14 }
  0x27   : > { %1181 = vmatprep.mubr.msk.bf16.mxu1 %vm1316_vm0, %v1315_v1  ;;  %1161 = vmatprep.mubr.msk.bf16.mxu0 %vm1316_vm0, %v1315_v1  ;;  %v714_v44 = vshrl.u32 %v713_v35, 2  ;;  %v757_v3 = vmul.u32 7, %v756_v57 }
  0x28   : > { %1210 = vmatpush3.bf16.msra.mxu1 %v1281_v40  ;;  %1191 = vmatprep.subr.bf16.mxu0 %v1315_v1  ;;  %vm697_vm5 = vc.u32 %v1507_v14, 2454267026  ;;  %v727_v40 = vadd.s32 %v1514_v18, %v726_v33 }
  0x29   : > { %1211 = vmatprep.subr.bf16.mxu1 %v1315_v1  ;;  %v698_v31 = vsel %vm697_vm5, 1, %v1317_v28  ;;  %v715_v53 = vmul.u32 7, %v714_v44 }
  0x2a   : > { %1192 = vmatpush3.bf16.msra.mxu0 %v1283_v43  ;;  %v699_v37 = vadd.s32 %v1508_v15, %v698_v31  ;;  %v728_v50 = vshrl.u32 %v727_v40, 2 }
  0x2b   : > { %v716_v62 = vsub.s32 %v680_v9, %v715_v53  ;;  %v758_v9 = vsub.s32 %v1510_v16, %v757_v3 }
  0x2c   : > { %1212 = vmatpush3.bf16.msra.mxu1 %v1284_v46  ;;  %v700_v47 = vshrl.u32 %v699_v37, 2  ;;  %v729_v59 = vmul.u32 7, %v728_v50 }
  0x2d   : > { %1162 = vmatmul.mubr.msk.bf16.gmra.mxu0 %vm277_vm2, %v252_v49  ;;  %vm776_vm9 = vcmp.ne.s32.totalorder %v716_v62, 0  ;;  %vm782_vm10 = vcmp.lt.s32.totalorder %v716_v62, 0  ;;  %v794_v15 = vadd.s32 7, %v716_v62  ;;  %vm779_vm4 = vcmp.ne.s32.totalorder %v758_v9, 0 }
  0x2e   : > { %1182 = vmatmul.mubr.msk.bf16.gmra.mxu1 %vm277_vm2, %v1416_v21  ;;  %1193 = vmatprep.mubr.msk.bf16.mxu0 %vm1316_vm0, %v1315_v1  ;;  %v1521_v21 = vmul.u32.u64.low 2454267026, %v1505_v13  ;;  %v1522_v22 = vmul.u32.u64.high 2454267026, %v1505_v13, %v1521_v21  ;;  %vm1556_vm15 = vmand %vm782_vm10, %vm776_vm9  ;;  %vm785_vm5 = vcmp.lt.s32.totalorder %v758_v9, 0  ;;  %v797_v33 = vadd.s32 7, %v758_v9 }
  0x2f   : > { %1213 = vmatprep.mubr.msk.bf16.mxu1 %vm1316_vm0, %v1315_v1 }
  0x30   : > { %vm739_vm7 = vc.u32 %v1521_v21, 2454267026 }
  0x31   : > { %v740_v38 = vsel %vm739_vm7, 1, %v1317_v28  ;;  %vm1582_vm7 = vmand %vm785_vm5, %vm779_vm4 }
  0x32   : > { %v741_v45 = vadd.s32 %v1522_v22, %v740_v38 }
  0x34   : > { %v742_v54 = vshrl.u32 %v741_v45, 2  ;;  %v803_v45 = vsel %vm1582_vm7, %v797_v33, %v758_v9 }
  0x35   : > { %1194 = vmatmul.mubr.msk.bf16.vlgmr.msra.gmra.mxu0 %vm277_vm2, %v460_v56  ;;  %v701_v56 = vmul.u32 7, %v700_v47 }
  0x36   : > { %1214 = vmatmul.mubr.msk.bf16.vlgmr.msra.gmra.mxu1 %vm277_vm2, %v1093_v55  ;;  %1197 = vmatprep.mubr.msk.bf16.mxu0 %vm1316_vm0, %v1315_v1 }
  0x37   : > { %1217 = vmatprep.mubr.msk.bf16.mxu1 %vm1316_vm0, %v1315_v1  ;;  %v702_v2 = vsub.s32 %v679_v8, %v701_v56 }
  0x39   : > { %vm775_vm11 = vcmp.ne.s32.totalorder %v702_v2, 0  ;;  %vm781_vm12 = vcmp.lt.s32.totalorder %v702_v2, 0  ;;  %v793_v8 = vadd.s32 7, %v702_v2 }
  0x3d   : > { %1198 = vmatmul.mubr.msk.bf16.gmra.mxu0 %vm277_vm2, %v464_v0 }
  0x3e   : > { %1218 = vmatmul.mubr.msk.bf16.gmra.mxu1 %vm277_vm2, %v1094_v63  ;;  %1201 = vmatprep.mubr.msk.bf16.mxu0 %vm1316_vm0, %v1315_v1  ;;  %v743_v63 = vmul.u32 7, %v742_v54 }
  0x3f   : > { %1221 = vmatprep.mubr.msk.bf16.mxu1 %vm1316_vm0, %v1315_v1  ;;  %vm1560_vm0 = vmand %vm781_vm12, %vm775_vm11  ;;  %vm689_vm12 = vcmp.lt.s32.totalorder %v1510_v16, 35 }
  0x40   : > { %v744_v11 = vsub.s32 %v1505_v13, %v743_v63  ;;  %v799_v31 = vsel %vm1560_vm0, %v793_v8, %v702_v2 }
  0x41   : > { %vm805_vm9 = vcmp.lt.s32.totalorder %v799_v31, 5 }
  0x42   : > { %vm778_vm1 = vcmp.ne.s32.totalorder %v744_v11, 0  ;;  %v796_v28 = vadd.s32 7, %v744_v11 }
  0x45   : > { %1202 = vmatmul.mubr.msk.bf16.gmra.mxu0 %vm277_vm2, %v473_v6 }
  0x46   : > { %1222 = vmatmul.mubr.msk.bf16.gmra.mxu1 %vm277_vm2, %v1095_v5  ;;  %v730_v5 = vsub.s32 %v1500_v10, %v729_v59  ;;  %vm784_vm2 = vcmp.lt.s32.totalorder %v744_v11, 0 }
  0x47   : > { %vm1576_vm6 = vmand %vm784_vm2, %vm778_vm1 }
  0x48   : > { %vm777_vm13 = vcmp.ne.s32.totalorder %v730_v5, 0  ;;  %vm783_vm14 = vcmp.lt.s32.totalorder %v730_v5, 0  ;;  %v795_v21 = vadd.s32 7, %v730_v5  ;;  %v802_v41 = vsel %vm1576_vm6, %v796_v28, %v744_v11 }
  0x49   : > { %vm1566_vm3 = vmand %vm783_vm14, %vm777_vm13  ;;  %vm808_vm11 = vcmp.lt.s32.totalorder %v802_v41, 5  ;;  %vm809_vm13 = vcmp.lt.s32.totalorder %v803_v45, 5  ;;  %vm934_vm6 = vcmask 257024  }
  0x4a   : > { %v801_v35 = vsel %vm1566_vm3, %v795_v21, %v730_v5  ;;  %vm815_vm14 = vmand %vm689_vm12, %vm809_vm13 }
  0x4b   : > { %vm807_vm10 = vcmp.lt.s32.totalorder %v801_v35, 5  ;;  %v821_v11 = vsel %vm815_vm14, 1.0, %v1315_v1 }
  0x4c   : > { %v819_v53 = vsel %vm807_vm10, 1.0, %v1315_v1 }
  0xdd   : > { %v1518_v20 = vpop.f32.mrf.mxu0 }
  0xde   : > { %v1516_v19 = vpop.f32.mrf.mxu1 }
  0xdf   : > { %v1155_v26 = vpop.f32.mrf.mxu0  ;;  %v409_v29 = vadd.f32 %v1516_v19, %v1518_v20 }
  0xe0   : > { %v1175_v23 = vpop.f32.mrf.mxu1  ;;  %v800_v26 = vsel %vm1556_vm15, %v794_v15, %v716_v62  ;;  %vm829_vm15 = vcmask 261120  }
  0xe1   : > { %v1530_v30 = vpop.f32.mrf.mxu0  ;;  %vm806_vm8 = vcmp.lt.s32.totalorder %v800_v26, 5 }
  0xe2   : > { %v1528_v27 = vpop.f32.mrf.mxu1  ;;  %v1595_v47 = vsel %vm806_vm8, 1.0, %v1315_v1 }
  0xe3   : > { %v1156_v34 = vpop.f32.mrf.mxu0  ;;  %v412_v22 = vadd.f32 %v1528_v27, %v1530_v30 }
  0xe4   : > { %v1176_v32 = vpop.f32.mrf.mxu1 }
  0xe5   : > { %v1536_v39 = vpop.f32.mrf.mxu0 }
  0xe6   : > { %v1533_v36 = vpop.f32.mrf.mxu1 }
  0xe7   : > { %v1159_v43 = vpop.f32.mrf.mxu0  ;;  %v417_v19 = vadd.f32 %v1533_v36, %v1536_v39 }
  0xe8   : > { %v1179_v42 = vpop.f32.mrf.mxu1 }
  0xe9   : > { %v1543_v49 = vpop.f32.mrf.mxu0 }
  0xea   : > { %v1540_v46 = vpop.f32.mrf.mxu1 }
  0xeb   : > { %v1160_v52 = vpop.f32.mrf.mxu0  ;;  %v420_v39 = vadd.f32 %v1540_v46, %v1543_v49  ;;  %v820_v46 = vsel %vm808_vm11, 1.0, %v1315_v1 }
  0xec   : > { %v1180_v51 = vpop.f32.mrf.mxu1  ;;  %v817_v52 = vsel %vm805_vm9, 1.0, %v1315_v1 }
  0xed   : > { %v1547_v58 = vpop.f32.mrf.mxu0 }
  0xee   : > { %v1545_v55 = vpop.f32.mrf.mxu1 }
  0xef   : > { %v1163_v61 = vpop.f32.mrf.mxu0 }
  0xf0   : > { %v1183_v60 = vpop.f32.mrf.mxu1 }
  0xf1   : > { %v1551_v4 = vpop.f32.mrf.mxu0  ;;  %v425_v60 = vadd.f32 %v1545_v55, %v1547_v58 }
  0xf2   : > { %v1549_v0 = vpop.f32.mrf.mxu1 }
  0xf3   : > { %v1164_v7 = vpop.f32.mrf.mxu0  ;;  %v428_v9 = vadd.f32 %v1549_v0, %v1551_v4 }
  0xf4   : > { %v1184_v6 = vpop.f32.mrf.mxu1 }
  0xf5   : > { %v541_v14 = vpop.f32.mrf.mxu0 }
  0xf6   : > { %v649_v12 = vpop.f32.mrf.mxu1  ;;  %v564_v20 = vadd.f32 %v541_v14, %v409_v29 }
  0xf7   : > { %v1195_v13 = vpop.f32.mrf.mxu0 }
  0xf8   : > { %v1215_v17 = vpop.f32.mrf.mxu1  ;;  %v672_v48 = vadd.f32 %v649_v12, %v564_v20 }
  0xf9   : > { %v544_v25 = vpop.f32.mrf.mxu0 }
  0xfa   : > { %v652_v23 = vpop.f32.mrf.mxu1  ;;  %v565_v32 = vadd.f32 %v544_v25, %v412_v22  ;;  %v823_v61 = vmul.f32 %v817_v52, %v672_v48 }
  0xfb   : > { %v1196_v34 = vpop.f32.mrf.mxu0 }
  0xfc   : > { %v1216_v27 = vpop.f32.mrf.mxu1  ;;  %v1590_v42 = vadd.f32 %v652_v23, %v565_v32  ;;  %v830_v55 = vsel %vm829_vm15, %v823_v61, 0.0 }
  0xfd   : > { %v549_v40 = vpop.f32.mrf.mxu0 }
  0xfe   : > { %v657_v38 = vpop.f32.mrf.mxu1  ;;  %v566_v43 = vadd.f32 %v549_v40, %v417_v19  ;;  %v824_v56 = vmul.f32 %v1595_v47, %v1590_v42 }
  0xff   : > { %v1199_v36 = vpop.f32.mrf.mxu0 }
 0x100   : > { %v1219_v44 = vpop.f32.mrf.mxu1  ;;  %v1599_v50 = vadd.f32 %v657_v38, %v566_v43  ;;  %v831_v3 = vsel %vm829_vm15, %v824_v56, 0.0 }
 0x101   : > { %v552_v54 = vpop.f32.mrf.mxu0  ;;  %v832_v8 = vadd.f32 %v831_v3, %v830_v55 }
 0x102   : > { %v660_v51 = vpop.f32.mrf.mxu1  ;;  %v567_v57 = vadd.f32 %v552_v54, %v420_v39  ;;  %v825_v62 = vmul.f32 %v819_v53, %v1599_v50 }
 0x103   : > { %v1200_v49 = vpop.f32.mrf.mxu0 }
 0x104   : > { %v1220_v59 = vpop.f32.mrf.mxu1  ;;  %v675_v63 = vadd.f32 %v660_v51, %v567_v57  ;;  %v833_v58 = vsel %vm829_vm15, %v825_v62, 0.0 }
 0x105   : > { %v557_v16 = vpop.f32.mrf.mxu0  ;;  %v834_v22 = vadd.f32 %v833_v58, %v832_v8 }
 0x106   : > { %v665_v2 = vpop.f32.mrf.mxu1  ;;  %v826_v5 = vmul.f32 %v820_v46, %v675_v63  ;;  %v568_v6 = vadd.f32 %v557_v16, %v425_v60 }
 0x107   : > { %v1203_v12 = vpop.f32.mrf.mxu0 }
 0x108   : > { %v1223_v7 = vpop.f32.mrf.mxu1  ;;  %v676_v14 = vadd.f32 %v665_v2, %v568_v6  ;;  %v835_v18 = vsel %vm829_vm15, %v826_v5, 0.0 }
 0x109   : > { %v560_v17 = vpop.f32.mrf.mxu0  ;;  %v836_v25 = vadd.f32 %v835_v18, %v834_v22 }
 0x10a   : > { %v668_v15 = vpop.f32.mrf.mxu1  ;;  %v827_v10 = vmul.f32 %v821_v11, %v676_v14  ;;  %v569_v13 = vadd.f32 %v560_v17, %v428_v9 }
 0x10b   : > { %v1204_v23 = vpop.f32.mrf.mxu0 }
 0x10c   : > { %v1224_v21 = vpop.f32.mrf.mxu1  ;;  %v837_v1 = vsel %vm829_vm15, %v827_v10, 0.0  ;;  %v677_v24 = vadd.f32 %v668_v15, %v569_v13 }
 0x10d   : > { %v838_v4 = vadd.f32 %v837_v1, %v836_v25 }
 0x10e   : > { %v828_v0 = vmul.f32 0.0, %v677_v24 }
 0x110   : > { %v839_v26 = vsel %vm829_vm15, %v828_v0, 0.0 }
 0x111   : > { %v840_v28 = vadd.f32 %v839_v26, %v838_v4 }
 0x113   : > { %v841_v29 = vrot.slane %v840_v28, 4 }
 0x115   : > { %v842_v31 = vadd.f32 %v841_v29, %v840_v28 }
 0x117   : > { %v843_v32 = vrot.slane %v842_v31, 2 }
 0x119   : > { %v844_v27 = vadd.f32 %v843_v32, %v842_v31 }
 0x11b   : > { %v845_v30 = vrot.slane %v844_v27, 1 }
 0x11d   : > { %v846_v33 = vadd.f32 %v845_v30, %v844_v27 }
 0x11f   : > { %v847_v34 = vmul.f32 0.04, %v846_v33 }
 0x121   : > { %v848_v35 = vsub.f32 %v672_v48, %v847_v34  ;;  %v849_v37 = vsub.f32 %v1590_v42, %v847_v34  ;;  %v850_v19 = vsub.f32 %v1599_v50, %v847_v34  ;;  %v851_v20 = vsub.f32 %v675_v63, %v847_v34 }
 0x122   : > { %v852_v38 = vsub.f32 %v676_v14, %v847_v34  ;;  %v853_v40 = vsub.f32 %v677_v24, %v847_v34 }
 0x123   : > { %v854_v41 = vmul.f32 %v848_v35, %v817_v52  ;;  %v855_v43 = vmul.f32 %v849_v37, %v1595_v47  ;;  %v856_v44 = vmul.f32 %v850_v19, %v819_v53  ;;  %v857_v45 = vmul.f32 %v851_v20, %v820_v46 }
 0x124   : > { %v858_v36 = vmul.f32 %v852_v38, %v821_v11  ;;  %v859_v56 = vmul.f32 0.0, %v853_v40 }
 0x125   : > { %v860_v39 = vmul.f32 %v854_v41, %v854_v41  ;;  %v861_v51 = vmul.f32 %v855_v43, %v855_v43  ;;  %v862_v54 = vmul.f32 %v856_v44, %v856_v44  ;;  %v863_v57 = vmul.f32 %v857_v45, %v857_v45 }
 0x126   : > { %v864_v50 = vmul.f32 %v858_v36, %v858_v36  ;;  %v865_v52 = vmul.f32 %v859_v56, %v859_v56 }
 0x127   : > { %v866_v48 = vsel %vm829_vm15, %v860_v39, 0.0  ;;  %v867_v42 = vsel %vm829_vm15, %v861_v51, 0.0  ;;  %v869_v49 = vsel %vm829_vm15, %v862_v54, 0.0  ;;  %v871_v47 = vsel %vm829_vm15, %v863_v57, 0.0 }
 0x128   : > { %v868_v59 = vadd.f32 %v867_v42, %v866_v48  ;;  %v873_v46 = vsel %vm829_vm15, %v864_v50, 0.0  ;;  %v875_v62 = vsel %vm829_vm15, %v865_v52, 0.0 }
 0x12a   : > { %v870_v60 = vadd.f32 %v869_v49, %v868_v59 }
 0x12c   : > { %v872_v53 = vadd.f32 %v871_v47, %v870_v60 }
 0x12e   : > { %v874_v61 = vadd.f32 %v873_v46, %v872_v53 }
 0x130   : > { %v876_v63 = vadd.f32 %v875_v62, %v874_v61 }
 0x132   : > { %v877_v2 = vrot.slane %v876_v63, 4 }
 0x134   : > { %v878_v16 = vadd.f32 %v877_v2, %v876_v63 }
 0x136   : > { %v879_v3 = vrot.slane %v878_v16, 2 }
 0x138   : > { %v880_v5 = vadd.f32 %v879_v3, %v878_v16 }
 0x13a   : > { %v881_v6 = vrot.slane %v880_v5, 1 }
 0x13c   : > { %v882_v7 = vadd.f32 %v881_v6, %v880_v5 }
 0x13e   : > { %v883_v11 = vmul.f32 0.04, %v882_v7 }
 0x140   : > { %v884_v12 = vadd.f32 1e-05, %v883_v11 }
 0x142   : > { %1289 = vrsqrt.f32 %v884_v12 }
 0x14f   : > { %v1290_v9 = vpop.eup %1289 }
 0x150   : > { %v886_v55 = vmul.f32 %v1290_v9, %v854_v41  ;;  %v887_v58 = vmul.f32 %v1290_v9, %v855_v43  ;;  %v888_v14 = vmul.f32 %v1290_v9, %v856_v44  ;;  %v889_v15 = vmul.f32 %v1290_v9, %v857_v45 }
 0x151   : > { %v890_v8 = vmul.f32 %v1290_v9, %v858_v36  ;;  %v891_v17 = vmul.f32 %v1290_v9, %v859_v56 }
 0x152   : > { %vm892_vm0 = vcmp.ge.f32.partialorder %v886_v55, 0.0  ;;  %vm893_vm1 = vcmp.ge.f32.partialorder %v887_v58, 0.0  ;;  %vm894_vm2 = vcmp.ge.f32.partialorder %v888_v14, 0.0  ;;  %vm895_vm3 = vcmp.ge.f32.partialorder %v889_v15, 0.0 }
 0x153   : > { %vm896_vm4 = vcmp.ge.f32.partialorder %v890_v8, 0.0  ;;  %vm897_vm5 = vcmp.ge.f32.partialorder %v891_v17, 0.0  ;;  %v898_v18 = vmul.f32 0.2, %v886_v55  ;;  %v899_v10 = vmul.f32 0.2, %v887_v58 }
 0x154   : > { %v900_v13 = vmul.f32 0.2, %v888_v14  ;;  %v901_v21 = vmul.f32 0.2, %v889_v15  ;;  %v902_v22 = vmul.f32 0.2, %v890_v8 }
 0x155   : > { %v903_v23 = vmul.f32 0.2, %v891_v17  ;;  %v904_v1 = vsel %vm892_vm0, %v886_v55, %v898_v18  ;;  %v905_v24 = vsel %vm893_vm1, %v887_v58, %v899_v10 }
 0x156   : > { %v906_v25 = vsel %vm894_vm2, %v888_v14, %v900_v13  ;;  %v907_v0 = vsel %vm895_vm3, %v889_v15, %v901_v21  ;;  %v908_v4 = vsel %vm896_vm4, %v890_v8, %v902_v22  ;;  %v1111_v26 = vpack.c.bf16 %v904_v1, %v904_v1 }
 0x157   : > { %v909_v28 = vsel %vm897_vm5, %v891_v17, %v903_v23  ;;  %v1112_v29 = vpack.c.bf16 %v905_v24, %v905_v24  ;;  %v1113_v31 = vpack.c.bf16 %v906_v25, %v906_v25  ;;  %v1114_v32 = vpack.c.bf16 %v907_v0, %v907_v0 }
 0x158   : > { %v1115_v27 = vpack.c.bf16 %v908_v4, %v908_v4  ;;  %v1116_v30 = vpack.c.bf16 %v909_v28, %v909_v28  ;;  %935 = vst.msk [vmem:[%s180_s28] sm:$0xf] %vm934_vm6, %v1111_v26 }
 0x159   : > { %936 = vst.msk [vmem:[%s180_s28 + $0x4] sm:$0xf] %vm934_vm6, %v1112_v29  ;;  %937 = vst.msk [vmem:[%s180_s28 + $0x8] sm:$0xf] %vm934_vm6, %v1113_v31 }
 0x15a   : > { %938 = vst.msk [vmem:[%s180_s28 + $0xc] sm:$0xf] %vm934_vm6, %v1114_v32  ;;  %939 = vst.msk [vmem:[%s180_s28 + $0x10] sm:$0xf] %vm934_vm6, %v1115_v27 }
 0x15b   : > { %940 = vst.msk [vmem:[%s180_s28 + $0x14] sm:$0xf] %vm934_vm6, %v1116_v30 }
 0x15c PF: > { %s12_s11 = sadd.s32 1, %s1313_s11   ;;  %s1660_s9 = smov %s1309_s10 }
 0x15d   : > { %p9_p5 = scmp.ge.s32.totalorder %s12_s11, 4   ;;  %s1661_s10 = smov %s1663_s12 }
 0x15f   :  { %11 = sbr.rel (!%p9_p5) target bundleno = 2 (0x2), region = 64 }

// kernel: nlayer_discriminator_forward.7
= control target key start
LH: loop header
LB: loop body
LE: loop exit
PB: predicated region body
PF: predicated region fallthrough
CT: control target
= control target key end

     0   :  { %s1186_s9 = smov 0   ;;  %s1188_s10 = smov 0   ;;  %s1386_s0 = inlined_call_operand.vmem [shape: bf16[2,25,128], index: 0, kind: input, shape index: {}]   ;;  %s1387_s1 = inlined_call_operand.vmem [shape: bf16[4,128,64], index: 1, kind: input, shape index: {}]   ;;  %s1388_s2 = inlined_call_operand.vmem [shape: bf16[2,16,64], index: 2, kind: output, shape index: {}]  }
   0x1   :  { %s1190_s11 = smov 0  }
   0x2 LB: > { %s24_s12 = sadd.s32 1, %s1163_s10  ;;  %p862_p0 = scmp.ge.s32.totalorder %s1167_s11, 1  ;;  %s1167_s11 = sphi %s1190_s11, %s12_s11   ;;  %s1163_s10 = sphi %s1188_s10, %s1390_s10   ;;  %s1159_s9 = sphi %s1186_s9, %s1389_s9  }
   0x3   : > { %p26_p1 = scmp.ge.s32.totalorder %s24_s12, 2  ;;  %p135_p2 = scmp.lt.s32.totalorder %s1167_s11, 3 }
   0x5   : > { %s1392_s12 = smov (%p26_p1, %s24_s12), 0  ;;  %p136_p3 = pnand %p862_p0, %p135_p2 }
   0x6   : > { %p164_p4 = scmp.lt.s32.totalorder (!%p136_p3), %s1159_s9, 1 }
   0x7   : > { %139 = sbr.rel (%p136_p3) target bundleno = 344 (0x158), region = 28 }
   0xc   : > { %v1106_v0 = vld [vmem:[%s1387_s1 + $0x78] sm:$0xff]   ;;  %v1169_v1 = vmov 0.0   ;;  %v1108_v3 = vld [vmem:[%s1387_s1 + $0x70] sm:$0xff]   ;;  %vm1170_vm0 = vmmov 0   ;;  %v1110_v5 = vld [vmem:[%s1387_s1 + $0x68] sm:$0xff]   ;;  %s1394_s9 = smov (!%p164_p4, %s1159_s9), 1  ;;  %v671_v63 = vlaneseq }
   0xd   : > { %996 = vmatprep.subr.bf16.mxu0 %v1169_v1  ;;  %1016 = vmatprep.subr.bf16.mxu1 %v1169_v1  ;;  %v1107_v2 = vld [vmem:[%s1387_s1 + $0x38] sm:$0xff]   ;;  %v1109_v4 = vld [vmem:[%s1387_s1 + $0x30] sm:$0xff]   ;;  %v1111_v6 = vld [vmem:[%s1387_s1 + $0x28] sm:$0xff]   ;;  %s956_s27 = sshll.u32 %s1394_s9, 4  ;;  %vm226_vm1 = vsmask.f32 7424 }
   0xe   : > { %997 = vmatpush3.bf16.msra.mxu0 %v1106_v0  ;;  %1012 = vmatprep.mubr.msk.bf16.mxu0 %vm1170_vm0, %v1169_v1  ;;  %v1112_v7 = vld [vmem:[%s1387_s1 + $0x60] sm:$0xff]   ;;  %s1246_s4 = scalar_lea.vmem %s1386_s0, %s956_s27  ;;  %v1114_v9 = vld [vmem:[%s1387_s1 + $0x58] sm:$0xff]   ;;  %v1116_v13 = vld [vmem:[%s1387_s1 + $0x50] sm:$0xff]   ;;  %vm444_vm2 = vsmask.f32 5376  ;;  %vm575_vm3 = vcmask 1044480  }
   0xf   : > { %1017 = vmatpush3.bf16.msra.mxu1 %v1107_v2  ;;  %998 = vmatprep.subr.bf16.mxu0 %v1169_v1  ;;  %v1113_v8 = vld [vmem:[%s1387_s1 + $0x20] sm:$0xff]   ;;  %v1115_v10 = vld [vmem:[%s1387_s1 + $0x18] sm:$0xff]   ;;  %v1123_v15 = vld [vmem:[%s1246_s4 + $0x8] ss:$0 sps:$4 sm:$0x11]   ;;  %v672_v0 = vshrl.u32 %v671_v63, 7 }
  0x10   : > { %1018 = vmatprep.subr.bf16.mxu1 %v1169_v1  ;;  %1032 = vmatprep.mubr.msk.bf16.mxu1 %vm1170_vm0, %v1169_v1  ;;  %v182_v11 = vld [vmem:[%s1246_s4] sm:$0xf]  ;;  %v1258_v12 = vld [vmem:[%s1246_s4 + $0x4] sm:$0xf]  ;;  %v1117_v16 = vld [vmem:[%s1387_s1 + $0x10] sm:$0xff]   ;;  %v235_v21 = vshll.u32 %v1123_v15, 16 }
  0x11   : > { %v883_v14 = vcombine.low %v182_v11, %v1258_v12  ;;  %v1118_v18 = vld [vmem:[%s1387_s1 + $0x48] sm:$0xff]   ;;  %v1120_v23 = vld [vmem:[%s1387_s1 + $0x40] sm:$0xff]   ;;  %v1124_v28 = vld [vmem:[%s1387_s1 + $0xb8] sm:$0xff]   ;;  %v673_v2 = vadd.s32 8, %v672_v0  ;;  %vm716_vm14 = vcmask 523264   ;;  %s957_s6 = sshll.u32 %s1394_s9, 3 }
  0x12   : > { %999 = vmatpush3.bf16.msra.mxu0 %v1108_v3  ;;  %v1119_v22 = vld [vmem:[%s1387_s1 + $0x8] sm:$0xff]   ;;  %v1121_v24 = vld [vmem:[%s1387_s1] sm:$0xff]   ;;  %v237_v26 = vrot.slane %v235_v21, 1  ;;  %v1125_v29 = vld [vmem:[%s1387_s1 + $0xf8] sm:$0xff]   ;;  %s180_s13 = scalar_lea.vmem %s1388_s2, %s957_s6 }
  0x13   : > { %1019 = vmatpush3.bf16.msra.mxu1 %v1109_v4  ;;  %1000 = vmatprep.subr.bf16.mxu0 %v1169_v1  ;;  %v230_v17 = vshll.u32 %v883_v14, 16  ;;  %v228_v19 = vshrl.u32 %v883_v14, 16  ;;  %v1126_v30 = vld [vmem:[%s1387_s1 + $0xb0] sm:$0xff]   ;;  %v1128_v32 = vld [vmem:[%s1387_s1 + $0xa8] sm:$0xff]   ;;  %v1130_v34 = vld [vmem:[%s1387_s1 + $0xa0] sm:$0xff]   ;;  %vm675_vm10 = vcmp.lt.s32.totalorder %v673_v2, 15 }
  0x14   : > { %1020 = vmatprep.subr.bf16.mxu1 %v1169_v1  ;;  %v1127_v31 = vld [vmem:[%s1387_s1 + $0xf0] sm:$0xff]   ;;  %v1129_v33 = vld [vmem:[%s1387_s1 + $0xe8] sm:$0xff]   ;;  %v1131_v35 = vld [vmem:[%s1387_s1 + $0xe0] sm:$0xff]  }
  0x15   : > { %v232_v20 = vrot.slane %v230_v17, 1  ;;  %v419_v36 = vld [vmem:[%s1246_s4] sm:$0xc]  ;;  %v1132_v37 = vld [vmem:[%s1387_s1 + $0x98] sm:$0xff]   ;;  %v1134_v41 = vld [vmem:[%s1387_s1 + $0x90] sm:$0xff]  }
  0x16   : > { %1001 = vmatpush3.bf16.msra.mxu0 %v1110_v5  ;;  %v917_v38 = vcombine.low %v419_v36, %v1258_v12  ;;  %v1141_v39 = vld [vmem:[%s1246_s4 + $0x8] ss:$0 sps:$4 sm:$0x77]   ;;  %v1133_v40 = vld [vmem:[%s1387_s1 + $0xd8] sm:$0xff]   ;;  %v1135_v46 = vld [vmem:[%s1387_s1 + $0xd0] sm:$0xff]  }
  0x17   : > { %1021 = vmatpush3.bf16.msra.mxu1 %v1111_v6  ;;  %1002 = vmatprep.subr.bf16.mxu0 %v1169_v1  ;;  %v233_v25 = vor.u32 %v232_v20, %v228_v19  ;;  %v454_v44 = vshrl.u32 %v1141_v39, 16  ;;  %v457_v45 = vshll.u32 %v1141_v39, 16  ;;  %v554_v47 = vld [vmem:[%s1246_s4] sm:$0x8]  ;;  %v1136_v48 = vld [vmem:[%s1387_s1 + $0x88] sm:$0xff]   ;;  %v577_v60 = vrot.slane %v1141_v39, 3 }
  0x18   : > { %1022 = vmatprep.subr.bf16.mxu1 %v1169_v1  ;;  %v446_v42 = vshrl.u32 %v917_v38, 16  ;;  %v449_v43 = vshll.u32 %v917_v38, 16  ;;  %v1137_v53 = vld [vmem:[%s1387_s1 + $0xc8] sm:$0xff]   ;;  %v943_v54 = vcombine.low %v554_v47, %v1258_v12  ;;  %v1138_v55 = vld [vmem:[%s1387_s1 + $0x80] sm:$0xff]  }
  0x19   : > { %v238_v27 = vsel %vm226_vm1, %v233_v25, %v237_v26  ;;  %v456_v51 = vrot.slane %v454_v44, 2  ;;  %v459_v52 = vrot.slane %v457_v45, 3  ;;  %v1139_v58 = vld [vmem:[%s1387_s1 + $0xc0] sm:$0xff]   ;;  %vm761_vm1 = vcmask 519168  }
  0x1a   : > { %1003 = vmatpush3.bf16.msra.mxu0 %v1112_v7  ;;  %v448_v49 = vrot.slane %v446_v42, 2  ;;  %v451_v50 = vrot.slane %v449_v43, 3  ;;  %v576_v59 = vrot.slane %v943_v54, 3 }
  0x1b   : > { %1023 = vmatpush3.bf16.msra.mxu1 %v1113_v8  ;;  %1004 = vmatprep.subr.bf16.mxu0 %v1169_v1  ;;  %v460_v57 = vor.u32 %v459_v52, %v456_v51  ;;  %v1359_v7 = vmul.u32.u64.low 3435973837, %v673_v2  ;;  %v1360_v8 = vmul.u32.u64.high 3435973837, %v673_v2, %v1359_v7 }
  0x1c   : > { %1024 = vmatprep.subr.bf16.mxu1 %v1169_v1  ;;  %v452_v56 = vor.u32 %v451_v50, %v448_v49  ;;  %v578_v62 = vsel %vm575_vm3, %v576_v59, %v577_v60 }
  0x1d   : > { %v693_v15 = vshrl.u32 %v1360_v8, 2 }
  0x1e   : > { %1005 = vmatpush3.bf16.msra.mxu0 %v1114_v9  ;;  %v461_v61 = vsel %vm444_vm2, %v452_v56, %v460_v57 }
  0x1f   : > { %1025 = vmatpush3.bf16.msra.mxu1 %v1115_v10  ;;  %1006 = vmatprep.subr.bf16.mxu0 %v1169_v1  ;;  %v1362_v10 = vmul.u32.u64.low 3435973837, %v672_v0  ;;  %v1363_v11 = vmul.u32.u64.high 3435973837, %v672_v0, %v1362_v10  ;;  %v694_v17 = vmul.u32 5, %v693_v15 }
  0x20   : > { %1026 = vmatprep.subr.bf16.mxu1 %v1169_v1 }
  0x21   : > { %v695_v19 = vsub.s32 %v673_v2, %v694_v17 }
  0x22   : > { %1007 = vmatpush3.bf16.msra.mxu0 %v1116_v13 }
  0x23   : > { %1027 = vmatpush3.bf16.msra.mxu1 %v1117_v16  ;;  %1008 = vmatprep.subr.bf16.mxu0 %v1169_v1  ;;  %v682_v16 = vshrl.u32 %v1363_v11, 2  ;;  %vm699_vm4 = vcmp.ne.s32.totalorder %v695_v19, 0  ;;  %vm701_vm5 = vcmp.lt.s32.totalorder %v695_v19, 0  ;;  %v705_v21 = vadd.s32 5, %v695_v19 }
  0x24   : > { %1028 = vmatprep.subr.bf16.mxu1 %v1169_v1  ;;  %vm703_vm8 = vmand %vm701_vm5, %vm699_vm4 }
  0x26   : > { %1009 = vmatpush3.bf16.msra.mxu0 %v1118_v18  ;;  %v683_v18 = vmul.u32 5, %v682_v16 }
  0x27   : > { %1029 = vmatpush3.bf16.msra.mxu1 %v1119_v22  ;;  %1010 = vmatprep.subr.bf16.mxu0 %v1169_v1 }
  0x28   : > { %1030 = vmatprep.subr.bf16.mxu1 %v1169_v1  ;;  %v684_v20 = vsub.s32 %v672_v0, %v683_v18 }
  0x2a   : > { %1011 = vmatpush3.bf16.msra.mxu0 %v1120_v23  ;;  %vm698_vm6 = vcmp.ne.s32.totalorder %v684_v20, 0  ;;  %vm700_vm7 = vcmp.lt.s32.totalorder %v684_v20, 0  ;;  %v704_v22 = vadd.s32 5, %v684_v20  ;;  %v707_v23 = vsel %vm703_vm8, %v705_v21, %v695_v19 }
  0x2b   : > { %1031 = vmatpush3.bf16.msra.mxu1 %v1121_v24  ;;  %1036 = vmatprep.subr.bf16.mxu0 %v1169_v1  ;;  %vm702_vm9 = vmand %vm700_vm7, %vm698_vm6  ;;  %vm709_vm11 = vcmp.lt.s32.totalorder %v707_v23, 3 }
  0x2c   : > { %1056 = vmatprep.subr.bf16.mxu1 %v1169_v1  ;;  %v706_v24 = vsel %vm702_vm9, %v704_v22, %v684_v20  ;;  %vm711_vm13 = vmand %vm675_vm10, %vm709_vm11 }
  0x2d   : > { %1013 = vmatmul.mubr.bf16.vlgmr.msra.gmra.mxu0 %v238_v27  ;;  %vm708_vm12 = vcmp.lt.s32.totalorder %v706_v24, 3 }
  0x2e   : > { %1033 = vmatmul.mubr.bf16.vlgmr.msra.gmra.mxu1 %v883_v14  ;;  %1037 = vmatpush3.bf16.msra.mxu0 %v1124_v28 }
  0x2f   : > { %1057 = vmatpush3.bf16.msra.mxu1 %v1125_v29  ;;  %1038 = vmatprep.subr.bf16.mxu0 %v1169_v1 }
  0x30   : > { %1058 = vmatprep.subr.bf16.mxu1 %v1169_v1  ;;  %1052 = vmatprep.mubr.msk.bf16.mxu0 %vm1170_vm0, %v1169_v1 }
  0x31   : > { %1072 = vmatprep.mubr.msk.bf16.mxu1 %vm1170_vm0, %v1169_v1 }
  0x32   : > { %1039 = vmatpush3.bf16.msra.mxu0 %v1126_v30 }
  0x33   : > { %1059 = vmatpush3.bf16.msra.mxu1 %v1127_v31  ;;  %1040 = vmatprep.subr.bf16.mxu0 %v1169_v1 }
  0x34   : > { %1060 = vmatprep.subr.bf16.mxu1 %v1169_v1 }
  0x36   : > { %1041 = vmatpush3.bf16.msra.mxu0 %v1128_v32 }
  0x37   : > { %1061 = vmatpush3.bf16.msra.mxu1 %v1129_v33  ;;  %1042 = vmatprep.subr.bf16.mxu0 %v1169_v1  ;;  %v712_v33 = vsel %vm708_vm12, 1.0, %v1169_v1 }
  0x38   : > { %1062 = vmatprep.subr.bf16.mxu1 %v1169_v1 }
  0x3a   : > { %1043 = vmatpush3.bf16.msra.mxu0 %v1130_v34 }
  0x3b   : > { %1063 = vmatpush3.bf16.msra.mxu1 %v1131_v35  ;;  %1044 = vmatprep.subr.bf16.mxu0 %v1169_v1 }
  0x3c   : > { %1064 = vmatprep.subr.bf16.mxu1 %v1169_v1 }
  0x3e   : > { %1045 = vmatpush3.bf16.msra.mxu0 %v1132_v37  ;;  %v713_v37 = vsel %vm711_vm13, 1.0, %v1169_v1 }
  0x3f   : > { %1065 = vmatpush3.bf16.msra.mxu1 %v1133_v40  ;;  %1046 = vmatprep.subr.bf16.mxu0 %v1169_v1 }
  0x40   : > { %1066 = vmatprep.subr.bf16.mxu1 %v1169_v1 }
  0x42   : > { %1047 = vmatpush3.bf16.msra.mxu0 %v1134_v41 }
  0x43   : > { %1067 = vmatpush3.bf16.msra.mxu1 %v1135_v46  ;;  %1048 = vmatprep.subr.bf16.mxu0 %v1169_v1 }
  0x44   : > { %1068 = vmatprep.subr.bf16.mxu1 %v1169_v1 }
  0x46   : > { %1049 = vmatpush3.bf16.msra.mxu0 %v1136_v48 }
  0x47   : > { %1069 = vmatpush3.bf16.msra.mxu1 %v1137_v53  ;;  %1050 = vmatprep.subr.bf16.mxu0 %v1169_v1 }
  0x48   : > { %1070 = vmatprep.subr.bf16.mxu1 %v1169_v1 }
  0x4a   : > { %1051 = vmatpush3.bf16.msra.mxu0 %v1138_v55 }
  0x4b   : > { %1071 = vmatpush3.bf16.msra.mxu1 %v1139_v58 }
  0x4d   : > { %1053 = vmatmul.mubr.bf16.vlgmr.msra.gmra.mxu0 %v461_v61 }
  0x4e   : > { %1073 = vmatmul.mubr.bf16.vlgmr.msra.gmra.mxu1 %v578_v62 }
  0xed   : > { %v322_v3 = vpop.f32.mrf.mxu0 }
  0xee   : > { %v412_v4 = vpop.f32.mrf.mxu1 }
  0xef   : > { %v1014_v5 = vpop.f32.mrf.mxu0  ;;  %v413_v25 = vadd.f32 %v412_v4, %v322_v3 }
  0xf0   : > { %v1034_v6 = vpop.f32.mrf.mxu1 }
  0xf1   : > { %v325_v9 = vpop.f32.mrf.mxu0 }
  0xf2   : > { %v415_v12 = vpop.f32.mrf.mxu1 }
  0xf3   : > { %v1015_v13 = vpop.f32.mrf.mxu0  ;;  %v416_v30 = vadd.f32 %v415_v12, %v325_v9 }
  0xf4   : > { %v1035_v14 = vpop.f32.mrf.mxu1 }
 0x10d   : > { %v545_v26 = vpop.f32.mrf.mxu0 }
 0x10e   : > { %v552_v27 = vadd.f32 %v545_v26, %v413_v25  ;;  %v662_v28 = vpop.f32.mrf.mxu1 }
 0x10f   : > { %v1054_v29 = vpop.f32.mrf.mxu0 }
 0x110   : > { %v669_v31 = vadd.f32 %v662_v28, %v552_v27  ;;  %v1074_v32 = vpop.f32.mrf.mxu1 }
 0x111   : > { %v548_v34 = vpop.f32.mrf.mxu0 }
 0x112   : > { %v553_v35 = vadd.f32 %v548_v34, %v416_v30  ;;  %v665_v36 = vpop.f32.mrf.mxu1  ;;  %v714_v39 = vmul.f32 %v712_v33, %v669_v31 }
 0x113   : > { %v1055_v38 = vpop.f32.mrf.mxu0 }
 0x114   : > { %v670_v40 = vadd.f32 %v665_v36, %v553_v35  ;;  %v1075_v41 = vpop.f32.mrf.mxu1  ;;  %v717_v43 = vsel %vm716_vm14, %v714_v39, 0.0 }
 0x116   : > { %v715_v42 = vmul.f32 %v713_v37, %v670_v40 }
 0x118   : > { %v718_v44 = vsel %vm716_vm14, %v715_v42, 0.0 }
 0x119   : > { %v719_v45 = vadd.f32 %v718_v44, %v717_v43 }
 0x11b   : > { %v720_v46 = vrot.slane %v719_v45, 4 }
 0x11d   : > { %v721_v47 = vadd.f32 %v720_v46, %v719_v45 }
 0x11f   : > { %v722_v48 = vrot.slane %v721_v47, 2 }
 0x121   : > { %v723_v49 = vadd.f32 %v722_v48, %v721_v47 }
 0x123   : > { %v724_v50 = vrot.slane %v723_v49, 1 }
 0x125   : > { %v725_v51 = vadd.f32 %v724_v50, %v723_v49 }
 0x127   : > { %v726_v52 = vmul.f32 0.11111111, %v725_v51 }
 0x129   : > { %v727_v53 = vsub.f32 %v669_v31, %v726_v52  ;;  %v728_v1 = vsub.f32 %v670_v40, %v726_v52 }
 0x12b   : > { %v729_v54 = vmul.f32 %v727_v53, %v712_v33  ;;  %v730_v55 = vmul.f32 %v728_v1, %v713_v37 }
 0x12d   : > { %v731_v56 = vmul.f32 %v729_v54, %v729_v54  ;;  %v732_v57 = vmul.f32 %v730_v55, %v730_v55 }
 0x12f   : > { %v733_v58 = vsel %vm716_vm14, %v731_v56, 0.0  ;;  %v734_v59 = vsel %vm716_vm14, %v732_v57, 0.0 }
 0x130   : > { %v735_v60 = vadd.f32 %v734_v59, %v733_v58 }
 0x132   : > { %v736_v61 = vrot.slane %v735_v60, 4 }
 0x134   : > { %v737_v62 = vadd.f32 %v736_v61, %v735_v60 }
 0x136   : > { %v738_v63 = vrot.slane %v737_v62, 2 }
 0x138   : > { %v739_v0 = vadd.f32 %v738_v63, %v737_v62 }
 0x13a   : > { %v740_v2 = vrot.slane %v739_v0, 1 }
 0x13c   : > { %v741_v3 = vadd.f32 %v740_v2, %v739_v0 }
 0x13e   : > { %v742_v4 = vmul.f32 0.11111111, %v741_v3 }
 0x140   : > { %v743_v5 = vadd.f32 1e-05, %v742_v4 }
 0x142   : > { %1143 = vrsqrt.f32 %v743_v5 }
 0x14f   : > { %v1144_v6 = vpop.eup %1143 }
 0x150   : > { %v745_v7 = vmul.f32 %v1144_v6, %v729_v54  ;;  %v746_v8 = vmul.f32 %v1144_v6, %v730_v55 }
 0x152   : > { %vm747_vm15 = vcmp.ge.f32.partialorder %v745_v7, 0.0  ;;  %vm748_vm0 = vcmp.ge.f32.partialorder %v746_v8, 0.0  ;;  %v749_v9 = vmul.f32 0.2, %v745_v7  ;;  %v750_v10 = vmul.f32 0.2, %v746_v8 }
 0x154   : > { %v751_v11 = vsel %vm747_vm15, %v745_v7, %v749_v9  ;;  %v752_v12 = vsel %vm748_vm0, %v746_v8, %v750_v10 }
 0x155   : > { %v958_v13 = vpack.c.bf16 %v751_v11, %v751_v11  ;;  %v959_v14 = vpack.c.bf16 %v752_v12, %v752_v12 }
 0x157   : > { %762 = vst.msk [vmem:[%s180_s13] sm:$0xf] %vm761_vm1, %v958_v13  ;;  %763 = vst.msk [vmem:[%s180_s13 + $0x4] sm:$0xf] %vm761_vm1, %v959_v14 }
 0x158 PF: > { %s12_s11 = sadd.s32 1, %s1167_s11   ;;  %s1389_s9 = smov %s1163_s10 }
 0x159   : > { %p9_p5 = scmp.ge.s32.totalorder %s12_s11, 4   ;;  %s1390_s10 = smov %s1392_s12 }
 0x15b   :  { %11 = sbr.rel (!%p9_p5) target bundleno = 2 (0x2), region = 64 }

// kernel: nlayer_discriminator_forward.8
= control target key start
LH: loop header
LB: loop body
LE: loop exit
PB: predicated region body
PF: predicated region fallthrough
CT: control target
= control target key end

     0   :  { %s2938_s9 = smov 0   ;;  %s2940_s10 = smov 0   ;;  %s3468_s0 = inlined_call_operand.vmem [shape: bf16[2,56,64], index: 0, kind: input, shape index: {}]   ;;  %s3469_s1 = inlined_call_operand.vmem [shape: bf16[16,64,128], index: 1, kind: input, shape index: {}]   ;;  %s3470_s2 = inlined_call_operand.vmem [shape: bf16[2,32,128], index: 2, kind: output, shape index: {}]  }
   0x1   :  { %s2942_s11 = smov 0  }
   0x2 LB: > { %s24_s12 = sadd.s32 1, %s2915_s10  ;;  %p2212_p0 = scmp.ge.s32.totalorder %s2919_s11, 1  ;;  %s2919_s11 = sphi %s2942_s11, %s12_s11   ;;  %s2915_s10 = sphi %s2940_s10, %s3480_s10   ;;  %s2911_s9 = sphi %s2938_s9, %s3479_s9  }
   0x3   : > { %p26_p1 = scmp.ge.s32.totalorder %s24_s12, 2  ;;  %p135_p2 = scmp.lt.s32.totalorder %s2919_s11, 3 }
   0x5   : > { %s3482_s12 = smov (%p26_p1, %s24_s12), 0  ;;  %p136_p3 = pnand %p2212_p0, %p135_p2 }
   0x6   : > { %p164_p4 = scmp.lt.s32.totalorder (!%p136_p3), %s2911_s9, 1 }
   0x7   : > { %139 = sbr.rel (%p136_p3) target bundleno = 418 (0x1a2), region = 28 }
   0xc   : > { %v2804_v0 = vld [vmem:[%s3469_s1 + $0x38] sm:$0xff]   ;;  %v2806_v2 = vld [vmem:[%s3469_s1 + $0x30] sm:$0xff]   ;;  %s3484_s9 = smov (!%p164_p4, %s2911_s9), 1  ;;  %v2808_v4 = vld [vmem:[%s3469_s1 + $0x28] sm:$0xff]   ;;  %vm262_vm0 = vcmask 523264   ;;  %vm408_vm2 = vcmask 1046528  }
   0xd   : > { %v2805_v1 = vld [vmem:[%s3469_s1 + $0x18] sm:$0xff]   ;;  %2577 = vmatprep.subr.bf16.mxu0 %v2804_v0  ;;  %v2807_v3 = vld [vmem:[%s3469_s1 + $0x10] sm:$0xff]   ;;  %s2769_s23 = smul.u32 28, %s3484_s9  ;;  %v2809_v5 = vld [vmem:[%s3469_s1 + $0x8] sm:$0xff]   ;;  %vm217_vm1 = vsmask.f32 7424 }
   0xe   : > { %2589 = vmatprep.subr.bf16.mxu1 %v2805_v1  ;;  %2578 = vmatpush3.bf16.msra.mxu0 %v2804_v0  ;;  %v2810_v6 = vld [vmem:[%s3469_s1 + $0x20] sm:$0xff]   ;;  %v2815_v20 = vld [vmem:[%s3469_s1 + $0x58] sm:$0xff]   ;;  %v2817_v27 = vld [vmem:[%s3469_s1 + $0x50] sm:$0xff]   ;;  %vm510_vm3 = vsmask.f32 6400  ;;  %vm1079_vm5 = vcmask 1044480  }
   0xf   : > { %2590 = vmatpush3.bf16.msra.mxu1 %v2805_v1  ;;  %2579 = vmatprep.subr.bf16.mxu0 %v2806_v2  ;;  %s2983_s30 = scalar_lea.vmem %s3468_s0, %s2769_s23  ;;  %v2811_v7 = vld [vmem:[%s3469_s1] sm:$0xff]   ;;  %v2816_v22 = vld [vmem:[%s3469_s1 + $0x78] sm:$0xff]   ;;  %v2818_v29 = vld [vmem:[%s3469_s1 + $0x70] sm:$0xff]   ;;  %vm632_vm4 = vsmask.f32 4352  ;;  %s2465_s28 = sshll.u32 %s3484_s9, 4 }
  0x10   : > { %2591 = vmatprep.subr.bf16.mxu1 %v2807_v3  ;;  %v182_v8 = vld [vmem:[%s2983_s30] sm:$0xf]  ;;  %v2990_v9 = vld [vmem:[%s2983_s30 + $0x4] sm:$0xf]  ;;  %v2993_v10 = vld [vmem:[%s2983_s30 + $0x8] sm:$0xf]  ;;  %s180_s4 = scalar_lea.vmem %s3470_s2, %s2465_s28 }
  0x11   : > { %v2996_v11 = vld [vmem:[%s2983_s30 + $0xc] sm:$0xf]  ;;  %v2224_v12 = vcombine.low %v182_v8, %v2990_v9  ;;  %v3004_v14 = vld [vmem:[%s2983_s30 + $0x10] ss:$0 sps:$4 sm:$0x11]   ;;  %v2821_v45 = vld [vmem:[%s3469_s1 + $0x40] sm:$0xff]  }
  0x12   : > { %2580 = vmatpush3.bf16.msra.mxu0 %v2806_v2  ;;  %v3001_v13 = vcombine.low %v2993_v10, %v2996_v11  ;;  %v234_v19 = vshll.u32 %v3004_v14, 16  ;;  %v2819_v32 = vld [vmem:[%s3469_s1 + $0x48] sm:$0xff]   ;;  %v395_v33 = vld [vmem:[%s2983_s30] sm:$0xe]  ;;  %v412_v54 = vrot.slane %v3004_v14, 1  ;;  %v2825_v56 = vld [vmem:[%s3469_s1 + $0x98] sm:$0xff]   ;;  %v2293_v14 = vcombine.low %v2990_v9, %v2993_v10 }
  0x13   : > { %2592 = vmatpush3.bf16.msra.mxu1 %v2807_v3  ;;  %2581 = vmatprep.subr.bf16.mxu0 %v2808_v4  ;;  %v219_v15 = vshrl.u32 %v2224_v12, 16  ;;  %v221_v16 = vshll.u32 %v2224_v12, 16  ;;  %v2820_v36 = vld [vmem:[%s3469_s1 + $0x68] sm:$0xff]   ;;  %v2247_v37 = vcombine.low %v395_v33, %v2990_v9  ;;  %v2824_v38 = vld [vmem:[%s2983_s30 + $0x10] ss:$0 sps:$4 sm:$0x33]  }
  0x14   : > { %2593 = vmatprep.subr.bf16.mxu1 %v2809_v5  ;;  %2597 = vmatprep.mubr.msk.bf16.mxu1 %vm262_vm0, %v2224_v12  ;;  %v3008_v17 = vshll.u32 %v3001_v13, 16  ;;  %v3011_v18 = vshrl.u32 %v3001_v13, 16  ;;  %v236_v24 = vrot.slane %v234_v19, 1  ;;  %v410_v31 = vrot.slane %v3001_v13, 1  ;;  %v2822_v50 = vld [vmem:[%s3469_s1 + $0x60] sm:$0xff]   ;;  %v2826_v57 = vld [vmem:[%s3469_s1 + $0xb8] sm:$0xff]  }
  0x15   : > { %v223_v21 = vrot.slane %v221_v16, 1  ;;  %v409_v39 = vrot.slane %v2247_v37, 1  ;;  %v512_v40 = vshrl.u32 %v2247_v37, 16  ;;  %v515_v41 = vshll.u32 %v2247_v37, 16  ;;  %v615_v58 = vld [vmem:[%s2983_s30] sm:$0x8] }
  0x16   : > { %2582 = vmatpush3.bf16.msra.mxu0 %v2808_v4  ;;  %v228_v23 = vrot.slane %v3008_v17, 1  ;;  %v519_v34 = vrot.slane %v3011_v18, 1  ;;  %v520_v35 = vrot.slane %v3008_v17, 2  ;;  %v524_v42 = vshrl.u32 %v2824_v38, 16  ;;  %v3068_v62 = vld [vmem:[%s2983_s30 + $0x10] sm:$0xf] }
  0x17   : > { %2594 = vmatpush3.bf16.msra.mxu1 %v2809_v5  ;;  %2583 = vmatprep.subr.bf16.mxu0 %v2810_v6  ;;  %v224_v25 = vor.u32 %v223_v21, %v219_v15  ;;  %v527_v44 = vshll.u32 %v2824_v38, 16  ;;  %v411_v46 = vsel %vm408_vm2, %v409_v39, %v410_v31  ;;  %v514_v47 = vrot.slane %v512_v40, 1  ;;  %v2827_v4 = vld [vmem:[%s3469_s1 + $0x90] sm:$0xff]   ;;  %v2829_v15 = vld [vmem:[%s3469_s1 + $0x88] sm:$0xff]   ;;  %v831_v19 = vld [vmem:[%s2983_s30 + $0x4] sm:$0xf] }
  0x18   : > { %2595 = vmatprep.subr.bf16.mxu1 %v2811_v7  ;;  %v232_v26 = vor.u32 %v3011_v18, %v228_v23  ;;  %v521_v43 = vor.u32 %v520_v35, %v519_v34  ;;  %v517_v48 = vrot.slane %v515_v41, 2  ;;  %v526_v49 = vrot.slane %v524_v42, 1  ;;  %v2828_v5 = vld [vmem:[%s3469_s1 + $0xb0] sm:$0xff]   ;;  %v3098_v21 = vld [vmem:[%s2983_s30 + $0xc] sm:$0xf]  ;;  %v2837_v33 = vld [vmem:[%s3469_s1 + $0xd8] sm:$0xff]  }
  0x19   : > { %v229_v28 = vsel %vm217_vm1, %v224_v25, %v228_v23  ;;  %v529_v51 = vrot.slane %v527_v44, 2  ;;  %v641_v59 = vrot.slane %v3011_v18, 3  ;;  %v642_v60 = vrot.slane %v3008_v17, 4  ;;  %v961_v25 = vld [vmem:[%s2983_s30 + $0x4] sm:$0xe]  ;;  %v2838_v35 = vld [vmem:[%s3469_s1 + $0xf8] sm:$0xff]  }
  0x1a   : > { %2584 = vmatpush3.bf16.msra.mxu0 %v2810_v6  ;;  %2585 = vmatprep.mubr.msk.bf16.mxu0 %vm262_vm0, %v229_v28  ;;  %v237_v30 = vsel %vm217_vm1, %v232_v26, %v236_v24  ;;  %v518_v52 = vor.u32 %v517_v48, %v514_v47  ;;  %v2277_v61 = vcombine.low %v615_v58, %v2990_v9  ;;  %v2830_v9 = vld [vmem:[%s3469_s1 + $0xa8] sm:$0xff]   ;;  %v2831_v26 = vld [vmem:[%s3469_s1 + $0x80] sm:$0xff]   ;;  %v2839_v42 = vld [vmem:[%s3469_s1 + $0xd0] sm:$0xff]   ;;  %vm1526_vm6 = vsmask.f32 5376 }
  0x1b   : > { %2596 = vmatpush3.bf16.msra.mxu1 %v2811_v7  ;;  %2601 = vmatprep.subr.bf16.mxu0 %v2815_v20  ;;  %v530_v55 = vor.u32 %v529_v51, %v526_v49  ;;  %v2278_v63 = vcombine.low %v3068_v62, %v3068_v62  ;;  %v413_v0 = vsel %vm408_vm2, %v410_v31, %v412_v54  ;;  %v2841_v48 = vld [vmem:[%s3469_s1 + $0xc8] sm:$0xff]   ;;  %v2843_v51 = vld [vmem:[%s3469_s1 + $0xc0] sm:$0xff]   ;;  %v3156_v58 = vld [vmem:[%s2983_s30 + $0x14] sm:$0xf] }
  0x1c   : > { %2613 = vmatprep.subr.bf16.mxu1 %v2816_v22  ;;  %v522_v53 = vsel %vm510_vm3, %v518_v52, %v521_v43  ;;  %v634_v2 = vshrl.u32 %v2277_v61, 16  ;;  %v637_v3 = vshll.u32 %v2277_v61, 16  ;;  %v2294_v37 = vcombine.low %v2996_v11, %v3068_v62  ;;  %v1062_v11 = vld [vmem:[%s2983_s30 + $0x4] sm:$0x8]  ;;  %v2842_v49 = vld [vmem:[%s3469_s1 + $0xe8] sm:$0xff]  }
  0x1d   : > { %2586 = vmatmul.mubr.msk.bf16.vlgmr.msra.gmra.mxu0 %vm262_vm0, %v237_v30  ;;  %v531_v1 = vsel %vm510_vm3, %v521_v43, %v530_v55  ;;  %v646_v6 = vshrl.u32 %v2278_v63, 16  ;;  %v649_v7 = vshll.u32 %v2278_v63, 16  ;;  %v2840_v43 = vld [vmem:[%s3469_s1 + $0xf0] sm:$0xff]   ;;  %v2844_v54 = vld [vmem:[%s3469_s1 + $0xe0] sm:$0xff]  }
  0x1e   : > { %2598 = vmatmul.mubr.msk.bf16.vlgmr.msra.gmra.mxu1 %vm262_vm0, %v3001_v13  ;;  %2602 = vmatpush3.bf16.msra.mxu0 %v2815_v20  ;;  %v636_v8 = vrot.slane %v634_v2, 3  ;;  %v639_v12 = vrot.slane %v637_v3, 4  ;;  %v643_v13 = vor.u32 %v642_v60, %v641_v59  ;;  %v3095_v20 = vld [vmem:[%s2983_s30 + $0x8] sm:$0xf] }
  0x1f   : > { %2614 = vmatpush3.bf16.msra.mxu1 %v2816_v22  ;;  %2603 = vmatprep.subr.bf16.mxu0 %v2817_v27  ;;  %v648_v17 = vrot.slane %v646_v6, 3  ;;  %v651_v18 = vrot.slane %v649_v7, 4  ;;  %v3101_v22 = vld [vmem:[%s2983_s30 + $0x10] sm:$0xf]  ;;  %v2309_v23 = vcombine.low %v831_v19, %v3095_v20  ;;  %v2326_v28 = vcombine.low %v961_v25, %v3095_v20  ;;  %v2854_v25 = vld [vmem:[%s3469_s1 + $0x128] sm:$0xff]  }
  0x20   : > { %2615 = vmatprep.subr.bf16.mxu1 %v2818_v29  ;;  %2609 = vmatprep.mubr.msk.bf16.mxu0 %vm262_vm0, %v411_v46  ;;  %v640_v16 = vor.u32 %v639_v12, %v636_v8  ;;  %v3106_v24 = vcombine.low %v3098_v21, %v3101_v22  ;;  %v2848_v46 = vld [vmem:[%s2983_s30 + $0x14] ss:$0 sps:$4 sm:$0x11]   ;;  %v2341_v47 = vcombine.low %v1062_v11, %v3095_v20 }
  0x21   : > { %2621 = vmatprep.mubr.msk.bf16.mxu1 %vm262_vm0, %v522_v53  ;;  %v859_v30 = vshrl.u32 %v2309_v23, 16  ;;  %v874_v55 = vshll.u32 %v2848_v46, 16  ;;  %v977_v63 = vrot.slane %v2848_v46, 1  ;;  %v2372_v46 = vcombine.low %v3095_v20, %v3098_v21  ;;  %v2865_v20 = vld [vmem:[%s3469_s1 + $0x168] sm:$0xff]  }
  0x22   : > { %2604 = vmatpush3.bf16.msra.mxu0 %v2817_v27  ;;  %v644_v10 = vsel %vm632_vm4, %v640_v16, %v643_v13  ;;  %v2832_v27 = vld [vmem:[%s3469_s1 + $0xa0] sm:$0xff]   ;;  %v866_v31 = vshll.u32 %v3106_v24, 16  ;;  %v975_v40 = vrot.slane %v3106_v24, 1  ;;  %v1182_v52 = vshrl.u32 %v2341_v47, 16 }
  0x23   : > { %2616 = vmatpush3.bf16.msra.mxu1 %v2818_v29  ;;  %2605 = vmatprep.subr.bf16.mxu0 %v2819_v32  ;;  %v861_v29 = vshll.u32 %v2309_v23, 16  ;;  %v1185_v53 = vshll.u32 %v2341_v47, 16  ;;  %v876_v62 = vrot.slane %v874_v55, 1  ;;  %v1080_v2 = vrot.slane %v2341_v47, 3  ;;  %v3190_v23 = vld [vmem:[%s2983_s30 + $0x14] sm:$0xf] }
  0x24   : > { %2617 = vmatprep.subr.bf16.mxu1 %v2820_v36  ;;  %v868_v39 = vrot.slane %v866_v31, 1  ;;  %v1184_v59 = vrot.slane %v1182_v52, 3  ;;  %v1081_v3 = vrot.slane %v3106_v24, 3  ;;  %v978_v12 = vsel %vm408_vm2, %v975_v40, %v977_v63  ;;  %v2866_v55 = vld [vmem:[%s3469_s1 + $0x140] sm:$0xff]  }
  0x25   : > { %v863_v34 = vrot.slane %v861_v29, 1  ;;  %v1187_v60 = vrot.slane %v1185_v53, 4 }
  0x26   : > { %2606 = vmatpush3.bf16.msra.mxu0 %v2819_v32  ;;  %v652_v32 = vor.u32 %v651_v18, %v648_v17  ;;  %v2853_v17 = vld [vmem:[%s3469_s1 + $0x108] sm:$0xff]   ;;  %v1082_v18 = vsel %vm1079_vm5, %v1080_v2, %v1081_v3  ;;  %v2874_v2 = vld [vmem:[%s3469_s1 + $0x1b8] sm:$0xff]  }
  0x27   : > { %2618 = vmatpush3.bf16.msra.mxu1 %v2820_v36  ;;  %2607 = vmatprep.subr.bf16.mxu0 %v2821_v45  ;;  %v974_v36 = vrot.slane %v2326_v28, 1  ;;  %v864_v38 = vor.u32 %v863_v34, %v859_v30  ;;  %v1188_v6 = vor.u32 %v1187_v60, %v1184_v59 }
  0x28   : > { %2619 = vmatprep.subr.bf16.mxu1 %v2822_v50  ;;  %v653_v41 = vsel %vm632_vm4, %v643_v13, %v652_v32  ;;  %v1379_v13 = vld [vmem:[%s2983_s30 + $0x8] sm:$0xf]  ;;  %v2856_v32 = vld [vmem:[%s3469_s1 + $0x120] sm:$0xff]  }
  0x29   : > { %v869_v44 = vsel %vm217_vm1, %v864_v38, %v868_v39  ;;  %v2860_v38 = vld [vmem:[%s3469_s1 + $0x158] sm:$0xff]  }
  0x2a   : > { %2608 = vmatpush3.bf16.msra.mxu0 %v2821_v45  ;;  %v976_v45 = vsel %vm408_vm2, %v974_v36, %v975_v40  ;;  %v2862_v40 = vld [vmem:[%s3469_s1 + $0x150] sm:$0xff]  }
  0x2b   : > { %2620 = vmatpush3.bf16.msra.mxu1 %v2822_v50  ;;  %2625 = vmatprep.subr.bf16.mxu0 %v2825_v56  ;;  %v870_v50 = vshrl.u32 %v3106_v24, 16 }
  0x2c   : > { %2637 = vmatprep.subr.bf16.mxu1 %v2826_v57 }
  0x2d   : > { %2610 = vmatmul.mubr.msk.bf16.vlgmr.msra.gmra.mxu0 %vm262_vm0, %v413_v0  ;;  %v872_v61 = vor.u32 %v870_v50, %v868_v39  ;;  %v2849_v0 = vld [vmem:[%s3469_s1 + $0x118] sm:$0xff]  }
  0x2e   : > { %2622 = vmatmul.mubr.msk.bf16.vlgmr.msra.gmra.mxu1 %vm262_vm0, %v531_v1  ;;  %2626 = vmatpush3.bf16.msra.mxu0 %v2825_v56  ;;  %v1189_v56 = vrot.slane %v870_v50, 3  ;;  %v2850_v1 = vld [vmem:[%s3469_s1 + $0x138] sm:$0xff]   ;;  %v2864_v50 = vld [vmem:[%s3469_s1 + $0x148] sm:$0xff]  }
  0x2f   : > { %2638 = vmatpush3.bf16.msra.mxu1 %v2826_v57  ;;  %2627 = vmatprep.subr.bf16.mxu0 %v2827_v4  ;;  %v1190_v57 = vrot.slane %v866_v31, 4  ;;  %v877_v8 = vsel %vm217_vm1, %v872_v61, %v876_v62  ;;  %v2855_v31 = vld [vmem:[%s3469_s1 + $0x100] sm:$0xff]   ;;  %v2861_v39 = vld [vmem:[%s3469_s1 + $0x178] sm:$0xff]  }
  0x30   : > { %2639 = vmatprep.subr.bf16.mxu1 %v2828_v5  ;;  %2645 = vmatprep.mubr.msk.bf16.mxu1 %vm262_vm0, %v2293_v14  ;;  %v3174_v14 = vld [vmem:[%s2983_s30 + $0xc] sm:$0xf] }
  0x31   : > { %2633 = vmatprep.mubr.msk.bf16.mxu0 %vm262_vm0, %v644_v10  ;;  %v1191_v7 = vor.u32 %v1190_v57, %v1189_v56  ;;  %v3180_v10 = vld [vmem:[%s2983_s30 + $0x10] sm:$0xf]  ;;  %v2388_v24 = vcombine.low %v1379_v13, %v3174_v14  ;;  %v2867_v56 = vld [vmem:[%s3469_s1 + $0x160] sm:$0xff]  }
  0x32   : > { %2628 = vmatpush3.bf16.msra.mxu0 %v2827_v4  ;;  %v2357_v4 = vcombine.low %v3156_v58, %v3156_v58  ;;  %v2875_v13 = vld [vmem:[%s3469_s1 + $0x190] sm:$0xff]  }
  0x33   : > { %2640 = vmatpush3.bf16.msra.mxu1 %v2828_v5  ;;  %2629 = vmatprep.subr.bf16.mxu0 %v2829_v15  ;;  %v2851_v5 = vld [vmem:[%s3469_s1 + $0x110] sm:$0xff]   ;;  %v1192_v19 = vsel %vm632_vm4, %v1188_v6, %v1191_v7  ;;  %v1409_v28 = vshll.u32 %v2388_v24, 16 }
  0x34   : > { %2641 = vmatprep.subr.bf16.mxu1 %v2830_v9  ;;  %v1194_v16 = vshrl.u32 %v2357_v4, 16 }
  0x35   : > { %v1411_v34 = vrot.slane %v1409_v28, 1  ;;  %v2880_v28 = vld [vmem:[%s3469_s1 + $0x1a0] sm:$0xff]  }
  0x36   : > { %2630 = vmatpush3.bf16.msra.mxu0 %v2829_v15  ;;  %v2852_v15 = vld [vmem:[%s3469_s1 + $0x130] sm:$0xff]   ;;  %v1196_v29 = vrot.slane %v1194_v16, 3 }
  0x37   : > { %2642 = vmatpush3.bf16.msra.mxu1 %v2830_v9  ;;  %2631 = vmatprep.subr.bf16.mxu0 %v2831_v26  ;;  %v1197_v9 = vshll.u32 %v2357_v4, 16 }
  0x38   : > { %2643 = vmatprep.subr.bf16.mxu1 %v2832_v27 }
  0x39   : > { %v1199_v30 = vrot.slane %v1197_v9, 4 }
  0x3a   : > { %2632 = vmatpush3.bf16.msra.mxu0 %v2831_v26  ;;  %v2858_v26 = vld [vmem:[%s2983_s30 + $0x14] ss:$0 sps:$4 sm:$0x77]  }
  0x3b   : > { %2644 = vmatpush3.bf16.msra.mxu1 %v2832_v27  ;;  %2649 = vmatprep.subr.bf16.mxu0 %v2837_v33  ;;  %v3201_v27 = vcombine.low %v3180_v10, %v3190_v23  ;;  %v1083_v36 = vrot.slane %v2858_v26, 3 }
  0x3c   : > { %2661 = vmatprep.subr.bf16.mxu1 %v2838_v35 }
  0x3d   : > { %2634 = vmatmul.mubr.msk.bf16.vlgmr.msra.gmra.mxu0 %vm262_vm0, %v653_v41  ;;  %v3244_v52 = vshrl.u32 %v3201_v27, 16 }
  0x3e   : > { %2646 = vmatmul.mubr.msk.bf16.vlgmr.msra.gmra.mxu1 %vm262_vm0, %v2294_v37  ;;  %2650 = vmatpush3.bf16.msra.mxu0 %v2837_v33  ;;  %v1407_v33 = vshrl.u32 %v2388_v24, 16  ;;  %v1200_v37 = vor.u32 %v1199_v30, %v1196_v29 }
  0x3f   : > { %2662 = vmatpush3.bf16.msra.mxu1 %v2838_v35  ;;  %2651 = vmatprep.subr.bf16.mxu0 %v2839_v42  ;;  %v3210_v35 = vshll.u32 %v3201_v27, 16  ;;  %v1535_v57 = vrot.slane %v3244_v52, 2 }
  0x40   : > { %2663 = vmatprep.subr.bf16.mxu1 %v2840_v43  ;;  %2657 = vmatprep.mubr.msk.bf16.mxu0 %vm262_vm0, %v869_v44  ;;  %v1412_v41 = vor.u32 %v1411_v34, %v1407_v33  ;;  %v1201_v11 = vsel %vm632_vm4, %v1191_v7, %v1200_v37  ;;  %v1509_v44 = vld [vmem:[%s2983_s30 + $0x8] sm:$0xc]  ;;  %v1645_v7 = vrot.slane %v3201_v27, 3  ;;  %v2879_v27 = vld [vmem:[%s3469_s1 + $0x180] sm:$0xff]   ;;  %v2885_v37 = vld [vmem:[%s3469_s1 + $0x1f8] sm:$0xff]  }
  0x41   : > { %2669 = vmatprep.mubr.msk.bf16.mxu1 %vm262_vm0, %v976_v45  ;;  %v2863_v45 = vld [vmem:[%s3469_s1 + $0x170] sm:$0xff]   ;;  %v1536_v61 = vrot.slane %v3210_v35, 3 }
  0x42   : > { %2652 = vmatpush3.bf16.msra.mxu0 %v2839_v42  ;;  %v1416_v42 = vrot.slane %v3210_v35, 1 }
  0x43   : > { %2664 = vmatpush3.bf16.msra.mxu1 %v2840_v43  ;;  %2653 = vmatprep.subr.bf16.mxu0 %v2841_v48  ;;  %v1084_v43 = vsel %vm1079_vm5, %v1081_v3, %v1083_v36  ;;  %v2373_v3 = vcombine.low %v3101_v22, %v3156_v58  ;;  %v2876_v22 = vld [vmem:[%s3469_s1 + $0x1b0] sm:$0xff]   ;;  %v2884_v36 = vld [vmem:[%s3469_s1 + $0x1d8] sm:$0xff]  }
  0x44   : > { %2665 = vmatprep.subr.bf16.mxu1 %v2842_v49  ;;  %v1417_v47 = vsel %vm217_vm1, %v1412_v41, %v1416_v42  ;;  %v1420_v63 = vor.u32 %v3244_v52, %v1416_v42 }
  0x46   : > { %2654 = vmatpush3.bf16.msra.mxu0 %v2841_v48  ;;  %v2405_v48 = vcombine.low %v1509_v44, %v3174_v14  ;;  %v2451_v44 = vcombine.low %v3174_v14, %v3180_v10 }
  0x47   : > { %2666 = vmatpush3.bf16.msra.mxu1 %v2842_v49  ;;  %2655 = vmatprep.subr.bf16.mxu0 %v2843_v51  ;;  %v2872_v49 = vld [vmem:[%s2983_s30 + $0x18] ss:$0 sps:$4 sm:$0x11]  }
  0x48   : > { %2667 = vmatprep.subr.bf16.mxu1 %v2844_v54  ;;  %v1528_v21 = vshrl.u32 %v2405_v48, 16  ;;  %v1422_v53 = vshll.u32 %v2872_v49, 16 }
  0x4a   : > { %2656 = vmatpush3.bf16.msra.mxu0 %v2843_v51  ;;  %v1531_v51 = vshll.u32 %v2405_v48, 16  ;;  %v1530_v59 = vrot.slane %v1528_v21, 2  ;;  %v2888_v48 = vld [vmem:[%s3469_s1 + $0x1c8] sm:$0xff]  }
  0x4b   : > { %2668 = vmatpush3.bf16.msra.mxu1 %v2844_v54  ;;  %2673 = vmatprep.subr.bf16.mxu0 %v2849_v0  ;;  %v1631_v54 = vld [vmem:[%s2983_s30 + $0x8] sm:$0x8] }
  0x4c   : > { %2685 = vmatprep.subr.bf16.mxu1 %v2850_v1  ;;  %v1533_v60 = vrot.slane %v1531_v51, 3  ;;  %v2421_v62 = vcombine.low %v1631_v54, %v3174_v14  ;;  %v2889_v14 = vld [vmem:[%s3469_s1 + $0x1e8] sm:$0xff]  }
  0x4d   : > { %2658 = vmatmul.mubr.msk.bf16.vlgmr.msra.gmra.mxu0 %vm262_vm0, %v877_v8 }
  0x4e   : > { %2670 = vmatmul.mubr.msk.bf16.vlgmr.msra.gmra.mxu1 %vm262_vm0, %v978_v12  ;;  %2674 = vmatpush3.bf16.msra.mxu0 %v2849_v0  ;;  %v1424_v0 = vrot.slane %v1422_v53, 1  ;;  %v1534_v4 = vor.u32 %v1533_v60, %v1530_v59  ;;  %v1644_v6 = vrot.slane %v2421_v62, 3  ;;  %v2883_v12 = vld [vmem:[%s2983_s30 + $0x18] ss:$0 sps:$4 sm:$0x77]   ;;  %v1749_v24 = vshll.u32 %v2421_v62, 16 }
  0x4f   : > { %2686 = vmatpush3.bf16.msra.mxu1 %v2850_v1  ;;  %2675 = vmatprep.subr.bf16.mxu0 %v2851_v5  ;;  %v2873_v1 = vld [vmem:[%s3469_s1 + $0x198] sm:$0xff]   ;;  %v1540_v16 = vshrl.u32 %v2883_v12, 16  ;;  %v1543_v9 = vshll.u32 %v2883_v12, 16  ;;  %v1647_v34 = vrot.slane %v2883_v12, 3 }
  0x50   : > { %2687 = vmatprep.subr.bf16.mxu1 %v2852_v15  ;;  %2681 = vmatprep.mubr.msk.bf16.mxu0 %vm262_vm0, %v1082_v18  ;;  %v1425_v8 = vsel %vm217_vm1, %v1420_v63, %v1424_v0  ;;  %v2878_v18 = vld [vmem:[%s3469_s1 + $0x1a8] sm:$0xff]   ;;  %v1751_v30 = vrot.slane %v1749_v24, 4  ;;  %v1943_v24 = vlaneseq }
  0x51   : > { %2693 = vmatprep.mubr.msk.bf16.mxu1 %vm262_vm0, %v1192_v19  ;;  %v1746_v19 = vshrl.u32 %v2421_v62, 16  ;;  %v1545_v26 = vrot.slane %v1543_v9, 3  ;;  %v1648_v41 = vsel %vm1079_vm5, %v1645_v7, %v1647_v34 }
  0x52   : > { %2676 = vmatpush3.bf16.msra.mxu0 %v2851_v5  ;;  %v1537_v5 = vor.u32 %v1536_v61, %v1535_v57 }
  0x53   : > { %2688 = vmatpush3.bf16.msra.mxu1 %v2852_v15  ;;  %2677 = vmatprep.subr.bf16.mxu0 %v2853_v17  ;;  %v1646_v15 = vsel %vm1079_vm5, %v1644_v6, %v1645_v7  ;;  %v1748_v29 = vrot.slane %v1746_v19, 3 }
  0x54   : > { %2689 = vmatprep.subr.bf16.mxu1 %v2854_v25  ;;  %v1538_v58 = vsel %vm1526_vm6, %v1534_v4, %v1537_v5 }
  0x56   : > { %2678 = vmatpush3.bf16.msra.mxu0 %v2853_v17  ;;  %v2877_v17 = vld [vmem:[%s3469_s1 + $0x188] sm:$0xff]  }
  0x57   : > { %2690 = vmatpush3.bf16.msra.mxu1 %v2854_v25  ;;  %2679 = vmatprep.subr.bf16.mxu0 %v2855_v31  ;;  %v1542_v25 = vrot.slane %v1540_v16, 2 }
  0x58   : > { %2691 = vmatprep.subr.bf16.mxu1 %v2856_v32 }
  0x59   : > { %v1546_v33 = vor.u32 %v1545_v26, %v1542_v25 }
  0x5a   : > { %2680 = vmatpush3.bf16.msra.mxu0 %v2855_v31  ;;  %v1753_v31 = vrot.slane %v3244_v52, 3 }
  0x5b   : > { %2692 = vmatpush3.bf16.msra.mxu1 %v2856_v32  ;;  %2697 = vmatprep.subr.bf16.mxu0 %v2860_v38  ;;  %v1754_v32 = vrot.slane %v3210_v35, 4  ;;  %v1547_v35 = vsel %vm1526_vm6, %v1537_v5, %v1546_v33 }
  0x5c   : > { %2709 = vmatprep.subr.bf16.mxu1 %v2861_v39 }
  0x5d   : > { %2682 = vmatmul.mubr.msk.bf16.vlgmr.msra.gmra.mxu0 %vm262_vm0, %v1084_v43  ;;  %v2886_v43 = vld [vmem:[%s3469_s1 + $0x1d0] sm:$0xff]  }
  0x5e   : > { %2694 = vmatmul.mubr.msk.bf16.vlgmr.msra.gmra.mxu1 %vm262_vm0, %v1201_v11  ;;  %2698 = vmatpush3.bf16.msra.mxu0 %v2860_v38  ;;  %v1732_v38 = vld [vmem:[%s2983_s30 + $0x18] sm:$0xf]  ;;  %v2887_v11 = vld [vmem:[%s3469_s1 + $0x1f0] sm:$0xff]  }
  0x5f   : > { %2710 = vmatpush3.bf16.msra.mxu1 %v2861_v39  ;;  %2699 = vmatprep.subr.bf16.mxu0 %v2862_v40  ;;  %v1752_v39 = vor.u32 %v1751_v30, %v1748_v29  ;;  %v2436_v42 = vcombine.low %v1732_v38, %v1732_v38  ;;  %v2452_v51 = vcombine.low %v3190_v23, %v1732_v38 }
  0x60   : > { %2711 = vmatprep.subr.bf16.mxu1 %v2863_v45  ;;  %2705 = vmatprep.mubr.msk.bf16.mxu0 %vm262_vm0, %v2372_v46 }
  0x61   : > { %2717 = vmatprep.mubr.msk.bf16.mxu1 %vm262_vm0, %v1417_v47  ;;  %v1758_v46 = vshrl.u32 %v2436_v42, 16  ;;  %v1761_v47 = vshll.u32 %v2436_v42, 16 }
  0x62   : > { %2700 = vmatpush3.bf16.msra.mxu0 %v2862_v40  ;;  %v1755_v40 = vor.u32 %v1754_v32, %v1753_v31 }
  0x63   : > { %2712 = vmatpush3.bf16.msra.mxu1 %v2863_v45  ;;  %2701 = vmatprep.subr.bf16.mxu0 %v2864_v50  ;;  %v1760_v10 = vrot.slane %v1758_v46, 3  ;;  %v1763_v49 = vrot.slane %v1761_v47, 4 }
  0x64   : > { %2713 = vmatprep.subr.bf16.mxu1 %v2865_v20  ;;  %v1756_v45 = vsel %vm632_vm4, %v1752_v39, %v1755_v40 }
  0x65   : > { %v1764_v21 = vor.u32 %v1763_v49, %v1760_v10 }
  0x66   : > { %2702 = vmatpush3.bf16.msra.mxu0 %v2864_v50  ;;  %v2890_v50 = vld [vmem:[%s3469_s1 + $0x1c0] sm:$0xff]  }
  0x67   : > { %2714 = vmatpush3.bf16.msra.mxu1 %v2865_v20  ;;  %2703 = vmatprep.subr.bf16.mxu0 %v2866_v55  ;;  %v2891_v20 = vld [vmem:[%s3469_s1 + $0x1e0] sm:$0xff]   ;;  %v1765_v52 = vsel %vm632_vm4, %v1755_v40, %v1764_v21 }
  0x68   : > { %2715 = vmatprep.subr.bf16.mxu1 %v2867_v56 }
  0x6a   : > { %2704 = vmatpush3.bf16.msra.mxu0 %v2866_v55 }
  0x6b   : > { %2716 = vmatpush3.bf16.msra.mxu1 %v2867_v56  ;;  %2721 = vmatprep.subr.bf16.mxu0 %v2873_v1 }
  0x6c   : > { %2733 = vmatprep.subr.bf16.mxu1 %v2874_v2 }
  0x6d   : > { %2706 = vmatmul.mubr.msk.bf16.vlgmr.msra.gmra.mxu0 %vm262_vm0, %v2373_v3 }
  0x6e   : > { %2718 = vmatmul.mubr.msk.bf16.vlgmr.msra.gmra.mxu1 %vm262_vm0, %v1425_v8  ;;  %2722 = vmatpush3.bf16.msra.mxu0 %v2873_v1 }
  0x6f   : > { %2734 = vmatpush3.bf16.msra.mxu1 %v2874_v2  ;;  %2723 = vmatprep.subr.bf16.mxu0 %v2875_v13 }
  0x70   : > { %2735 = vmatprep.subr.bf16.mxu1 %v2876_v22  ;;  %2729 = vmatprep.mubr.msk.bf16.mxu0 %vm262_vm0, %v1538_v58 }
  0x71   : > { %2741 = vmatprep.mubr.msk.bf16.mxu1 %vm262_vm0, %v1646_v15 }
  0x72   : > { %2724 = vmatpush3.bf16.msra.mxu0 %v2875_v13 }
  0x73   : > { %2736 = vmatpush3.bf16.msra.mxu1 %v2876_v22  ;;  %2725 = vmatprep.subr.bf16.mxu0 %v2877_v17 }
  0x74   : > { %2737 = vmatprep.subr.bf16.mxu1 %v2878_v18 }
  0x76   : > { %2726 = vmatpush3.bf16.msra.mxu0 %v2877_v17 }
  0x77   : > { %2738 = vmatpush3.bf16.msra.mxu1 %v2878_v18  ;;  %2727 = vmatprep.subr.bf16.mxu0 %v2879_v27 }
  0x78   : > { %2739 = vmatprep.subr.bf16.mxu1 %v2880_v28 }
  0x7a   : > { %2728 = vmatpush3.bf16.msra.mxu0 %v2879_v27  ;;  %v3352_v27 = vshrl.u32 %v1943_v24, 7 }
  0x7b   : > { %2740 = vmatpush3.bf16.msra.mxu1 %v2880_v28  ;;  %2745 = vmatprep.subr.bf16.mxu0 %v2884_v36 }
  0x7c   : > { %2757 = vmatprep.subr.bf16.mxu1 %v2885_v37  ;;  %v3359_v30 = vadd.s32 16, %v3352_v27  ;;  %v3374_v39 = vadd.s32 24, %v3352_v27  ;;  %v3377_v40 = vadd.s32 8, %v3352_v27 }
  0x7d   : > { %2730 = vmatmul.mubr.msk.bf16.vlgmr.msra.gmra.mxu0 %vm262_vm0, %v1547_v35 }
  0x7e   : > { %2742 = vmatmul.mubr.msk.bf16.vlgmr.msra.gmra.mxu1 %vm262_vm0, %v1648_v41  ;;  %2746 = vmatpush3.bf16.msra.mxu0 %v2884_v36  ;;  %v3366_v34 = vmul.u32.u64.low 2454267026, %v3359_v30  ;;  %v3367_v36 = vmul.u32.u64.high 2454267026, %v3359_v30, %v3366_v34  ;;  %v3392_v10 = vmul.u32.u64.low 2454267026, %v3377_v40  ;;  %v3393_v49 = vmul.u32.u64.high 2454267026, %v3377_v40, %v3392_v10 }
  0x7f   : > { %2758 = vmatpush3.bf16.msra.mxu1 %v2885_v37  ;;  %2747 = vmatprep.subr.bf16.mxu0 %v2886_v43 }
  0x80   : > { %2759 = vmatprep.subr.bf16.mxu1 %v2887_v11  ;;  %2753 = vmatprep.mubr.msk.bf16.mxu0 %vm262_vm0, %v1756_v45  ;;  %vm1986_vm7 = vc.u32 %v3366_v34, 2454267026  ;;  %vm1972_vm9 = vc.u32 %v3392_v10, 2454267026 }
  0x81   : > { %2765 = vmatprep.mubr.msk.bf16.mxu1 %vm262_vm0, %v2451_v44 }
  0x82   : > { %2748 = vmatpush3.bf16.msra.mxu0 %v2886_v43  ;;  %v3380_v42 = vmul.u32.u64.low 2454267026, %v3352_v27  ;;  %v3381_v43 = vmul.u32.u64.high 2454267026, %v3352_v27, %v3380_v42 }
  0x83   : > { %2760 = vmatpush3.bf16.msra.mxu1 %v2887_v11  ;;  %2749 = vmatprep.subr.bf16.mxu0 %v2888_v48 }
  0x84   : > { %2761 = vmatprep.subr.bf16.mxu1 %v2889_v14  ;;  %vm1958_vm8 = vc.u32 %v3380_v42, 2454267026 }
  0x86   : > { %2750 = vmatpush3.bf16.msra.mxu0 %v2888_v48 }
  0x87   : > { %2762 = vmatpush3.bf16.msra.mxu1 %v2889_v14  ;;  %2751 = vmatprep.subr.bf16.mxu0 %v2890_v50  ;;  %v3388_v48 = vmul.u32.u64.low 2454267026, %v3374_v39  ;;  %v3389_v14 = vmul.u32.u64.high 2454267026, %v3374_v39, %v3388_v48 }
  0x88   : > { %2763 = vmatprep.subr.bf16.mxu1 %v2891_v20 }
  0x89   : > { %vm2000_vm10 = vc.u32 %v3388_v48, 2454267026 }
  0x8a   : > { %2752 = vmatpush3.bf16.msra.mxu0 %v2890_v50 }
  0x8b   : > { %2764 = vmatpush3.bf16.msra.mxu1 %v2891_v20 }
  0x8d   : > { %2754 = vmatmul.mubr.msk.bf16.vlgmr.msra.gmra.mxu0 %vm262_vm0, %v1765_v52 }
  0x8e   : > { %2766 = vmatmul.mubr.msk.bf16.vlgmr.msra.gmra.mxu1 %vm262_vm0, %v2452_v51 }
  0xdd   : > { %v2587_v53 = vpop.f32.mrf.mxu0 }
  0xde   : > { %v2599_v54 = vpop.f32.mrf.mxu1 }
  0xdf   : > { %v303_v55 = vpop.f32.mrf.mxu0  ;;  %v389_v35 = vadd.f32 %v2599_v54, %v2587_v53 }
  0xe0   : > { %v380_v56 = vpop.f32.mrf.mxu1 }
  0xe1   : > { %v2588_v57 = vpop.f32.mrf.mxu0  ;;  %v381_v33 = vadd.f32 %v380_v56, %v303_v55  ;;  %v2921_v55 = vmov 0  }
  0xe2   : > { %v2600_v59 = vpop.f32.mrf.mxu1  ;;  %v1987_v56 = vsel %vm1986_vm7, 1, %v2921_v55  ;;  %v1973_v24 = vsel %vm1972_vm9, 1, %v2921_v55 }
  0xe3   : > { %v306_v60 = vpop.f32.mrf.mxu0  ;;  %v392_v11 = vadd.f32 %v2600_v59, %v2588_v57  ;;  %v1959_v57 = vsel %vm1958_vm8, 1, %v2921_v55 }
  0xe4   : > { %v383_v61 = vpop.f32.mrf.mxu1  ;;  %v1960_v34 = vadd.s32 %v3381_v43, %v1959_v57 }
  0xe5   : > { %v384_v44 = vadd.f32 %v383_v61, %v306_v60 }
  0xed   : > { %v2611_v62 = vpop.f32.mrf.mxu0 }
  0xee   : > { %v2623_v63 = vpop.f32.mrf.mxu1  ;;  %v495_v45 = vadd.f32 %v2611_v62, %v389_v35 }
  0xef   : > { %v478_v0 = vpop.f32.mrf.mxu0 }
  0xf0   : > { %v596_v23 = vpop.f32.mrf.mxu1  ;;  %v493_v41 = vadd.f32 %v478_v0, %v381_v33  ;;  %v613_v53 = vadd.f32 %v2623_v63, %v495_v45  ;;  %v1988_v33 = vadd.s32 %v3367_v36, %v1987_v56  ;;  %v2001_v63 = vsel %vm2000_vm10, 1, %v2921_v55 }
  0xf1   : > { %v2612_v1 = vpop.f32.mrf.mxu0  ;;  %v1961_v36 = vshrl.u32 %v1960_v34, 2  ;;  %vm1951_vm10 = vcmp.lt.s32.totalorder %v3374_v39, 28 }
  0xf2   : > { %v2624_v2 = vpop.f32.mrf.mxu1  ;;  %v611_v50 = vadd.f32 %v596_v23, %v493_v41  ;;  %v496_v20 = vadd.f32 %v2612_v1, %v392_v11 }
  0xf3   : > { %v481_v3 = vpop.f32.mrf.mxu0 }
  0xf4   : > { %v599_v4 = vpop.f32.mrf.mxu1  ;;  %v494_v21 = vadd.f32 %v481_v3, %v384_v44  ;;  %v614_v59 = vadd.f32 %v2624_v2, %v496_v20  ;;  %v1974_v2 = vadd.s32 %v3393_v49, %v1973_v24 }
  0xf6   : > { %v612_v60 = vadd.f32 %v599_v4, %v494_v21  ;;  %v1975_v45 = vshrl.u32 %v1974_v2, 2 }
  0xf8   : > { %v1976_v20 = vmul.u32 7, %v1975_v45 }
  0xfd   : > { %v2635_v5 = vpop.f32.mrf.mxu0 }
  0xfe   : > { %v3332_v6 = vpop.f32.mrf.mxu1  ;;  %v735_v61 = vadd.f32 %v2635_v5, %v613_v53 }
  0xff   : > { %v718_v7 = vpop.f32.mrf.mxu0 }
 0x100   : > { %v812_v8 = vpop.f32.mrf.mxu1  ;;  %v733_v54 = vadd.f32 %v718_v7, %v611_v50  ;;  %v829_v7 = vadd.f32 %v3332_v6, %v735_v61 }
 0x101   : > { %v2636_v12 = vpop.f32.mrf.mxu0 }
 0x102   : > { %v3334_v13 = vpop.f32.mrf.mxu1  ;;  %v827_v23 = vadd.f32 %v812_v8, %v733_v54  ;;  %v736_v1 = vadd.f32 %v2636_v12, %v614_v59  ;;  %v2002_v12 = vadd.s32 %v3389_v14, %v2001_v63  ;;  %v1962_v14 = vmul.u32 7, %v1961_v36 }
 0x103   : > { %v721_v22 = vpop.f32.mrf.mxu0 }
 0x104   : > { %v3336_v58 = vpop.f32.mrf.mxu1  ;;  %v734_v3 = vadd.f32 %v721_v22, %v612_v60  ;;  %v830_v4 = vadd.f32 %v3334_v13, %v736_v1  ;;  %v1989_v22 = vshrl.u32 %v1988_v33, 2  ;;  %v1963_v56 = vsub.s32 %v3352_v27, %v1962_v14 }
 0x106   : > { %v828_v5 = vadd.f32 %v3336_v58, %v734_v3  ;;  %v2003_v58 = vshrl.u32 %v2002_v12, 2  ;;  %v1990_v49 = vmul.u32 7, %v1989_v22  ;;  %vm2008_vm13 = vcmp.ne.s32.totalorder %v1963_v56, 0 }
 0x107   : > { %vm2012_vm14 = vcmp.lt.s32.totalorder %v1963_v56, 0 }
 0x108   : > { %v2004_v53 = vmul.u32 7, %v2003_v58  ;;  %v1991_v55 = vsub.s32 %v3359_v30, %v1990_v49  ;;  %vm3432_vm4 = vmand %vm2012_vm14, %vm2008_vm13  ;;  %v2922_v49 = vmov 0.0  }
 0x10a   : > { %vm2010_vm11 = vcmp.ne.s32.totalorder %v1991_v55, 0  ;;  %vm2014_vm12 = vcmp.lt.s32.totalorder %v1991_v55, 0 }
 0x10b   : > { %vm3427_vm1 = vmand %vm2014_vm12, %vm2010_vm11 }
 0x10d   : > { %v3338_v15 = vpop.f32.mrf.mxu0 }
 0x10e   : > { %v3340_v16 = vpop.f32.mrf.mxu1  ;;  %v959_v8 = vadd.f32 %v3338_v15, %v829_v7 }
 0x10f   : > { %v942_v9 = vpop.f32.mrf.mxu0 }
 0x110   : > { %v3342_v17 = vpop.f32.mrf.mxu1  ;;  %v957_v35 = vadd.f32 %v942_v9, %v827_v23  ;;  %v1060_v48 = vadd.f32 %v3340_v16, %v959_v8  ;;  %v2022_v23 = vadd.s32 7, %v1991_v55 }
 0x111   : > { %v3344_v18 = vpop.f32.mrf.mxu0 }
 0x112   : > { %v3346_v19 = vpop.f32.mrf.mxu1  ;;  %v1058_v43 = vadd.f32 %v3342_v17, %v957_v35  ;;  %v960_v11 = vadd.f32 %v3344_v18, %v830_v4  ;;  %v2026_v36 = vsel %vm3427_vm1, %v2022_v23, %v1991_v55 }
 0x113   : > { %v3348_v25 = vpop.f32.mrf.mxu0  ;;  %vm2030_vm9 = vcmp.lt.s32.totalorder %v2026_v36, 4 }
 0x114   : > { %v3350_v26 = vpop.f32.mrf.mxu1  ;;  %v958_v6 = vadd.f32 %v3348_v25, %v828_v5  ;;  %v1061_v50 = vadd.f32 %v3346_v19, %v960_v11 }
 0x116   : > { %v1059_v17 = vadd.f32 %v3350_v26, %v958_v6  ;;  %v1977_v26 = vsub.s32 %v3377_v40, %v1976_v20 }
 0x118   : > { %vm2009_vm15 = vcmp.ne.s32.totalorder %v1977_v26, 0  ;;  %vm2013_vm0 = vcmp.lt.s32.totalorder %v1977_v26, 0  ;;  %v2021_v1 = vadd.s32 7, %v1977_v26 }
 0x119   : > { %vm3438_vm5 = vmand %vm2013_vm0, %vm2009_vm15 }
 0x11a   : > { %v2025_v12 = vsel %vm3438_vm5, %v2021_v1, %v1977_v26 }
 0x11b   : > { %vm2029_vm8 = vcmp.lt.s32.totalorder %v2025_v12, 4 }
 0x11d   : > { %v3354_v28 = vpop.f32.mrf.mxu0 }
 0x11e   : > { %v3356_v29 = vpop.f32.mrf.mxu1  ;;  %v1166_v18 = vadd.f32 %v3354_v28, %v1060_v48 }
 0x11f   : > { %v3361_v31 = vpop.f32.mrf.mxu0 }
 0x120   : > { %v3363_v32 = vpop.f32.mrf.mxu1  ;;  %v1164_v13 = vadd.f32 %v3361_v31, %v1058_v43  ;;  %v1283_v19 = vadd.f32 %v3356_v29, %v1166_v18  ;;  %v2020_v29 = vadd.s32 7, %v1963_v56 }
 0x121   : > { %v3369_v37 = vpop.f32.mrf.mxu0 }
 0x122   : > { %v3371_v38 = vpop.f32.mrf.mxu1  ;;  %v1281_v25 = vadd.f32 %v3363_v32, %v1164_v13  ;;  %v1167_v21 = vadd.f32 %v3369_v37, %v1061_v50 }
 0x123   : > { %v3383_v46 = vpop.f32.mrf.mxu0 }
 0x124   : > { %v3385_v47 = vpop.f32.mrf.mxu1  ;;  %v1165_v16 = vadd.f32 %v3383_v46, %v1059_v17  ;;  %v1284_v28 = vadd.f32 %v3371_v38, %v1167_v21  ;;  %v2005_v46 = vsub.s32 %v3374_v39, %v2004_v53  ;;  %v2037_v17 = vsel %vm2029_vm8, 1.0, %v2922_v49 }
 0x126   : > { %v1282_v32 = vadd.f32 %v3385_v47, %v1165_v16  ;;  %vm2011_vm2 = vcmp.ne.s32.totalorder %v2005_v46, 0  ;;  %vm2015_vm3 = vcmp.lt.s32.totalorder %v2005_v46, 0 }
 0x127   : > { %vm3442_vm6 = vmand %vm2015_vm3, %vm2011_vm2 }
 0x12d   : > { %v3395_v51 = vpop.f32.mrf.mxu0 }
 0x12e   : > { %v3397_v52 = vpop.f32.mrf.mxu1  ;;  %v1377_v37 = vadd.f32 %v3395_v51, %v1283_v19 }
 0x12f   : > { %v1360_v62 = vpop.f32.mrf.mxu0 }
 0x130   : > { %v1490_v0 = vpop.f32.mrf.mxu1  ;;  %v1375_v57 = vadd.f32 %v1360_v62, %v1281_v25  ;;  %v1507_v38 = vadd.f32 %v3397_v52, %v1377_v37  ;;  %v2023_v52 = vadd.s32 7, %v2005_v46  ;;  %v2038_v25 = vsel %vm2030_vm9, 1.0, %v2922_v49 }
 0x131   : > { %v2708_v41 = vpop.f32.mrf.mxu0 }
 0x132   : > { %v2720_v42 = vpop.f32.mrf.mxu1  ;;  %v1505_v30 = vadd.f32 %v1490_v0, %v1375_v57  ;;  %v1378_v27 = vadd.f32 %v2708_v41, %v1284_v28  ;;  %v2027_v11 = vsel %vm3442_vm6, %v2023_v52, %v2005_v46 }
 0x133   : > { %v1363_v9 = vpop.f32.mrf.mxu0  ;;  %vm2031_vm11 = vcmp.lt.s32.totalorder %v2027_v11, 4 }
 0x134   : > { %v1493_v44 = vpop.f32.mrf.mxu1  ;;  %v1376_v61 = vadd.f32 %v1363_v9, %v1282_v32  ;;  %v1508_v3 = vadd.f32 %v2720_v42, %v1378_v27  ;;  %v2024_v42 = vsel %vm3432_vm4, %v2020_v29, %v1963_v56  ;;  %vm2035_vm12 = vmand %vm1951_vm10, %vm2031_vm11 }
 0x135   : > { %vm2028_vm7 = vcmp.lt.s32.totalorder %v2024_v42, 4 }
 0x136   : > { %v1506_v24 = vadd.f32 %v1493_v44, %v1376_v61  ;;  %v2036_v14 = vsel %vm2028_vm7, 1.0, %v2922_v49 }
 0x13d   : > { %v2731_v10 = vpop.f32.mrf.mxu0 }
 0x13e   : > { %v2743_v15 = vpop.f32.mrf.mxu1  ;;  %v1629_v33 = vadd.f32 %v2731_v10, %v1507_v38 }
 0x13f   : > { %v1612_v31 = vpop.f32.mrf.mxu0 }
 0x140   : > { %v1713_v54 = vpop.f32.mrf.mxu1  ;;  %v1627_v40 = vadd.f32 %v1612_v31, %v1505_v30  ;;  %v1730_v22 = vadd.f32 %v2743_v15, %v1629_v33  ;;  %v2039_v31 = vsel %vm2035_vm12, 1.0, %v2922_v49 }
 0x141   : > { %v2732_v59 = vpop.f32.mrf.mxu0 }
 0x142   : > { %v2744_v60 = vpop.f32.mrf.mxu1  ;;  %v1728_v41 = vadd.f32 %v1713_v54, %v1627_v40  ;;  %v1630_v2 = vadd.f32 %v2732_v59, %v1508_v3 }
 0x143   : > { %v1615_v51 = vpop.f32.mrf.mxu0 }
 0x144   : > { %v1716_v62 = vpop.f32.mrf.mxu1  ;;  %v1628_v4 = vadd.f32 %v1615_v51, %v1506_v24  ;;  %v1731_v44 = vadd.f32 %v2744_v60, %v1630_v2 }
 0x146   : > { %v1729_v45 = vadd.f32 %v1716_v62, %v1628_v4 }
 0x14d   : > { %v2755_v63 = vpop.f32.mrf.mxu0 }
 0x14e   : > { %v2767_v7 = vpop.f32.mrf.mxu1  ;;  %v1847_v48 = vadd.f32 %v2755_v63, %v1730_v22 }
 0x14f   : > { %v1830_v5 = vpop.f32.mrf.mxu0 }
 0x150   : > { %v1924_v8 = vpop.f32.mrf.mxu1  ;;  %v1845_v43 = vadd.f32 %v1830_v5, %v1728_v41  ;;  %v1941_v18 = vadd.f32 %v2767_v7, %v1847_v48 }
 0x151   : > { %v2756_v6 = vpop.f32.mrf.mxu0 }
 0x152   : > { %v2768_v9 = vpop.f32.mrf.mxu1  ;;  %v1939_v58 = vadd.f32 %v1924_v8, %v1845_v43  ;;  %v1848_v10 = vadd.f32 %v2756_v6, %v1731_v44  ;;  %v2042_v54 = vmul.f32 %v2038_v25, %v1941_v18 }
 0x153   : > { %v1833_v13 = vpop.f32.mrf.mxu0 }
 0x154   : > { %v1846_v15 = vadd.f32 %v1833_v13, %v1729_v45  ;;  %v1927_v50 = vpop.f32.mrf.mxu1  ;;  %v2040_v21 = vmul.f32 %v2036_v14, %v1939_v58  ;;  %v1942_v16 = vadd.f32 %v2768_v9, %v1848_v10 }
 0x156   : > { %v1940_v20 = vadd.f32 %v1927_v50, %v1846_v15  ;;  %v2043_v39 = vmul.f32 %v2039_v31, %v1942_v16 }
 0x158   : > { %v2041_v53 = vmul.f32 %v2037_v17, %v1940_v20 }
 0x15a   : > { %v2044_v55 = vadd.f32 %v2041_v53, %v2040_v21 }
 0x15c   : > { %v2045_v56 = vadd.f32 %v2044_v55, %v2042_v54 }
 0x15e   : > { %v2046_v19 = vadd.f32 %v2045_v56, %v2043_v39 }
 0x160   : > { %v2047_v57 = vrot.slane %v2046_v19, 4 }
 0x162   : > { %v2048_v26 = vadd.f32 %v2047_v57, %v2046_v19 }
 0x164   : > { %v2049_v28 = vrot.slane %v2048_v26, 2 }
 0x166   : > { %v2050_v32 = vadd.f32 %v2049_v28, %v2048_v26 }
 0x168   : > { %v2051_v37 = vrot.slane %v2050_v32, 1 }
 0x16a   : > { %v2052_v46 = vadd.f32 %v2051_v37, %v2050_v32 }
 0x16c   : > { %v2053_v59 = vmul.f32 0.0625, %v2052_v46 }
 0x16e   : > { %v2054_v60 = vsub.f32 %v1939_v58, %v2053_v59  ;;  %v2055_v30 = vsub.f32 %v1940_v20, %v2053_v59  ;;  %v2056_v27 = vsub.f32 %v1941_v18, %v2053_v59  ;;  %v2057_v61 = vsub.f32 %v1942_v16, %v2053_v59 }
 0x170   : > { %v2058_v29 = vmul.f32 %v2054_v60, %v2036_v14  ;;  %v2059_v38 = vmul.f32 %v2055_v30, %v2037_v17  ;;  %v2060_v40 = vmul.f32 %v2056_v27, %v2038_v25  ;;  %v2061_v47 = vmul.f32 %v2057_v61, %v2039_v31 }
 0x172   : > { %v2062_v51 = vmul.f32 %v2058_v29, %v2058_v29  ;;  %v2063_v62 = vmul.f32 %v2059_v38, %v2059_v38  ;;  %v2064_v23 = vmul.f32 %v2060_v40, %v2060_v40  ;;  %v2065_v1 = vmul.f32 %v2061_v47, %v2061_v47 }
 0x174   : > { %v2066_v0 = vadd.f32 %v2063_v62, %v2062_v51 }
 0x176   : > { %v2067_v3 = vadd.f32 %v2066_v0, %v2064_v23 }
 0x178   : > { %v2068_v24 = vadd.f32 %v2067_v3, %v2065_v1 }
 0x17a   : > { %v2069_v33 = vrot.slane %v2068_v24, 4 }
 0x17c   : > { %v2070_v52 = vadd.f32 %v2069_v33, %v2068_v24 }
 0x17e   : > { %v2071_v34 = vrot.slane %v2070_v52, 2 }
 0x180   : > { %v2072_v63 = vadd.f32 %v2071_v34, %v2070_v52 }
 0x182   : > { %v2073_v7 = vrot.slane %v2072_v63, 1 }
 0x184   : > { %v2074_v35 = vadd.f32 %v2073_v7, %v2072_v63 }
 0x186   : > { %v2075_v41 = vmul.f32 0.0625, %v2074_v35 }
 0x188   : > { %v2076_v2 = vadd.f32 1e-05, %v2075_v41 }
 0x18a   : > { %2895 = vrsqrt.f32 %v2076_v2 }
 0x197   : > { %v2896_v4 = vpop.eup %2895 }
 0x198   : > { %v2078_v42 = vmul.f32 %v2896_v4, %v2058_v29  ;;  %v2079_v5 = vmul.f32 %v2896_v4, %v2059_v38  ;;  %v2080_v8 = vmul.f32 %v2896_v4, %v2060_v40  ;;  %v2081_v12 = vmul.f32 %v2896_v4, %v2061_v47 }
 0x19a   : > { %vm2082_vm13 = vcmp.ge.f32.partialorder %v2078_v42, 0.0  ;;  %vm2083_vm14 = vcmp.ge.f32.partialorder %v2079_v5, 0.0  ;;  %vm2084_vm15 = vcmp.ge.f32.partialorder %v2080_v8, 0.0  ;;  %vm2085_vm0 = vcmp.ge.f32.partialorder %v2081_v12, 0.0 }
 0x19b   : > { %v2086_v22 = vmul.f32 0.2, %v2078_v42  ;;  %v2087_v36 = vmul.f32 0.2, %v2079_v5  ;;  %v2088_v43 = vmul.f32 0.2, %v2080_v8 }
 0x19c   : > { %v2089_v11 = vmul.f32 0.2, %v2081_v12 }
 0x19d   : > { %v2090_v6 = vsel %vm2082_vm13, %v2078_v42, %v2086_v22  ;;  %v2091_v9 = vsel %vm2083_vm14, %v2079_v5, %v2087_v36  ;;  %v2092_v44 = vsel %vm2084_vm15, %v2080_v8, %v2088_v43 }
 0x19e   : > { %v2093_v45 = vsel %vm2085_vm0, %v2081_v12, %v2089_v11  ;;  %v2473_v48 = vpack.c.bf16 %v2091_v9, %v2090_v6 }
 0x19f   : > { %v2478_v13 = vpack.c.bf16 %v2093_v45, %v2092_v44 }
 0x1a0   : > { %2474 = vst [vmem:[%s180_s4] sm:$0xff] %v2473_v48  }
 0x1a1   : > { %2480 = vst [vmem:[%s180_s4 + $0x8] sm:$0xff] %v2478_v13  }
 0x1a2 PF: > { %s12_s11 = sadd.s32 1, %s2919_s11   ;;  %s3479_s9 = smov %s2915_s10 }
 0x1a3   : > { %p9_p5 = scmp.ge.s32.totalorder %s12_s11, 4   ;;  %s3480_s10 = smov %s3482_s12 }
 0x1a5   :  { %11 = sbr.rel (!%p9_p5) target bundleno = 2 (0x2), region = 76 }

// kernel: nlayer_discriminator_forward.9
= control target key start
LH: loop header
LB: loop body
LE: loop exit
PB: predicated region body
PF: predicated region fallthrough
CT: control target
= control target key end

     0   :  { %s4096_s12 = smov 0   ;;  %s4098_s13 = smov 0   ;;  %s5080_s0 = inlined_call_operand.vmem [shape: bf16[2,80,128], index: 0, kind: input, shape index: {}]   ;;  %s5081_s1 = inlined_call_operand.vmem [shape: bf16[16,128,8], index: 1, kind: input, shape index: {}]   ;;  %s5082_s2 = inlined_call_operand.vmem [shape: f32[1,8], index: 2, kind: input, shape index: {}]   ;;  %s5083_s3 = inlined_call_operand.vmem [shape: f32[2,48,8], index: 3, kind: output, shape index: {}]  }
   0x1   :  { %s4100_s14 = smov 0  }
   0x2 LB: > { %s25_s15 = sadd.s32 1, %s4068_s13  ;;  %p2830_p0 = scmp.ge.s32.totalorder %s4072_s14, 1  ;;  %s4072_s14 = sphi %s4100_s14, %s13_s14   ;;  %s4068_s13 = sphi %s4098_s13, %s5085_s13   ;;  %s4064_s12 = sphi %s4096_s12, %s5084_s12  }
   0x3   : > { %p27_p1 = scmp.ge.s32.totalorder %s25_s15, 2  ;;  %p168_p2 = scmp.lt.s32.totalorder %s4072_s14, 3 }
   0x5   : > { %s5087_s15 = smov (%p27_p1, %s25_s15), 0  ;;  %p169_p3 = pnand %p2830_p0, %p168_p2 }
   0x6   : > { %p202_p4 = scmp.lt.s32.totalorder (!%p169_p3), %s4064_s12, 1 }
   0x7   : > { %172 = sbr.rel (%p169_p3) target bundleno = 489 (0x1e9), region = 32 }
   0xc   : > { %v3889_v0 = vld [vmem:[%s5081_s1 + $0x78] sm:$0xff]   ;;  %v4074_v1 = vmov 0.0   ;;  %v3891_v3 = vld [vmem:[%s5081_s1 + $0x70] sm:$0xff]   ;;  %vm4075_vm0 = vmmov 0   ;;  %s5089_s12 = smov (!%p202_p4, %s4064_s12), 1  ;;  %v3893_v5 = vld [vmem:[%s5081_s1 + $0x68] sm:$0xff]  }
   0xd   : > { %3413 = vmatprep.subr.bf16.mxu0 %v4074_v1  ;;  %3441 = vmatprep.subr.bf16.mxu1 %v4074_v1  ;;  %v3890_v2 = vld [vmem:[%s5081_s1 + $0x38] sm:$0xff]   ;;  %v3892_v4 = vld [vmem:[%s5081_s1 + $0x30] sm:$0xff]   ;;  %v3894_v6 = vld [vmem:[%s5081_s1 + $0x28] sm:$0xff]   ;;  %s3861_s28 = smul.u32 40, %s5089_s12  ;;  %vm281_vm1 = vsmask.f32 7424 }
   0xe   : > { %3414 = vmatpush3.bf16.msra.mxu0 %v3889_v0  ;;  %3429 = vmatprep.mubr.msk.bf16.mxu0 %vm4075_vm0, %v4074_v1  ;;  %v3895_v7 = vld [vmem:[%s5081_s1 + $0x60] sm:$0xff]   ;;  %v3897_v9 = vld [vmem:[%s5081_s1 + $0x58] sm:$0xff]   ;;  %v3899_v17 = vld [vmem:[%s5081_s1 + $0x50] sm:$0xff]   ;;  %vm547_vm2 = vcmask 1046528   ;;  %vm690_vm3 = vsmask.f32 6400 }
   0xf   : > { %3442 = vmatpush3.bf16.msra.mxu1 %v3890_v2  ;;  %3415 = vmatprep.subr.bf16.mxu0 %v4074_v1  ;;  %v3896_v8 = vld [vmem:[%s5081_s1 + $0x20] sm:$0xff]   ;;  %s4156_s8 = scalar_lea.vmem %s5080_s0, %s3861_s28  ;;  %v3898_v10 = vld [vmem:[%s5081_s1 + $0x18] sm:$0xff]   ;;  %v3900_v19 = vld [vmem:[%s5081_s1 + $0x10] sm:$0xff]   ;;  %vm2712_vm4 = vcmask 64512  }
  0x10   : > { %3443 = vmatprep.subr.bf16.mxu1 %v4074_v1  ;;  %3457 = vmatprep.mubr.msk.bf16.mxu1 %vm4075_vm0, %v4074_v1  ;;  %v223_v11 = vld [vmem:[%s4156_s8] sm:$0xf]  ;;  %v4168_v12 = vld [vmem:[%s4156_s8 + $0x4] sm:$0xf]  ;;  %v4171_v13 = vld [vmem:[%s4156_s8 + $0x8] sm:$0xf] }
  0x11   : > { %v4174_v14 = vld [vmem:[%s4156_s8 + $0xc] sm:$0xf]  ;;  %v2849_v15 = vcombine.low %v223_v11, %v4168_v12  ;;  %v2935_v16 = vcombine.low %v4168_v12, %v4171_v13  ;;  %v4201_v26 = vld [vmem:[%s4156_s8 + $0x10] sm:$0xf]  ;;  %v4204_v27 = vld [vmem:[%s4156_s8 + $0x14] sm:$0xf] }
  0x12   : > { %3416 = vmatpush3.bf16.msra.mxu0 %v3891_v3  ;;  %v4184_v18 = vcombine.low %v4171_v13, %v4174_v14  ;;  %v3901_v21 = vld [vmem:[%s5081_s1 + $0x48] sm:$0xff]   ;;  %v3903_v28 = vld [vmem:[%s5081_s1 + $0x40] sm:$0xff]   ;;  %v4216_v32 = vcombine.low %v4201_v26, %v4204_v27  ;;  %v2936_v33 = vcombine.low %v4174_v14, %v4201_v26  ;;  %v3907_v34 = vld [vmem:[%s5081_s1 + $0xb8] sm:$0xff]  }
  0x13   : > { %3444 = vmatpush3.bf16.msra.mxu1 %v3892_v4  ;;  %3417 = vmatprep.subr.bf16.mxu0 %v4074_v1  ;;  %v285_v20 = vshll.u32 %v2849_v15, 16  ;;  %v283_v22 = vshrl.u32 %v2849_v15, 16  ;;  %v3902_v25 = vld [vmem:[%s5081_s1 + $0x8] sm:$0xff]   ;;  %v3904_v29 = vld [vmem:[%s5081_s1] sm:$0xff]   ;;  %v3908_v38 = vld [vmem:[%s5081_s1 + $0xf8] sm:$0xff]  }
  0x14   : > { %3445 = vmatprep.subr.bf16.mxu1 %v4074_v1  ;;  %v290_v24 = vshll.u32 %v4184_v18, 16  ;;  %v294_v36 = vshrl.u32 %v4184_v18, 16  ;;  %v298_v37 = vshll.u32 %v4216_v32, 16  ;;  %v4234_v39 = vld [vmem:[%s4156_s8 + $0x18] ss:$0 sps:$4 sm:$0x11]  }
  0x15   : > { %v287_v23 = vrot.slane %v285_v20, 1  ;;  %v3909_v40 = vld [vmem:[%s5081_s1 + $0xb0] sm:$0xff]   ;;  %v3911_v44 = vld [vmem:[%s5081_s1 + $0xa8] sm:$0xff]   ;;  %v302_v46 = vshrl.u32 %v4216_v32, 16  ;;  %v306_v47 = vshll.u32 %v4234_v39, 16  ;;  %v3914_v49 = vld [vmem:[%s5081_s1 + $0xa0] sm:$0xff]  }
  0x16   : > { %3418 = vmatpush3.bf16.msra.mxu0 %v3893_v5  ;;  %v292_v31 = vrot.slane %v290_v24, 1  ;;  %v300_v42 = vrot.slane %v298_v37, 1  ;;  %v3910_v43 = vld [vmem:[%s5081_s1 + $0xf0] sm:$0xff]   ;;  %v3912_v48 = vld [vmem:[%s5081_s1 + $0xe8] sm:$0xff]   ;;  %v3915_v52 = vld [vmem:[%s5081_s1 + $0xe0] sm:$0xff]   ;;  %v700_v62 = vrot.slane %v290_v24, 2 }
  0x17   : > { %3446 = vmatpush3.bf16.msra.mxu1 %v3894_v6  ;;  %3419 = vmatprep.subr.bf16.mxu0 %v4074_v1  ;;  %v288_v30 = vor.u32 %v287_v23, %v283_v22  ;;  %v308_v51 = vrot.slane %v306_v47, 1  ;;  %v526_v53 = vld [vmem:[%s4156_s8] sm:$0xe]  ;;  %v3916_v54 = vld [vmem:[%s5081_s1 + $0x98] sm:$0xff]   ;;  %v3919_v58 = vld [vmem:[%s5081_s1 + $0x90] sm:$0xff]   ;;  %v699_v63 = vrot.slane %v294_v36, 1 }
  0x18   : > { %3447 = vmatprep.subr.bf16.mxu1 %v4074_v1  ;;  %v296_v41 = vor.u32 %v294_v36, %v292_v31  ;;  %v304_v50 = vor.u32 %v302_v46, %v300_v42  ;;  %v3917_v56 = vld [vmem:[%s5081_s1 + $0xd8] sm:$0xff]   ;;  %v2885_v57 = vcombine.low %v526_v53, %v4168_v12  ;;  %v3920_v59 = vld [vmem:[%s5081_s1 + $0xd0] sm:$0xff]   ;;  %v3921_v0 = vld [vmem:[%s5081_s1 + $0x88] sm:$0xff]   ;;  %v704_v22 = vrot.slane %v298_v37, 2 }
  0x19   : > { %v293_v35 = vsel %vm281_vm1, %v288_v30, %v292_v31  ;;  %v3922_v2 = vld [vmem:[%s5081_s1 + $0xc8] sm:$0xff]   ;;  %v4331_v20 = vld [vmem:[%s4156_s8 + $0x14] sm:$0xf]  ;;  %v3957_v26 = vld [vmem:[%s5081_s1 + $0x198] sm:$0xff]  }
  0x1a   : > { %3420 = vmatpush3.bf16.msra.mxu0 %v3895_v7  ;;  %v301_v45 = vsel %vm281_vm1, %v296_v41, %v300_v42  ;;  %v309_v55 = vsel %vm281_vm1, %v304_v50, %v308_v51  ;;  %v692_v60 = vshrl.u32 %v2885_v57, 16  ;;  %v695_v61 = vshll.u32 %v2885_v57, 16  ;;  %v4309_v3 = vld [vmem:[%s4156_s8 + $0x8] sm:$0xf]  ;;  %v4312_v4 = vld [vmem:[%s4156_s8 + $0xc] sm:$0xf] }
  0x1b   : > { %3448 = vmatpush3.bf16.msra.mxu1 %v3896_v8  ;;  %3421 = vmatprep.subr.bf16.mxu0 %v4074_v1  ;;  %v3040_v7 = vcombine.low %v4309_v3, %v4312_v4  ;;  %v3923_v8 = vld [vmem:[%s5081_s1 + $0x80] sm:$0xff]   ;;  %v548_v11 = vrot.slane %v2885_v57, 1  ;;  %v3928_v30 = vld [vmem:[%s5081_s1 + $0x130] sm:$0xff]   ;;  %v3935_v50 = vld [vmem:[%s5081_s1 + $0x158] sm:$0xff]  }
  0x1c   : > { %3449 = vmatprep.subr.bf16.mxu1 %v4074_v1  ;;  %v694_v5 = vrot.slane %v692_v60, 1  ;;  %v697_v6 = vrot.slane %v695_v61, 2  ;;  %v3929_v31 = vld [vmem:[%s5081_s1 + $0x170] sm:$0xff]   ;;  %v3939_v57 = vld [vmem:[%s5081_s1 + $0x108] sm:$0xff]  }
  0x1d   : > { %v3937_v53 = vld [vmem:[%s5081_s1 + $0x110] sm:$0xff]   ;;  %v3951_v13 = vld [vmem:[%s5081_s1 + $0x1a8] sm:$0xff]  }
  0x1e   : > { %3422 = vmatpush3.bf16.msra.mxu0 %v3897_v9  ;;  %v549_v9 = vrot.slane %v4184_v18, 1 }
  0x1f   : > { %3450 = vmatpush3.bf16.msra.mxu1 %v3898_v10  ;;  %3423 = vmatprep.subr.bf16.mxu0 %v4074_v1  ;;  %v3924_v10 = vld [vmem:[%s5081_s1 + $0xc0] sm:$0xff]  }
  0x20   : > { %3451 = vmatprep.subr.bf16.mxu1 %v4074_v1  ;;  %v550_v24 = vsel %vm547_vm2, %v548_v11, %v549_v9 }
  0x22   : > { %3424 = vmatpush3.bf16.msra.mxu0 %v3899_v17  ;;  %v701_v17 = vor.u32 %v700_v62, %v699_v63 }
  0x23   : > { %3452 = vmatpush3.bf16.msra.mxu1 %v3900_v19  ;;  %3425 = vmatprep.subr.bf16.mxu0 %v4074_v1  ;;  %v4327_v19 = vld [vmem:[%s4156_s8 + $0x10] sm:$0xf] }
  0x24   : > { %3453 = vmatprep.subr.bf16.mxu1 %v4074_v1  ;;  %v3041_v23 = vcombine.low %v4327_v19, %v4331_v20 }
  0x26   : > { %3426 = vmatpush3.bf16.msra.mxu0 %v3901_v21  ;;  %v703_v21 = vrot.slane %v302_v46, 1  ;;  %v3933_v46 = vld [vmem:[%s5081_s1 + $0x160] sm:$0xff]  }
  0x27   : > { %3454 = vmatpush3.bf16.msra.mxu1 %v3902_v25  ;;  %3427 = vmatprep.subr.bf16.mxu0 %v4074_v1 }
  0x28   : > { %3455 = vmatprep.subr.bf16.mxu1 %v4074_v1 }
  0x2a   : > { %3428 = vmatpush3.bf16.msra.mxu0 %v3903_v28  ;;  %v3927_v28 = vld [vmem:[%s5081_s1 + $0x178] sm:$0xff]  }
  0x2b   : > { %3456 = vmatpush3.bf16.msra.mxu1 %v3904_v29  ;;  %3469 = vmatprep.subr.bf16.mxu0 %v4074_v1  ;;  %v3936_v29 = vld [vmem:[%s4156_s8 + $0x18] ss:$0 sps:$4 sm:$0x33]  }
  0x2c   : > { %3497 = vmatprep.subr.bf16.mxu1 %v4074_v1  ;;  %v708_v36 = vshrl.u32 %v3936_v29, 16  ;;  %v711_v37 = vshll.u32 %v3936_v29, 16 }
  0x2d   : > { %3430 = vmatmul.mubr.bf16.vlgmr.msra.gmra.mxu0 %v293_v35  ;;  %v705_v35 = vor.u32 %v704_v22, %v703_v21  ;;  %v3948_v21 = vld [vmem:[%s5081_s1 + $0x1b0] sm:$0xff]  }
  0x2e   : > { %3458 = vmatmul.mubr.bf16.vlgmr.msra.gmra.mxu1 %v2849_v15  ;;  %3470 = vmatpush3.bf16.msra.mxu0 %v3907_v34  ;;  %v698_v15 = vor.u32 %v697_v6, %v694_v5  ;;  %v551_v34 = vrot.slane %v4216_v32, 1  ;;  %v710_v42 = vrot.slane %v708_v36, 1  ;;  %v3954_v36 = vld [vmem:[%s5081_s1 + $0x1a0] sm:$0xff]  }
  0x2f   : > { %3498 = vmatpush3.bf16.msra.mxu1 %v3908_v38  ;;  %3471 = vmatprep.subr.bf16.mxu0 %v4074_v1  ;;  %v3930_v38 = vld [vmem:[%s5081_s1 + $0x128] sm:$0xff]   ;;  %v706_v41 = vsel %vm690_vm3, %v701_v17, %v705_v35 }
  0x30   : > { %3499 = vmatprep.subr.bf16.mxu1 %v4074_v1  ;;  %3433 = vmatprep.mubr.msk.bf16.mxu0 %vm4075_vm0, %v4074_v1  ;;  %v702_v25 = vsel %vm690_vm3, %v698_v15, %v701_v17  ;;  %v4449_v15 = vld [vmem:[%s4156_s8 + $0xc] sm:$0xf] }
  0x31   : > { %3461 = vmatprep.mubr.msk.bf16.mxu1 %vm4075_vm0, %v4074_v1 }
  0x32   : > { %3472 = vmatpush3.bf16.msra.mxu0 %v3909_v40  ;;  %v3931_v40 = vld [vmem:[%s5081_s1 + $0x168] sm:$0xff]  }
  0x33   : > { %3500 = vmatpush3.bf16.msra.mxu1 %v3910_v43  ;;  %3473 = vmatprep.subr.bf16.mxu0 %v4074_v1  ;;  %v713_v43 = vrot.slane %v711_v37, 2 }
  0x34   : > { %3501 = vmatprep.subr.bf16.mxu1 %v4074_v1 }
  0x35   : > { %3434 = vmatmul.mubr.bf16.gmra.mxu0 %v301_v45  ;;  %v553_v45 = vrot.slane %v4234_v39, 1  ;;  %v714_v47 = vor.u32 %v713_v43, %v710_v42  ;;  %v3934_v39 = vld [vmem:[%s5081_s1 + $0x118] sm:$0xff]   ;;  %v1151_v42 = vld [vmem:[%s4156_s8 + $0x4] sm:$0xe] }
  0x36   : > { %3474 = vmatpush3.bf16.msra.mxu0 %v3911_v44  ;;  %3462 = vmatmul.mubr.bf16.gmra.mxu1 %v4184_v18  ;;  %v3926_v18 = vld [vmem:[%s5081_s1 + $0x138] sm:$0xff]   ;;  %v3932_v44 = vld [vmem:[%s5081_s1 + $0x120] sm:$0xff]  }
  0x37   : > { %3502 = vmatpush3.bf16.msra.mxu1 %v3912_v48  ;;  %3475 = vmatprep.subr.bf16.mxu0 %v4074_v1  ;;  %v967_v48 = vld [vmem:[%s4156_s8 + $0x4] sm:$0xf]  ;;  %v715_v51 = vsel %vm690_vm3, %v705_v35, %v714_v47  ;;  %v4495_v35 = vld [vmem:[%s4156_s8 + $0x18] sm:$0xf] }
  0x38   : > { %3503 = vmatprep.subr.bf16.mxu1 %v4074_v1  ;;  %3437 = vmatprep.mubr.msk.bf16.mxu0 %vm4075_vm0, %v4074_v1  ;;  %v3958_v43 = vld [vmem:[%s5081_s1 + $0x1d8] sm:$0xff]  }
  0x39   : > { %3465 = vmatprep.mubr.msk.bf16.mxu1 %vm4075_vm0, %v4074_v1 }
  0x3a   : > { %3476 = vmatpush3.bf16.msra.mxu0 %v3914_v49  ;;  %v554_v49 = vsel %vm547_vm2, %v551_v34, %v553_v45  ;;  %v3961_v45 = vld [vmem:[%s5081_s1 + $0x1d0] sm:$0xff]  }
  0x3b   : > { %3504 = vmatpush3.bf16.msra.mxu1 %v3915_v52  ;;  %3477 = vmatprep.subr.bf16.mxu0 %v4074_v1  ;;  %v2962_v52 = vcombine.low %v967_v48, %v4309_v3 }
  0x3c   : > { %3505 = vmatprep.subr.bf16.mxu1 %v4074_v1 }
  0x3d   : > { %3438 = vmatmul.mubr.bf16.gmra.mxu0 %v309_v55  ;;  %v4407_v55 = vcombine.low %v4312_v4, %v4327_v19  ;;  %v1010_v60 = vshrl.u32 %v2962_v52, 16  ;;  %v3993_v4 = vld [vmem:[%s5081_s1 + $0x2e8] sm:$0xff]  }
  0x3e   : > { %3478 = vmatpush3.bf16.msra.mxu0 %v3916_v54  ;;  %3466 = vmatmul.mubr.bf16.gmra.mxu1 %v4216_v32  ;;  %v552_v32 = vsel %vm547_vm2, %v549_v9, %v551_v34  ;;  %v3938_v54 = vld [vmem:[%s5081_s1 + $0x150] sm:$0xff]   ;;  %v3947_v9 = vld [vmem:[%s5081_s1 + $0x1f8] sm:$0xff]   ;;  %v1774_v19 = vld [vmem:[%s4156_s8 + $0x8] sm:$0xe] }
  0x3f   : > { %3506 = vmatpush3.bf16.msra.mxu1 %v3917_v56  ;;  %3479 = vmatprep.subr.bf16.mxu0 %v4074_v1  ;;  %v1012_v56 = vshll.u32 %v2962_v52, 16  ;;  %v1017_v62 = vshll.u32 %v4407_v55, 16  ;;  %v4492_v34 = vld [vmem:[%s4156_s8 + $0x14] sm:$0xf] }
  0x40   : > { %3507 = vmatprep.subr.bf16.mxu1 %v4074_v1  ;;  %3485 = vmatprep.mubr.msk.bf16.mxu0 %vm4075_vm0, %v4074_v1  ;;  %v3146_v37 = vcombine.low %v4492_v34, %v4495_v35 }
  0x41   : > { %3513 = vmatprep.mubr.msk.bf16.mxu1 %vm4075_vm0, %v4074_v1  ;;  %v1014_v61 = vrot.slane %v1012_v56, 1  ;;  %v1019_v6 = vrot.slane %v1017_v62, 1 }
  0x42   : > { %3480 = vmatpush3.bf16.msra.mxu0 %v3919_v58  ;;  %v4418_v58 = vld [vmem:[%s4156_s8 + $0x18] sm:$0xf] }
  0x43   : > { %3508 = vmatpush3.bf16.msra.mxu1 %v3920_v59  ;;  %3481 = vmatprep.subr.bf16.mxu0 %v4074_v1  ;;  %v3940_v59 = vld [vmem:[%s5081_s1 + $0x148] sm:$0xff]   ;;  %v4428_v63 = vcombine.low %v4331_v20, %v4418_v58  ;;  %v1015_v5 = vor.u32 %v1014_v61, %v1010_v60  ;;  %v3977_v61 = vld [vmem:[%s4156_s8 + $0x1c] ss:$0 sps:$4 sm:$0x33]  }
  0x44   : > { %3509 = vmatprep.subr.bf16.mxu1 %v4074_v1 }
  0x45   : > { %v1025_v11 = vshll.u32 %v4428_v63, 16  ;;  %v1020_v17 = vsel %vm281_vm1, %v1015_v5, %v1019_v6  ;;  %v1029_v29 = vshrl.u32 %v4428_v63, 16 }
  0x46   : > { %3482 = vmatpush3.bf16.msra.mxu0 %v3921_v0  ;;  %v3941_v0 = vld [vmem:[%s5081_s1 + $0x100] sm:$0xff]  }
  0x47   : > { %3510 = vmatpush3.bf16.msra.mxu1 %v3922_v2  ;;  %3483 = vmatprep.subr.bf16.mxu0 %v4074_v1  ;;  %v3942_v2 = vld [vmem:[%s5081_s1 + $0x140] sm:$0xff]   ;;  %v1326_v5 = vrot.slane %v1029_v29, 1 }
  0x48   : > { %3511 = vmatprep.subr.bf16.mxu1 %v4074_v1 }
  0x4a   : > { %3484 = vmatpush3.bf16.msra.mxu0 %v3923_v8  ;;  %v3946_v8 = vld [vmem:[%s5081_s1 + $0x1b8] sm:$0xff]  }
  0x4b   : > { %3512 = vmatpush3.bf16.msra.mxu1 %v3924_v10  ;;  %3525 = vmatprep.subr.bf16.mxu0 %v4074_v1  ;;  %v1021_v10 = vshrl.u32 %v4407_v55, 16 }
  0x4c   : > { %3553 = vmatprep.subr.bf16.mxu1 %v4074_v1 }
  0x4d   : > { %3486 = vmatmul.mubr.bf16.vlgmr.msra.gmra.mxu0 %v550_v24  ;;  %v3949_v24 = vld [vmem:[%s5081_s1 + $0x1f0] sm:$0xff]   ;;  %v1023_v12 = vor.u32 %v1021_v10, %v1019_v6  ;;  %v1322_v48 = vrot.slane %v1021_v10, 1  ;;  %v1327_v6 = vrot.slane %v1025_v11, 2 }
  0x4e   : > { %3514 = vmatmul.mubr.bf16.vlgmr.msra.gmra.mxu1 %v702_v25  ;;  %3526 = vmatpush3.bf16.msra.mxu0 %v3926_v18  ;;  %v4454_v18 = vld [vmem:[%s4156_s8 + $0x10] sm:$0xf]  ;;  %v1027_v25 = vrot.slane %v1025_v11, 1 }
  0x4f   : > { %3554 = vmatpush3.bf16.msra.mxu1 %v3927_v28  ;;  %3527 = vmatprep.subr.bf16.mxu0 %v4074_v1  ;;  %v3145_v22 = vcombine.low %v4449_v15, %v4454_v18  ;;  %v4471_v28 = vld [vmem:[%s4156_s8 + $0x1c] ss:$0 sps:$4 sm:$0x11]   ;;  %v3970_v10 = vld [vmem:[%s5081_s1 + $0x270] sm:$0xff]   ;;  %v1328_v11 = vor.u32 %v1327_v6, %v1326_v5  ;;  %v3995_v6 = vld [vmem:[%s5081_s1 + $0x2a0] sm:$0xff]  }
  0x50   : > { %3555 = vmatprep.subr.bf16.mxu1 %v4074_v1  ;;  %3489 = vmatprep.mubr.msk.bf16.mxu0 %vm4075_vm0, %v4074_v1 }
  0x51   : > { %3517 = vmatprep.mubr.msk.bf16.mxu1 %vm4075_vm0, %v4074_v1 }
  0x52   : > { %3528 = vmatpush3.bf16.msra.mxu0 %v3928_v30  ;;  %v1033_v30 = vshll.u32 %v4471_v28, 16 }
  0x53   : > { %3556 = vmatpush3.bf16.msra.mxu1 %v3929_v31  ;;  %3529 = vmatprep.subr.bf16.mxu0 %v4074_v1  ;;  %v1028_v31 = vsel %vm281_vm1, %v1023_v12, %v1027_v25 }
  0x54   : > { %3557 = vmatprep.subr.bf16.mxu1 %v4074_v1 }
  0x55   : > { %3490 = vmatmul.mubr.bf16.gmra.mxu0 %v552_v32  ;;  %v3955_v32 = vld [vmem:[%s5081_s1 + $0x1e0] sm:$0xff]  }
  0x56   : > { %3530 = vmatpush3.bf16.msra.mxu0 %v3930_v38  ;;  %3518 = vmatmul.mubr.bf16.gmra.mxu1 %v706_v41  ;;  %v830_v38 = vld [vmem:[%s4156_s8 + $0x18] sm:$0xf]  ;;  %v1031_v41 = vor.u32 %v1029_v29, %v1027_v25  ;;  %v3972_v25 = vld [vmem:[%s5081_s1 + $0x268] sm:$0xff]   ;;  %v3973_v29 = vld [vmem:[%s5081_s1 + $0x220] sm:$0xff]  }
  0x57   : > { %3558 = vmatpush3.bf16.msra.mxu1 %v3931_v40  ;;  %3531 = vmatprep.subr.bf16.mxu0 %v4074_v1  ;;  %v1035_v40 = vrot.slane %v1033_v30, 1  ;;  %v2937_v14 = vcombine.low %v4204_v27, %v830_v38  ;;  %v3960_v27 = vld [vmem:[%s5081_s1 + $0x190] sm:$0xff]   ;;  %v1177_v30 = vrot.slane %v4471_v28, 1  ;;  %v1590_v38 = vld [vmem:[%s4156_s8 + $0x8] sm:$0xf]  ;;  %v3975_v28 = vld [vmem:[%s5081_s1 + $0x218] sm:$0xff]  }
  0x58   : > { %3559 = vmatprep.subr.bf16.mxu1 %v4074_v1  ;;  %3493 = vmatprep.mubr.msk.bf16.mxu0 %vm4075_vm0, %v4074_v1 }
  0x59   : > { %3521 = vmatprep.mubr.msk.bf16.mxu1 %vm4075_vm0, %v4074_v1 }
  0x5a   : > { %3532 = vmatpush3.bf16.msra.mxu0 %v3932_v44  ;;  %v1036_v44 = vsel %vm281_vm1, %v1031_v41, %v1035_v40  ;;  %v3976_v40 = vld [vmem:[%s5081_s1 + $0x258] sm:$0xff]  }
  0x5b   : > { %3560 = vmatpush3.bf16.msra.mxu1 %v3933_v46  ;;  %3533 = vmatprep.subr.bf16.mxu0 %v4074_v1 }
  0x5c   : > { %3561 = vmatprep.subr.bf16.mxu1 %v4074_v1 }
  0x5d   : > { %3494 = vmatmul.mubr.bf16.gmra.mxu0 %v554_v49  ;;  %v3963_v49 = vld [vmem:[%s5081_s1 + $0x1c8] sm:$0xff]  }
  0x5e   : > { %3534 = vmatpush3.bf16.msra.mxu0 %v3934_v39  ;;  %3522 = vmatmul.mubr.bf16.gmra.mxu1 %v715_v51  ;;  %v3962_v39 = vld [vmem:[%s5081_s1 + $0x188] sm:$0xff]  }
  0x5f   : > { %3562 = vmatpush3.bf16.msra.mxu1 %v3935_v50  ;;  %3535 = vmatprep.subr.bf16.mxu0 %v4074_v1  ;;  %v1323_v50 = vrot.slane %v1017_v62, 2  ;;  %v3967_v62 = vld [vmem:[%s5081_s1 + $0x238] sm:$0xff]  }
  0x60   : > { %3563 = vmatprep.subr.bf16.mxu1 %v4074_v1  ;;  %3541 = vmatprep.mubr.msk.bf16.mxu0 %vm4075_vm0, %v4074_v1 }
  0x61   : > { %3569 = vmatprep.mubr.msk.bf16.mxu1 %vm4075_vm0, %v4074_v1  ;;  %v1324_v60 = vor.u32 %v1323_v50, %v1322_v48  ;;  %v4652_v48 = vld [vmem:[%s4156_s8 + $0x1c] sm:$0xf] }
  0x62   : > { %3536 = vmatpush3.bf16.msra.mxu0 %v3937_v53  ;;  %v1173_v53 = vrot.slane %v4407_v55, 1 }
  0x63   : > { %3564 = vmatpush3.bf16.msra.mxu1 %v3938_v54  ;;  %3537 = vmatprep.subr.bf16.mxu0 %v4074_v1  ;;  %v3964_v54 = vld [vmem:[%s5081_s1 + $0x180] sm:$0xff]   ;;  %v1329_v12 = vsel %vm690_vm3, %v1324_v60, %v1328_v11 }
  0x64   : > { %3565 = vmatprep.subr.bf16.mxu1 %v4074_v1 }
  0x66   : > { %3538 = vmatpush3.bf16.msra.mxu0 %v3939_v57  ;;  %v3965_v57 = vld [vmem:[%s5081_s1 + $0x1c0] sm:$0xff]  }
  0x67   : > { %3566 = vmatpush3.bf16.msra.mxu1 %v3940_v59  ;;  %3539 = vmatprep.subr.bf16.mxu0 %v4074_v1 }
  0x68   : > { %3567 = vmatprep.subr.bf16.mxu1 %v4074_v1 }
  0x6a   : > { %3540 = vmatpush3.bf16.msra.mxu0 %v3941_v0 }
  0x6b   : > { %3568 = vmatpush3.bf16.msra.mxu1 %v3942_v2  ;;  %3581 = vmatprep.subr.bf16.mxu0 %v4074_v1  ;;  %v3968_v2 = vld [vmem:[%s5081_s1 + $0x278] sm:$0xff]  }
  0x6c   : > { %3609 = vmatprep.subr.bf16.mxu1 %v4074_v1 }
  0x6d   : > { %3542 = vmatmul.mubr.bf16.vlgmr.msra.gmra.mxu0 %v2935_v16  ;;  %v3952_v16 = vld [vmem:[%s5081_s1 + $0x1e8] sm:$0xff]  }
  0x6e   : > { %3570 = vmatmul.mubr.bf16.vlgmr.msra.gmra.mxu1 %v1020_v17  ;;  %3582 = vmatpush3.bf16.msra.mxu0 %v3946_v8  ;;  %v1175_v8 = vrot.slane %v4428_v63, 1  ;;  %v1331_v17 = vshrl.u32 %v3977_v61, 16  ;;  %v3971_v63 = vld [vmem:[%s5081_s1 + $0x228] sm:$0xff]  }
  0x6f   : > { %3610 = vmatpush3.bf16.msra.mxu1 %v3947_v9  ;;  %3583 = vmatprep.subr.bf16.mxu0 %v4074_v1  ;;  %v3969_v9 = vld [vmem:[%s5081_s1 + $0x230] sm:$0xff]  }
  0x70   : > { %3611 = vmatprep.subr.bf16.mxu1 %v4074_v1  ;;  %3545 = vmatprep.mubr.msk.bf16.mxu0 %vm4075_vm0, %v4074_v1 }
  0x71   : > { %3573 = vmatprep.mubr.msk.bf16.mxu1 %vm4075_vm0, %v4074_v1 }
  0x72   : > { %3584 = vmatpush3.bf16.msra.mxu0 %v3948_v21  ;;  %v1334_v21 = vshll.u32 %v3977_v61, 16  ;;  %v3990_v61 = vld [vmem:[%s5081_s1 + $0x2f0] sm:$0xff]  }
  0x73   : > { %3612 = vmatpush3.bf16.msra.mxu1 %v3949_v24  ;;  %3585 = vmatprep.subr.bf16.mxu0 %v4074_v1  ;;  %v1176_v24 = vsel %vm547_vm2, %v1173_v53, %v1175_v8 }
  0x74   : > { %3613 = vmatprep.subr.bf16.mxu1 %v4074_v1 }
  0x75   : > { %3546 = vmatmul.mubr.bf16.gmra.mxu0 %v2936_v33  ;;  %v2990_v33 = vcombine.low %v1151_v42, %v4309_v3  ;;  %v3067_v42 = vcombine.low %v1590_v38, %v4449_v15  ;;  %v3992_v3 = vld [vmem:[%s5081_s1 + $0x2a8] sm:$0xff]   ;;  %v4005_v38 = vld [vmem:[%s5081_s1 + $0x280] sm:$0xff]  }
  0x76   : > { %3586 = vmatpush3.bf16.msra.mxu0 %v3951_v13  ;;  %3574 = vmatmul.mubr.bf16.gmra.mxu1 %v1028_v31  ;;  %v1333_v13 = vrot.slane %v1331_v17, 1  ;;  %v3974_v31 = vld [vmem:[%s5081_s1 + $0x260] sm:$0xff]  }
  0x77   : > { %3614 = vmatpush3.bf16.msra.mxu1 %v3952_v16  ;;  %3587 = vmatprep.subr.bf16.mxu0 %v4074_v1  ;;  %v1315_v46 = vshrl.u32 %v2990_v33, 16  ;;  %v1318_v47 = vshll.u32 %v2990_v33, 16  ;;  %v1172_v56 = vrot.slane %v2990_v33, 1  ;;  %v1336_v16 = vrot.slane %v1334_v21, 2  ;;  %v3999_v21 = vld [vmem:[%s5081_s1 + $0x2d8] sm:$0xff]  }
  0x78   : > { %3615 = vmatprep.subr.bf16.mxu1 %v4074_v1  ;;  %3549 = vmatprep.mubr.msk.bf16.mxu0 %vm4075_vm0, %v4074_v1  ;;  %v4635_v33 = vcombine.low %v4454_v18, %v4492_v34  ;;  %v4037_v34 = vld [vmem:[%s5081_s1 + $0x3e0] sm:$0xff]  }
  0x79   : > { %3577 = vmatprep.mubr.msk.bf16.mxu1 %vm4075_vm0, %v4074_v1  ;;  %v1317_v51 = vrot.slane %v1315_v46, 1  ;;  %v1320_v52 = vrot.slane %v1318_v47, 2  ;;  %v1174_v55 = vsel %vm547_vm2, %v1172_v56, %v1173_v53  ;;  %v3987_v53 = vld [vmem:[%s5081_s1 + $0x2b8] sm:$0xff]  }
  0x7a   : > { %3588 = vmatpush3.bf16.msra.mxu0 %v3954_v36  ;;  %v1337_v36 = vor.u32 %v1336_v16, %v1333_v13  ;;  %v1640_v47 = vshll.u32 %v4635_v33, 16  ;;  %v3988_v56 = vld [vmem:[%s5081_s1 + $0x2f8] sm:$0xff]   ;;  %v4003_v13 = vld [vmem:[%s5081_s1 + $0x288] sm:$0xff]  }
  0x7b   : > { %3616 = vmatpush3.bf16.msra.mxu1 %v3955_v32  ;;  %3589 = vmatprep.subr.bf16.mxu0 %v4074_v1  ;;  %v1321_v59 = vor.u32 %v1320_v52, %v1317_v51  ;;  %v1178_v32 = vsel %vm547_vm2, %v1175_v8, %v1177_v30  ;;  %v4665_v52 = vcombine.low %v4495_v35, %v4652_v48  ;;  %v1453_v8 = vld [vmem:[%s4156_s8 + $0x1c] sm:$0xf] }
  0x7c   : > { %3617 = vmatprep.subr.bf16.mxu1 %v4074_v1  ;;  %v1338_v41 = vsel %vm690_vm3, %v1328_v11, %v1337_v36  ;;  %v1642_v51 = vrot.slane %v1640_v47, 1  ;;  %v3042_v20 = vcombine.low %v4418_v58, %v1453_v8  ;;  %v4001_v58 = vld [vmem:[%s5081_s1 + $0x290] sm:$0xff]   ;;  %v1946_v36 = vrot.slane %v1640_v47, 2 }
  0x7d   : > { %3550 = vmatmul.mubr.bf16.gmra.mxu0 %v2937_v14  ;;  %v1325_v0 = vsel %vm690_vm3, %v1321_v59, %v1324_v60  ;;  %v3978_v14 = vld [vmem:[%s5081_s1 + $0x210] sm:$0xff]   ;;  %v1648_v59 = vshll.u32 %v4665_v52, 16  ;;  %v1798_v47 = vrot.slane %v4665_v52, 1 }
  0x7e   : > { %3590 = vmatpush3.bf16.msra.mxu0 %v3957_v26  ;;  %3578 = vmatmul.mubr.bf16.gmra.mxu1 %v1036_v44  ;;  %v3979_v26 = vld [vmem:[%s5081_s1 + $0x250] sm:$0xff]   ;;  %v3980_v44 = vld [vmem:[%s5081_s1 + $0x208] sm:$0xff]  }
  0x7f   : > { %3618 = vmatpush3.bf16.msra.mxu1 %v3958_v43  ;;  %3591 = vmatprep.subr.bf16.mxu0 %v4074_v1  ;;  %v1635_v43 = vshll.u32 %v3067_v42, 16  ;;  %v3989_v60 = vld [vmem:[%s5081_s1 + $0x2b0] sm:$0xff]  }
  0x80   : > { %3619 = vmatprep.subr.bf16.mxu1 %v4074_v1  ;;  %3597 = vmatprep.mubr.msk.bf16.mxu0 %vm4075_vm0, %v4074_v1  ;;  %v4019_v8 = vld [vmem:[%s5081_s1 + $0x310] sm:$0xff]  }
  0x81   : > { %3625 = vmatprep.mubr.msk.bf16.mxu1 %vm4075_vm0, %v4074_v1  ;;  %v1637_v46 = vrot.slane %v1635_v43, 1  ;;  %v4009_v43 = vld [vmem:[%s5081_s1 + $0x378] sm:$0xff]  }
  0x82   : > { %3592 = vmatpush3.bf16.msra.mxu0 %v3960_v27  ;;  %v3981_v27 = vld [vmem:[%s5081_s1 + $0x248] sm:$0xff]  }
  0x83   : > { %3620 = vmatpush3.bf16.msra.mxu1 %v3961_v45  ;;  %3593 = vmatprep.subr.bf16.mxu0 %v4074_v1  ;;  %v1633_v45 = vshrl.u32 %v3067_v42, 16 }
  0x84   : > { %3621 = vmatprep.subr.bf16.mxu1 %v4074_v1 }
  0x85   : > { %v1638_v50 = vor.u32 %v1637_v46, %v1633_v45  ;;  %v4018_v45 = vld [vmem:[%s4156_s8 + $0x20] ss:$0 sps:$4 sm:$0x33]   ;;  %v4010_v46 = vld [vmem:[%s5081_s1 + $0x330] sm:$0xff]  }
  0x86   : > { %3594 = vmatpush3.bf16.msra.mxu0 %v3962_v39  ;;  %v3982_v39 = vld [vmem:[%s5081_s1 + $0x200] sm:$0xff]  }
  0x87   : > { %3622 = vmatpush3.bf16.msra.mxu1 %v3963_v49  ;;  %3595 = vmatprep.subr.bf16.mxu0 %v4074_v1  ;;  %v3983_v49 = vld [vmem:[%s5081_s1 + $0x240] sm:$0xff]  }
  0x88   : > { %3623 = vmatprep.subr.bf16.mxu1 %v4074_v1 }
  0x8a   : > { %3596 = vmatpush3.bf16.msra.mxu0 %v3964_v54  ;;  %v1643_v54 = vsel %vm281_vm1, %v1638_v50, %v1642_v51  ;;  %v1954_v50 = vshrl.u32 %v4018_v45, 16 }
  0x8b   : > { %3624 = vmatpush3.bf16.msra.mxu1 %v3965_v57  ;;  %3637 = vmatprep.subr.bf16.mxu0 %v4074_v1  ;;  %v1644_v57 = vshrl.u32 %v4635_v33, 16 }
  0x8c   : > { %3665 = vmatprep.subr.bf16.mxu1 %v4074_v1 }
  0x8d   : > { %3598 = vmatmul.mubr.bf16.vlgmr.msra.gmra.mxu0 %v1174_v55  ;;  %v1646_v55 = vor.u32 %v1644_v57, %v1642_v51  ;;  %v1945_v16 = vrot.slane %v1644_v57, 1  ;;  %v1957_v51 = vshll.u32 %v4018_v45, 16  ;;  %v1956_v57 = vrot.slane %v1954_v50, 1 }
  0x8e   : > { %3626 = vmatmul.mubr.bf16.vlgmr.msra.gmra.mxu1 %v1325_v0  ;;  %3638 = vmatpush3.bf16.msra.mxu0 %v3967_v62  ;;  %v1650_v62 = vrot.slane %v1648_v59, 1  ;;  %v4692_v0 = vld [vmem:[%s4156_s8 + $0x20] ss:$0 sps:$4 sm:$0x11]  }
  0x8f   : > { %3666 = vmatpush3.bf16.msra.mxu1 %v3968_v2  ;;  %3639 = vmatprep.subr.bf16.mxu0 %v4074_v1  ;;  %v1652_v2 = vshrl.u32 %v4665_v52, 16  ;;  %v1656_v5 = vshll.u32 %v4692_v0, 16  ;;  %v1947_v42 = vor.u32 %v1946_v36, %v1945_v16 }
  0x90   : > { %3667 = vmatprep.subr.bf16.mxu1 %v4074_v1  ;;  %3601 = vmatprep.mubr.msk.bf16.mxu0 %vm4075_vm0, %v4074_v1 }
  0x91   : > { %3629 = vmatprep.mubr.msk.bf16.mxu1 %vm4075_vm0, %v4074_v1  ;;  %v1658_v17 = vrot.slane %v1656_v5, 1 }
  0x92   : > { %3640 = vmatpush3.bf16.msra.mxu0 %v3969_v9  ;;  %v3996_v9 = vld [vmem:[%s5081_s1 + $0x2e0] sm:$0xff]  }
  0x93   : > { %3668 = vmatpush3.bf16.msra.mxu1 %v3970_v10  ;;  %3641 = vmatprep.subr.bf16.mxu0 %v4074_v1  ;;  %v1654_v10 = vor.u32 %v1652_v2, %v1650_v62 }
  0x94   : > { %3669 = vmatprep.subr.bf16.mxu1 %v4074_v1 }
  0x95   : > { %3602 = vmatmul.mubr.bf16.gmra.mxu0 %v1176_v24  ;;  %v1659_v11 = vsel %vm281_vm1, %v1654_v10, %v1658_v17  ;;  %v4002_v24 = vld [vmem:[%s5081_s1 + $0x2d0] sm:$0xff]  }
  0x96   : > { %3642 = vmatpush3.bf16.msra.mxu0 %v3971_v63  ;;  %3630 = vmatmul.mubr.bf16.gmra.mxu1 %v1329_v12  ;;  %v3095_v63 = vcombine.low %v1774_v19, %v4449_v15  ;;  %v4845_v10 = vld [vmem:[%s4156_s8 + $0x14] sm:$0xff]   ;;  %v4021_v19 = vld [vmem:[%s5081_s1 + $0x308] sm:$0xff]  }
  0x97   : > { %3670 = vmatpush3.bf16.msra.mxu1 %v3972_v25  ;;  %3643 = vmatprep.subr.bf16.mxu0 %v4074_v1 }
  0x98   : > { %3671 = vmatprep.subr.bf16.mxu1 %v4074_v1  ;;  %3605 = vmatprep.mubr.msk.bf16.mxu0 %vm4075_vm0, %v4074_v1  ;;  %v1938_v25 = vshrl.u32 %v3095_v63, 16  ;;  %v1941_v12 = vshll.u32 %v3095_v63, 16 }
  0x99   : > { %3633 = vmatprep.mubr.msk.bf16.mxu1 %vm4075_vm0, %v4074_v1 }
  0x9a   : > { %3644 = vmatpush3.bf16.msra.mxu0 %v3973_v29  ;;  %v4004_v29 = vld [vmem:[%s5081_s1 + $0x2c8] sm:$0xff]   ;;  %v1940_v30 = vrot.slane %v1938_v25, 1 }
  0x9b   : > { %3672 = vmatpush3.bf16.msra.mxu1 %v3974_v31  ;;  %3645 = vmatprep.subr.bf16.mxu0 %v4074_v1  ;;  %v1943_v31 = vrot.slane %v1941_v12, 2  ;;  %v4871_v12 = vld [vmem:[%s4156_s8 + $0x1c] sm:$0xff]  }
  0x9c   : > { %3673 = vmatprep.subr.bf16.mxu1 %v4074_v1 }
  0x9d   : > { %3606 = vmatmul.mubr.bf16.gmra.mxu0 %v1178_v32  ;;  %v1796_v32 = vrot.slane %v4635_v33, 1 }
  0x9e   : > { %3646 = vmatpush3.bf16.msra.mxu0 %v3975_v28  ;;  %3634 = vmatmul.mubr.bf16.gmra.mxu1 %v1338_v41  ;;  %v1795_v28 = vrot.slane %v3095_v63, 1  ;;  %v1944_v41 = vor.u32 %v1943_v31, %v1940_v30  ;;  %v4023_v63 = vld [vmem:[%s5081_s1 + $0x300] sm:$0xff]   ;;  %v2267_v30 = vshrl.u32 %v4845_v10, 16  ;;  %v2271_v31 = vshll.u32 %v4871_v12, 16 }
  0x9f   : > { %3674 = vmatpush3.bf16.msra.mxu1 %v3976_v40  ;;  %3647 = vmatprep.subr.bf16.mxu0 %v4074_v1  ;;  %v4006_v40 = vld [vmem:[%s5081_s1 + $0x2c0] sm:$0xff]   ;;  %v1799_v52 = vsel %vm547_vm2, %v1796_v32, %v1798_v47 }
  0xa0   : > { %3675 = vmatprep.subr.bf16.mxu1 %v4074_v1  ;;  %3653 = vmatprep.mubr.msk.bf16.mxu0 %vm4075_vm0, %v4074_v1  ;;  %v1948_v33 = vsel %vm690_vm3, %v1944_v41, %v1947_v42  ;;  %v4031_v41 = vld [vmem:[%s5081_s1 + $0x3f0] sm:$0xff]   ;;  %v2273_v18 = vrot.slane %v2271_v31, 1 }
  0xa1   : > { %3681 = vmatprep.mubr.msk.bf16.mxu1 %vm4075_vm0, %v4074_v1 }
  0xa2   : > { %3648 = vmatpush3.bf16.msra.mxu0 %v3978_v14  ;;  %v1797_v14 = vsel %vm547_vm2, %v1795_v28, %v1796_v32  ;;  %v4030_v28 = vld [vmem:[%s5081_s1 + $0x3b0] sm:$0xff]  }
  0xa3   : > { %3676 = vmatpush3.bf16.msra.mxu1 %v3979_v26  ;;  %3649 = vmatprep.subr.bf16.mxu0 %v4074_v1  ;;  %v4008_v26 = vld [vmem:[%s5081_s1 + $0x338] sm:$0xff]  }
  0xa4   : > { %3677 = vmatprep.subr.bf16.mxu1 %v4074_v1 }
  0xa6   : > { %3650 = vmatpush3.bf16.msra.mxu0 %v3980_v44  ;;  %v1949_v44 = vrot.slane %v1652_v2, 1  ;;  %v4017_v2 = vld [vmem:[%s5081_s1 + $0x358] sm:$0xff]  }
  0xa7   : > { %3678 = vmatpush3.bf16.msra.mxu1 %v3981_v27  ;;  %3651 = vmatprep.subr.bf16.mxu0 %v4074_v1  ;;  %v1950_v27 = vrot.slane %v1648_v59, 2  ;;  %v1959_v59 = vrot.slane %v1957_v51, 2  ;;  %v4036_v51 = vld [vmem:[%s5081_s1 + $0x3a0] sm:$0xff]  }
  0xa8   : > { %3679 = vmatprep.subr.bf16.mxu1 %v4074_v1 }
  0xaa   : > { %3652 = vmatpush3.bf16.msra.mxu0 %v3982_v39  ;;  %v4011_v39 = vld [vmem:[%s5081_s1 + $0x370] sm:$0xff]  }
  0xab   : > { %3680 = vmatpush3.bf16.msra.mxu1 %v3983_v49  ;;  %3693 = vmatprep.subr.bf16.mxu0 %v4074_v1  ;;  %v1951_v49 = vor.u32 %v1950_v27, %v1949_v44  ;;  %v4034_v27 = vld [vmem:[%s5081_s1 + $0x3e8] sm:$0xff]  }
  0xac   : > { %3721 = vmatprep.subr.bf16.mxu1 %v4074_v1 }
  0xad   : > { %3654 = vmatmul.mubr.bf16.vlgmr.msra.gmra.mxu0 %v3040_v7  ;;  %v1651_v7 = vsel %vm281_vm1, %v1646_v55, %v1650_v62  ;;  %v4015_v55 = vld [vmem:[%s5081_s1 + $0x360] sm:$0xff]   ;;  %v1960_v62 = vor.u32 %v1959_v59, %v1956_v57  ;;  %v2397_v57 = vld [vmem:[%s4156_s8 + $0xc] sm:$0xe] }
  0xae   : > { %3682 = vmatmul.mubr.bf16.vlgmr.msra.gmra.mxu1 %v1643_v54  ;;  %3694 = vmatpush3.bf16.msra.mxu0 %v3987_v53  ;;  %v4012_v53 = vld [vmem:[%s5081_s1 + $0x328] sm:$0xff]  }
  0xaf   : > { %3722 = vmatpush3.bf16.msra.mxu1 %v3988_v56  ;;  %3695 = vmatprep.subr.bf16.mxu0 %v4074_v1  ;;  %v4013_v54 = vld [vmem:[%s5081_s1 + $0x368] sm:$0xff]   ;;  %v1952_v56 = vsel %vm690_vm3, %v1947_v42, %v1951_v49  ;;  %v1961_v5 = vsel %vm690_vm3, %v1951_v49, %v1960_v62 }
  0xb0   : > { %3723 = vmatprep.subr.bf16.mxu1 %v4074_v1  ;;  %3657 = vmatprep.mubr.msk.bf16.mxu0 %vm4075_vm0, %v4074_v1 }
  0xb1   : > { %3685 = vmatprep.mubr.msk.bf16.mxu1 %vm4075_vm0, %v4074_v1 }
  0xb2   : > { %3696 = vmatpush3.bf16.msra.mxu0 %v3989_v60  ;;  %v4014_v60 = vld [vmem:[%s5081_s1 + $0x320] sm:$0xff]  }
  0xb3   : > { %3724 = vmatpush3.bf16.msra.mxu1 %v3990_v61  ;;  %3697 = vmatprep.subr.bf16.mxu0 %v4074_v1  ;;  %v1800_v61 = vrot.slane %v4692_v0, 1 }
  0xb4   : > { %3725 = vmatprep.subr.bf16.mxu1 %v4074_v1 }
  0xb5   : > { %3658 = vmatmul.mubr.bf16.gmra.mxu0 %v3041_v23  ;;  %v3998_v23 = vld [vmem:[%s5081_s1 + $0x298] sm:$0xff]   ;;  %v1801_v0 = vsel %vm547_vm2, %v1798_v47, %v1800_v61 }
  0xb6   : > { %3698 = vmatpush3.bf16.msra.mxu0 %v3992_v3  ;;  %3686 = vmatmul.mubr.bf16.gmra.mxu1 %v1651_v7  ;;  %v2213_v3 = vld [vmem:[%s4156_s8 + $0xc] sm:$0xf]  ;;  %v4016_v7 = vld [vmem:[%s5081_s1 + $0x318] sm:$0xff]  }
  0xb7   : > { %3726 = vmatpush3.bf16.msra.mxu1 %v3993_v4  ;;  %3699 = vmatprep.subr.bf16.mxu0 %v4074_v1  ;;  %v4822_v4 = vld [vmem:[%s4156_s8 + $0x10] sm:$0xf] }
  0xb8   : > { %3727 = vmatprep.subr.bf16.mxu1 %v4074_v1  ;;  %3661 = vmatprep.mubr.msk.bf16.mxu0 %vm4075_vm0, %v4074_v1 }
  0xb9   : > { %3689 = vmatprep.mubr.msk.bf16.mxu1 %vm4075_vm0, %v4074_v1 }
  0xba   : > { %3700 = vmatpush3.bf16.msra.mxu0 %v3995_v6  ;;  %v3172_v6 = vcombine.low %v2213_v3, %v4822_v4 }
  0xbb   : > { %3728 = vmatpush3.bf16.msra.mxu1 %v3996_v9  ;;  %3701 = vmatprep.subr.bf16.mxu0 %v4074_v1  ;;  %v4020_v9 = vld [vmem:[%s5081_s1 + $0x350] sm:$0xff]  }
  0xbc   : > { %3729 = vmatprep.subr.bf16.mxu1 %v4074_v1  ;;  %v2258_v17 = vshll.u32 %v3172_v6, 16 }
  0xbd   : > { %3662 = vmatmul.mubr.bf16.gmra.mxu0 %v3042_v20  ;;  %v4022_v20 = vld [vmem:[%s5081_s1 + $0x348] sm:$0xff]  }
  0xbe   : > { %3702 = vmatpush3.bf16.msra.mxu0 %v3998_v23  ;;  %3690 = vmatmul.mubr.bf16.gmra.mxu1 %v1659_v11  ;;  %v2256_v23 = vshrl.u32 %v3172_v6, 16  ;;  %v2263_v11 = vshll.u32 %v4845_v10, 16 }
  0xbf   : > { %3730 = vmatpush3.bf16.msra.mxu1 %v3999_v21  ;;  %3703 = vmatprep.subr.bf16.mxu0 %v4074_v1  ;;  %v2260_v21 = vrot.slane %v2258_v17, 1 }
  0xc0   : > { %3731 = vmatprep.subr.bf16.mxu1 %v4074_v1  ;;  %3709 = vmatprep.mubr.msk.bf16.mxu0 %vm4075_vm0, %v4074_v1  ;;  %v2265_v25 = vrot.slane %v2263_v11, 1 }
  0xc1   : > { %3737 = vmatprep.mubr.msk.bf16.mxu1 %vm4075_vm0, %v4074_v1 }
  0xc2   : > { %3704 = vmatpush3.bf16.msra.mxu0 %v4001_v58  ;;  %v4024_v58 = vld [vmem:[%s5081_s1 + $0x340] sm:$0xff]   ;;  %v2269_v15 = vor.u32 %v2267_v30, %v2265_v25 }
  0xc3   : > { %3732 = vmatpush3.bf16.msra.mxu1 %v4002_v24  ;;  %3705 = vmatprep.subr.bf16.mxu0 %v4074_v1  ;;  %v2261_v24 = vor.u32 %v2260_v21, %v2256_v23 }
  0xc4   : > { %3733 = vmatprep.subr.bf16.mxu1 %v4074_v1  ;;  %v2274_v45 = vsel %vm281_vm1, %v2269_v15, %v2273_v18  ;;  %v4047_v15 = vld [vmem:[%s5081_s1 + $0x3c0] sm:$0xff]  }
  0xc5   : > { %v2266_v16 = vsel %vm281_vm1, %v2261_v24, %v2265_v25  ;;  %v4044_v24 = vld [vmem:[%s5081_s1 + $0x388] sm:$0xff]  }
  0xc6   : > { %3706 = vmatpush3.bf16.msra.mxu0 %v4003_v13  ;;  %v4028_v13 = vld [vmem:[%s5081_s1 + $0x3b8] sm:$0xff]  }
  0xc7   : > { %3734 = vmatpush3.bf16.msra.mxu1 %v4004_v29  ;;  %3707 = vmatprep.subr.bf16.mxu0 %v4074_v1  ;;  %v4029_v29 = vld [vmem:[%s5081_s1 + $0x3f8] sm:$0xff]  }
  0xc8   : > { %3735 = vmatprep.subr.bf16.mxu1 %v4074_v1 }
  0xca   : > { %3708 = vmatpush3.bf16.msra.mxu0 %v4005_v38 }
  0xcb   : > { %3736 = vmatpush3.bf16.msra.mxu1 %v4006_v40  ;;  %3749 = vmatprep.subr.bf16.mxu0 %v4074_v1 }
  0xcc   : > { %3777 = vmatprep.subr.bf16.mxu1 %v4074_v1 }
  0xcd   : > { %3710 = vmatmul.mubr.bf16.vlgmr.msra.gmra.mxu0 %v1797_v14 }
  0xce   : > { %3738 = vmatmul.mubr.bf16.vlgmr.msra.gmra.mxu1 %v1948_v33  ;;  %3750 = vmatpush3.bf16.msra.mxu0 %v4008_v26  ;;  %v4033_v33 = vld [vmem:[%s5081_s1 + $0x3a8] sm:$0xff]  }
  0xcf   : > { %3778 = vmatpush3.bf16.msra.mxu1 %v4009_v43  ;;  %3751 = vmatprep.subr.bf16.mxu0 %v4074_v1 }
  0xd0   : > { %3779 = vmatprep.subr.bf16.mxu1 %v4074_v1  ;;  %3713 = vmatprep.mubr.msk.bf16.mxu0 %vm4075_vm0, %v4074_v1 }
  0xd1   : > { %3741 = vmatprep.mubr.msk.bf16.mxu1 %vm4075_vm0, %v4074_v1 }
  0xd2   : > { %3752 = vmatpush3.bf16.msra.mxu0 %v4010_v46  ;;  %v2275_v46 = vshrl.u32 %v4871_v12, 16 }
  0xd3   : > { %3780 = vmatpush3.bf16.msra.mxu1 %v4011_v39  ;;  %3753 = vmatprep.subr.bf16.mxu0 %v4074_v1 }
  0xd4   : > { %3781 = vmatprep.subr.bf16.mxu1 %v4074_v1  ;;  %v2277_v35 = vor.u32 %v2275_v46, %v2273_v18 }
  0xd5   : > { %3714 = vmatmul.mubr.bf16.gmra.mxu0 %v1799_v52  ;;  %v2076_v52 = vld [vmem:[%s4156_s8 + $0x20] sm:$0xf] }
  0xd6   : > { %3754 = vmatpush3.bf16.msra.mxu0 %v4012_v53  ;;  %3742 = vmatmul.mubr.bf16.gmra.mxu1 %v1952_v56 }
  0xd7   : > { %3782 = vmatpush3.bf16.msra.mxu1 %v4013_v54  ;;  %3755 = vmatprep.subr.bf16.mxu0 %v4074_v1 }
  0xd8   : > { %3783 = vmatprep.subr.bf16.mxu1 %v4074_v1  ;;  %3717 = vmatprep.mubr.msk.bf16.mxu0 %vm4075_vm0, %v4074_v1 }
  0xd9   : > { %3745 = vmatprep.mubr.msk.bf16.mxu1 %vm4075_vm0, %v4074_v1 }
  0xda   : > { %3756 = vmatpush3.bf16.msra.mxu0 %v4014_v60  ;;  %v3147_v60 = vcombine.low %v4652_v48, %v2076_v52 }
  0xdb   : > { %3784 = vmatpush3.bf16.msra.mxu1 %v4015_v55  ;;  %3757 = vmatprep.subr.bf16.mxu0 %v4074_v1  ;;  %v4039_v55 = vld [vmem:[%s5081_s1 + $0x398] sm:$0xff]  }
  0xdc   : > { %3785 = vmatprep.subr.bf16.mxu1 %v4074_v1 }
  0xdd   : > { %3718 = vmatmul.mubr.bf16.gmra.mxu0 %v1801_v0  ;;  %v4040_v0 = vld [vmem:[%s5081_s1 + $0x3d8] sm:$0xff]  }
  0xde   : > { %3758 = vmatpush3.bf16.msra.mxu0 %v4016_v7  ;;  %3746 = vmatmul.mubr.bf16.gmra.mxu1 %v1961_v5  ;;  %v3200_v7 = vcombine.low %v2397_v57, %v4822_v4  ;;  %v4043_v4 = vld [vmem:[%s5081_s1 + $0x3d0] sm:$0xff]  }
  0xdf   : > { %3786 = vmatpush3.bf16.msra.mxu1 %v4017_v2  ;;  %3759 = vmatprep.subr.bf16.mxu0 %v4074_v1 }
  0xe0   : > { %3787 = vmatprep.subr.bf16.mxu1 %v4074_v1  ;;  %3765 = vmatprep.mubr.msk.bf16.mxu0 %vm4075_vm0, %v4074_v1 }
  0xe1   : > { %3793 = vmatprep.mubr.msk.bf16.mxu1 %vm4075_vm0, %v4074_v1 }
  0xe2   : > { %3760 = vmatpush3.bf16.msra.mxu0 %v4019_v8  ;;  %v4042_v8 = vld [vmem:[%s5081_s1 + $0x390] sm:$0xff]  }
  0xe3   : > { %3788 = vmatpush3.bf16.msra.mxu1 %v4020_v9  ;;  %3761 = vmatprep.subr.bf16.mxu0 %v4074_v1 }
  0xe4   : > { %3789 = vmatprep.subr.bf16.mxu1 %v4074_v1 }
  0xe6   : > { %3762 = vmatpush3.bf16.msra.mxu0 %v4021_v19  ;;  %v2561_v19 = vshrl.u32 %v3200_v7, 16 }
  0xe7   : > { %3790 = vmatpush3.bf16.msra.mxu1 %v4022_v20  ;;  %3763 = vmatprep.subr.bf16.mxu0 %v4074_v1  ;;  %v2564_v20 = vshll.u32 %v3200_v7, 16 }
  0xe8   : > { %3791 = vmatprep.subr.bf16.mxu1 %v4074_v1 }
  0xea   : > { %3764 = vmatpush3.bf16.msra.mxu0 %v4023_v63  ;;  %v2568_v63 = vrot.slane %v2267_v30, 1  ;;  %v2569_v30 = vrot.slane %v2263_v11, 2 }
  0xeb   : > { %3792 = vmatpush3.bf16.msra.mxu1 %v4024_v58  ;;  %3805 = vmatprep.subr.bf16.mxu0 %v4074_v1 }
  0xec   : > { %3833 = vmatprep.subr.bf16.mxu1 %v4074_v1  ;;  %v2570_v18 = vor.u32 %v2569_v30, %v2568_v63 }
  0xed   : > { %v395_v36 = vpop.f32.mrf.mxu0  ;;  %3766 = vmatmul.mubr.bf16.vlgmr.msra.gmra.mxu0 %v3145_v22  ;;  %v4902_v22 = vld [vmem:[%s4156_s8 + $0x24] ss:$0 sps:$4 sm:$0x11]  }
  0xee   : > { %v503_v38 = vpop.f32.mrf.mxu1  ;;  %3794 = vmatmul.mubr.bf16.vlgmr.msra.gmra.mxu1 %v2266_v16  ;;  %3806 = vmatpush3.bf16.msra.mxu0 %v4028_v13  ;;  %v2279_v47 = vshll.u32 %v4902_v22, 16  ;;  %v4045_v16 = vld [vmem:[%s5081_s1 + $0x3c8] sm:$0xff]  }
  0xef   : > { %v4891_v32 = vadd.f32 %v503_v38, %v395_v36  ;;  %3834 = vmatpush3.bf16.msra.mxu1 %v4029_v29  ;;  %v3431_v40 = vpop.f32.mrf.mxu0  ;;  %3807 = vmatprep.subr.bf16.mxu0 %v4074_v1  ;;  %v2563_v29 = vrot.slane %v2561_v19, 1  ;;  %v2566_v36 = vrot.slane %v2564_v20, 2 }
  0xf0   : > { %v3459_v42 = vpop.f32.mrf.mxu1  ;;  %3835 = vmatprep.subr.bf16.mxu1 %v4074_v1  ;;  %3769 = vmatprep.mubr.msk.bf16.mxu0 %vm4075_vm0, %v4074_v1  ;;  %v2418_v40 = vrot.slane %v3200_v7, 1 }
  0xf1   : > { %v398_v14 = vpop.f32.mrf.mxu0  ;;  %3797 = vmatprep.mubr.msk.bf16.mxu1 %vm4075_vm0, %v4074_v1  ;;  %v2567_v11 = vor.u32 %v2566_v36, %v2563_v29 }
  0xf2   : > { %v506_v26 = vpop.f32.mrf.mxu1  ;;  %3808 = vmatpush3.bf16.msra.mxu0 %v4030_v28  ;;  %v4046_v28 = vld [vmem:[%s5081_s1 + $0x380] sm:$0xff]  }
  0xf3   : > { %v4912_v43 = vadd.f32 %v506_v26, %v398_v14  ;;  %3836 = vmatpush3.bf16.msra.mxu1 %v4031_v41  ;;  %v3432_v44 = vpop.f32.mrf.mxu0  ;;  %3809 = vmatprep.subr.bf16.mxu0 %v4074_v1  ;;  %v2419_v41 = vrot.slane %v4845_v10, 1  ;;  %v2571_v14 = vsel %vm690_vm3, %v2567_v11, %v2570_v18  ;;  %v2572_v10 = vrot.slane %v2275_v46, 1 }
  0xf4   : > { %v3460_v39 = vpop.f32.mrf.mxu1  ;;  %3837 = vmatprep.subr.bf16.mxu1 %v4074_v1  ;;  %v2573_v26 = vrot.slane %v2271_v31, 2 }
  0xf5   : > { %3770 = vmatmul.mubr.bf16.gmra.mxu0 %v3146_v37  ;;  %v403_v49 = vpop.f32.mrf.mxu0  ;;  %v2281_v37 = vrot.slane %v2279_v47, 1  ;;  %v2420_v42 = vsel %vm547_vm2, %v2418_v40, %v2419_v41  ;;  %v2421_v47 = vrot.slane %v4871_v12, 1 }
  0xf6   : > { %3810 = vmatpush3.bf16.msra.mxu0 %v4033_v33  ;;  %3798 = vmatmul.mubr.bf16.gmra.mxu1 %v2274_v45  ;;  %v511_v50 = vpop.f32.mrf.mxu1  ;;  %v4049_v33 = vld [vmem:[%s4156_s8 + $0x24] ss:$0 sps:$4 sm:$0x33]   ;;  %v2574_v46 = vor.u32 %v2573_v26, %v2572_v10  ;;  %s3862_s8 = smul.u32 48, %s5089_s12 }
  0xf7   : > { %3838 = vmatpush3.bf16.msra.mxu1 %v4034_v27  ;;  %3811 = vmatprep.subr.bf16.mxu0 %v4074_v1  ;;  %v3435_v53 = vpop.f32.mrf.mxu0  ;;  %v4930_v54 = vadd.f32 %v511_v50, %v403_v49  ;;  %v2282_v48 = vsel %vm281_vm1, %v2277_v35, %v2281_v37  ;;  %v2577_v49 = vshrl.u32 %v4049_v33, 16  ;;  %v2580_v50 = vshll.u32 %v4049_v33, 16 }
  0xf8   : > { %3839 = vmatprep.subr.bf16.mxu1 %v4074_v1  ;;  %v3463_v56 = vpop.f32.mrf.mxu1  ;;  %3773 = vmatprep.mubr.msk.bf16.mxu0 %vm4075_vm0, %v4074_v1  ;;  %v2575_v37 = vsel %vm690_vm3, %v2570_v18, %v2574_v46  ;;  %s5051_s11 = scalar_lea.vmem %s5083_s3, %s3862_s8 }
  0xf9   : > { %v406_v59 = vpop.f32.mrf.mxu0  ;;  %3801 = vmatprep.mubr.msk.bf16.mxu1 %vm4075_vm0, %v4074_v1  ;;  %v2579_v56 = vrot.slane %v2577_v49, 1  ;;  %v2582_v12 = vrot.slane %v2580_v50, 2 }
  0xfa   : > { %3812 = vmatpush3.bf16.msra.mxu0 %v4036_v51  ;;  %v514_v61 = vpop.f32.mrf.mxu1 }
  0xfb   : > { %3840 = vmatpush3.bf16.msra.mxu1 %v4037_v34  ;;  %3813 = vmatprep.subr.bf16.mxu0 %v4074_v1  ;;  %v3436_v62 = vpop.f32.mrf.mxu0  ;;  %v4948_v3 = vadd.f32 %v514_v61, %v406_v59  ;;  %v2422_v34 = vsel %vm547_vm2, %v2419_v41, %v2421_v47 }
  0xfc   : > { %3841 = vmatprep.subr.bf16.mxu1 %v4074_v1  ;;  %v3464_v2 = vpop.f32.mrf.mxu1 }
  0xfd   : > { %3774 = vmatmul.mubr.bf16.gmra.mxu0 %v3147_v60  ;;  %v411_v5 = vpop.f32.mrf.mxu0 }
  0xfe   : > { %3814 = vmatpush3.bf16.msra.mxu0 %v4039_v55  ;;  %3802 = vmatmul.mubr.bf16.gmra.mxu1 %v2282_v48  ;;  %v519_v6 = vpop.f32.mrf.mxu1 }
  0xff   : > { %3842 = vmatpush3.bf16.msra.mxu1 %v4040_v0  ;;  %3815 = vmatprep.subr.bf16.mxu0 %v4074_v1  ;;  %v3439_v9 = vpop.f32.mrf.mxu0  ;;  %v4960_v17 = vadd.f32 %v519_v6, %v411_v5  ;;  %v2583_v0 = vor.u32 %v2582_v12, %v2579_v56 }
 0x100   : > { %3843 = vmatprep.subr.bf16.mxu1 %v4074_v1  ;;  %v3467_v23 = vpop.f32.mrf.mxu1  ;;  %3821 = vmatprep.mubr.msk.bf16.mxu0 %vm4075_vm0, %v4074_v1 }
 0x101   : > { %v414_v21 = vpop.f32.mrf.mxu0  ;;  %3849 = vmatprep.mubr.msk.bf16.mxu1 %vm4075_vm0, %v4074_v1  ;;  %v2584_v9 = vsel %vm690_vm3, %v2574_v46, %v2583_v0 }
 0x102   : > { %3816 = vmatpush3.bf16.msra.mxu0 %v4042_v8  ;;  %v522_v58 = vpop.f32.mrf.mxu1 }
 0x103   : > { %3844 = vmatpush3.bf16.msra.mxu1 %v4043_v4  ;;  %3817 = vmatprep.subr.bf16.mxu0 %v4074_v1  ;;  %v3440_v25 = vpop.f32.mrf.mxu0  ;;  %v4976_v13 = vadd.f32 %v522_v58, %v414_v21 }
 0x104   : > { %3845 = vmatprep.subr.bf16.mxu1 %v4074_v1  ;;  %v3468_v38 = vpop.f32.mrf.mxu1 }
 0x106   : > { %3818 = vmatpush3.bf16.msra.mxu0 %v4044_v24 }
 0x107   : > { %3846 = vmatpush3.bf16.msra.mxu1 %v4045_v16  ;;  %3819 = vmatprep.subr.bf16.mxu0 %v4074_v1 }
 0x108   : > { %3847 = vmatprep.subr.bf16.mxu1 %v4074_v1 }
 0x10a   : > { %3820 = vmatpush3.bf16.msra.mxu0 %v4046_v28 }
 0x10b   : > { %3848 = vmatpush3.bf16.msra.mxu1 %v4047_v15 }
 0x10d   : > { %v640_v44 = vpop.f32.mrf.mxu0  ;;  %3822 = vmatmul.mubr.bf16.vlgmr.msra.gmra.mxu0 %v2420_v42 }
 0x10e   : > { %v663_v27 = vadd.f32 %v640_v44, %v4891_v32  ;;  %v801_v45 = vpop.f32.mrf.mxu1  ;;  %3850 = vmatmul.mubr.bf16.vlgmr.msra.gmra.mxu1 %v2571_v14  ;;  %3825 = vmatprep.mubr.msk.bf16.mxu0 %vm4075_vm0, %v4074_v1 }
 0x10f   : > { %v3487_v39 = vpop.f32.mrf.mxu0  ;;  %3853 = vmatprep.mubr.msk.bf16.mxu1 %vm4075_vm0, %v4074_v1 }
 0x110   : > { %v824_v31 = vadd.f32 %v801_v45, %v663_v27  ;;  %v3515_v51 = vpop.f32.mrf.mxu1 }
 0x111   : > { %v643_v52 = vpop.f32.mrf.mxu0 }
 0x112   : > { %v664_v53 = vadd.f32 %v643_v52, %v4912_v43  ;;  %v804_v32 = vpop.f32.mrf.mxu1  ;;  %v2423_v43 = vrot.slane %v4902_v22, 1 }
 0x113   : > { %v3488_v35 = vpop.f32.mrf.mxu0 }
 0x114   : > { %v825_v57 = vadd.f32 %v804_v32, %v664_v53  ;;  %v3516_v59 = vpop.f32.mrf.mxu1 }
 0x115   : > { %v648_v60 = vpop.f32.mrf.mxu0  ;;  %3826 = vmatmul.mubr.bf16.gmra.mxu0 %v2422_v34 }
 0x116   : > { %v665_v61 = vadd.f32 %v648_v60, %v4930_v54  ;;  %3854 = vmatmul.mubr.bf16.gmra.mxu1 %v2575_v37  ;;  %v809_v55 = vpop.f32.mrf.mxu1  ;;  %3829 = vmatprep.mubr.msk.bf16.mxu0 %vm4075_vm0, %v4074_v1  ;;  %v2424_v54 = vsel %vm547_vm2, %v2421_v47, %v2423_v43 }
 0x117   : > { %v3491_v62 = vpop.f32.mrf.mxu0  ;;  %3857 = vmatprep.mubr.msk.bf16.mxu1 %vm4075_vm0, %v4074_v1 }
 0x118   : > { %v826_v48 = vadd.f32 %v809_v55, %v665_v61  ;;  %v3519_v7 = vpop.f32.mrf.mxu1 }
 0x119   : > { %v651_v2 = vpop.f32.mrf.mxu0 }
 0x11a   : > { %v666_v5 = vadd.f32 %v651_v2, %v4948_v3  ;;  %v812_v6 = vpop.f32.mrf.mxu1 }
 0x11b   : > { %v3492_v8 = vpop.f32.mrf.mxu0 }
 0x11c   : > { %v827_v4 = vadd.f32 %v812_v6, %v666_v5  ;;  %v3520_v19 = vpop.f32.mrf.mxu1 }
 0x11d   : > { %v656_v20 = vpop.f32.mrf.mxu0  ;;  %3830 = vmatmul.mubr.bf16.gmra.mxu0 %v2424_v54 }
 0x11e   : > { %v667_v22 = vadd.f32 %v656_v20, %v4960_v17  ;;  %3858 = vmatmul.mubr.bf16.gmra.mxu1 %v2584_v9  ;;  %v817_v1 = vpop.f32.mrf.mxu1 }
 0x11f   : > { %v3495_v23 = vpop.f32.mrf.mxu0 }
 0x120   : > { %v828_v21 = vadd.f32 %v817_v1, %v667_v22  ;;  %v3523_v63 = vpop.f32.mrf.mxu1 }
 0x121   : > { %v659_v58 = vpop.f32.mrf.mxu0 }
 0x122   : > { %v668_v3 = vadd.f32 %v659_v58, %v4976_v13  ;;  %v820_v24 = vpop.f32.mrf.mxu1 }
 0x123   : > { %v3496_v25 = vpop.f32.mrf.mxu0 }
 0x124   : > { %v829_v16 = vadd.f32 %v820_v24, %v668_v3  ;;  %v3524_v29 = vpop.f32.mrf.mxu1 }
 0x12d   : > { %v938_v36 = vpop.f32.mrf.mxu0 }
 0x12e   : > { %v961_v30 = vadd.f32 %v938_v36, %v824_v31  ;;  %v1122_v38 = vpop.f32.mrf.mxu1 }
 0x12f   : > { %v3543_v28 = vpop.f32.mrf.mxu0 }
 0x130   : > { %v1145_v40 = vadd.f32 %v1122_v38, %v961_v30  ;;  %v3571_v41 = vpop.f32.mrf.mxu1 }
 0x131   : > { %v941_v15 = vpop.f32.mrf.mxu0 }
 0x132   : > { %v962_v17 = vadd.f32 %v941_v15, %v825_v57  ;;  %v1125_v11 = vpop.f32.mrf.mxu1 }
 0x133   : > { %v3544_v18 = vpop.f32.mrf.mxu0 }
 0x134   : > { %v1146_v42 = vadd.f32 %v1125_v11, %v962_v17  ;;  %v3572_v14 = vpop.f32.mrf.mxu1 }
 0x135   : > { %v946_v10 = vpop.f32.mrf.mxu0 }
 0x136   : > { %v963_v26 = vadd.f32 %v946_v10, %v826_v48  ;;  %v1130_v33 = vpop.f32.mrf.mxu1 }
 0x137   : > { %v3547_v13 = vpop.f32.mrf.mxu0 }
 0x138   : > { %v1147_v44 = vadd.f32 %v1130_v33, %v963_v26  ;;  %v3575_v27 = vpop.f32.mrf.mxu1 }
 0x139   : > { %v949_v45 = vpop.f32.mrf.mxu0 }
 0x13a   : > { %v964_v47 = vadd.f32 %v949_v45, %v827_v4  ;;  %v1133_v39 = vpop.f32.mrf.mxu1 }
 0x13b   : > { %v3548_v46 = vpop.f32.mrf.mxu0 }
 0x13c   : > { %v1148_v49 = vadd.f32 %v1133_v39, %v964_v47  ;;  %v3576_v50 = vpop.f32.mrf.mxu1 }
 0x13d   : > { %v954_v31 = vpop.f32.mrf.mxu0 }
 0x13e   : > { %v965_v51 = vadd.f32 %v954_v31, %v828_v21  ;;  %v1138_v52 = vpop.f32.mrf.mxu1 }
 0x13f   : > { %v3551_v53 = vpop.f32.mrf.mxu0 }
 0x140   : > { %v1149_v32 = vadd.f32 %v1138_v52, %v965_v51  ;;  %v3579_v34 = vpop.f32.mrf.mxu1 }
 0x141   : > { %v957_v35 = vpop.f32.mrf.mxu0 }
 0x142   : > { %v966_v37 = vadd.f32 %v957_v35, %v829_v16  ;;  %v1141_v56 = vpop.f32.mrf.mxu1 }
 0x143   : > { %v3552_v12 = vpop.f32.mrf.mxu0 }
 0x144   : > { %v1150_v57 = vadd.f32 %v1141_v56, %v966_v37  ;;  %v3580_v59 = vpop.f32.mrf.mxu1 }
 0x14d   : > { %v1264_v60 = vpop.f32.mrf.mxu0 }
 0x14e   : > { %v1287_v61 = vadd.f32 %v1264_v60, %v1145_v40  ;;  %v1424_v55 = vpop.f32.mrf.mxu1 }
 0x14f   : > { %v3599_v43 = vpop.f32.mrf.mxu0 }
 0x150   : > { %v1447_v62 = vadd.f32 %v1424_v55, %v1287_v61  ;;  %v3627_v0 = vpop.f32.mrf.mxu1 }
 0x151   : > { %v1267_v48 = vpop.f32.mrf.mxu0 }
 0x152   : > { %v1288_v7 = vadd.f32 %v1267_v48, %v1146_v42  ;;  %v1427_v2 = vpop.f32.mrf.mxu1 }
 0x153   : > { %v3600_v5 = vpop.f32.mrf.mxu0 }
 0x154   : > { %v1448_v6 = vadd.f32 %v1427_v2, %v1288_v7  ;;  %v3628_v54 = vpop.f32.mrf.mxu1 }
 0x155   : > { %v1272_v8 = vpop.f32.mrf.mxu0 }
 0x156   : > { %v1289_v9 = vadd.f32 %v1272_v8, %v1147_v44  ;;  %v1432_v4 = vpop.f32.mrf.mxu1 }
 0x157   : > { %v3603_v19 = vpop.f32.mrf.mxu0 }
 0x158   : > { %v1449_v20 = vadd.f32 %v1432_v4, %v1289_v9  ;;  %v3631_v22 = vpop.f32.mrf.mxu1 }
 0x159   : > { %v1275_v1 = vpop.f32.mrf.mxu0 }
 0x15a   : > { %v1290_v23 = vadd.f32 %v1275_v1, %v1148_v49  ;;  %v1435_v21 = vpop.f32.mrf.mxu1 }
 0x15b   : > { %v3604_v63 = vpop.f32.mrf.mxu0 }
 0x15c   : > { %v1450_v58 = vadd.f32 %v1435_v21, %v1290_v23  ;;  %v3632_v3 = vpop.f32.mrf.mxu1 }
 0x15d   : > { %v1280_v24 = vpop.f32.mrf.mxu0 }
 0x15e   : > { %v1291_v25 = vadd.f32 %v1280_v24, %v1149_v32  ;;  %v1440_v16 = vpop.f32.mrf.mxu1 }
 0x15f   : > { %v3607_v29 = vpop.f32.mrf.mxu0 }
 0x160   : > { %v1451_v36 = vadd.f32 %v1440_v16, %v1291_v25  ;;  %v3635_v30 = vpop.f32.mrf.mxu1 }
 0x161   : > { %v1283_v38 = vpop.f32.mrf.mxu0 }
 0x162   : > { %v1292_v28 = vadd.f32 %v1283_v38, %v1150_v57  ;;  %v1443_v40 = vpop.f32.mrf.mxu1 }
 0x163   : > { %v3608_v41 = vpop.f32.mrf.mxu0 }
 0x164   : > { %v1452_v15 = vadd.f32 %v1443_v40, %v1292_v28  ;;  %v3636_v17 = vpop.f32.mrf.mxu1 }
 0x16d   : > { %v1561_v11 = vpop.f32.mrf.mxu0 }
 0x16e   : > { %v1584_v18 = vadd.f32 %v1561_v11, %v1447_v62  ;;  %v1745_v42 = vpop.f32.mrf.mxu1 }
 0x16f   : > { %v3655_v14 = vpop.f32.mrf.mxu0 }
 0x170   : > { %v5020_v10 = vadd.f32 %v1745_v42, %v1584_v18  ;;  %v3683_v26 = vpop.f32.mrf.mxu1 }
 0x171   : > { %v1564_v33 = vpop.f32.mrf.mxu0 }
 0x172   : > { %v1585_v13 = vadd.f32 %v1564_v33, %v1448_v6  ;;  %v1748_v44 = vpop.f32.mrf.mxu1 }
 0x173   : > { %v3656_v27 = vpop.f32.mrf.mxu0 }
 0x174   : > { %v5022_v45 = vadd.f32 %v1748_v44, %v1585_v13  ;;  %v3684_v47 = vpop.f32.mrf.mxu1 }
 0x175   : > { %v1569_v39 = vpop.f32.mrf.mxu0 }
 0x176   : > { %v1586_v46 = vadd.f32 %v1569_v39, %v1449_v20  ;;  %v1753_v49 = vpop.f32.mrf.mxu1 }
 0x177   : > { %v3659_v50 = vpop.f32.mrf.mxu0 }
 0x178   : > { %v5024_v31 = vadd.f32 %v1753_v49, %v1586_v46  ;;  %v3687_v51 = vpop.f32.mrf.mxu1 }
 0x179   : > { %v1572_v52 = vpop.f32.mrf.mxu0 }
 0x17a   : > { %v1587_v53 = vadd.f32 %v1572_v52, %v1450_v58  ;;  %v1756_v32 = vpop.f32.mrf.mxu1 }
 0x17b   : > { %v3660_v34 = vpop.f32.mrf.mxu0 }
 0x17c   : > { %v5026_v35 = vadd.f32 %v1756_v32, %v1587_v53  ;;  %v3688_v37 = vpop.f32.mrf.mxu1 }
 0x17d   : > { %v1577_v56 = vpop.f32.mrf.mxu0 }
 0x17e   : > { %v1588_v12 = vadd.f32 %v1577_v56, %v1451_v36  ;;  %v1761_v57 = vpop.f32.mrf.mxu1 }
 0x17f   : > { %v3663_v59 = vpop.f32.mrf.mxu0 }
 0x180   : > { %v5028_v60 = vadd.f32 %v1761_v57, %v1588_v12  ;;  %v3691_v61 = vpop.f32.mrf.mxu1 }
 0x181   : > { %v1580_v55 = vpop.f32.mrf.mxu0 }
 0x182   : > { %v1589_v43 = vadd.f32 %v1580_v55, %v1452_v15  ;;  %v1764_v62 = vpop.f32.mrf.mxu1 }
 0x183   : > { %v3664_v0 = vpop.f32.mrf.mxu0 }
 0x184   : > { %v5030_v48 = vadd.f32 %v1764_v62, %v1589_v43  ;;  %v3692_v7 = vpop.f32.mrf.mxu1 }
 0x18d   : > { %v1887_v2 = vpop.f32.mrf.mxu0 }
 0x18e   : > { %v2047_v5 = vpop.f32.mrf.mxu1  ;;  %v1910_v32 = vadd.f32 %v1887_v2, %v5020_v10  ;;  %v3234_v2 = vld [vmem:[%s5082_s2] ss:$0 sm:$0xff] }
 0x18f   : > { %v3711_v6 = vpop.f32.mrf.mxu0 }
 0x190   : > { %v3739_v54 = vpop.f32.mrf.mxu1  ;;  %v2070_v12 = vadd.f32 %v2047_v5, %v1910_v32 }
 0x191   : > { %v1890_v8 = vpop.f32.mrf.mxu0 }
 0x192   : > { %v2050_v9 = vpop.f32.mrf.mxu1  ;;  %v1911_v57 = vadd.f32 %v1890_v8, %v5022_v45 }
 0x193   : > { %v3712_v4 = vpop.f32.mrf.mxu0 }
 0x194   : > { %v3740_v19 = vpop.f32.mrf.mxu1  ;;  %v2071_v61 = vadd.f32 %v2050_v9, %v1911_v57 }
 0x195   : > { %v1895_v20 = vpop.f32.mrf.mxu0 }
 0x196   : > { %v2055_v22 = vpop.f32.mrf.mxu1  ;;  %v1912_v55 = vadd.f32 %v1895_v20, %v5024_v31 }
 0x197   : > { %v3715_v1 = vpop.f32.mrf.mxu0 }
 0x198   : > { %v3743_v23 = vpop.f32.mrf.mxu1  ;;  %v2072_v7 = vadd.f32 %v2055_v22, %v1912_v55 }
 0x199   : > { %v1898_v21 = vpop.f32.mrf.mxu0 }
 0x19a   : > { %v2058_v63 = vpop.f32.mrf.mxu1  ;;  %v1913_v6 = vadd.f32 %v1898_v21, %v5026_v35 }
 0x19b   : > { %v3716_v58 = vpop.f32.mrf.mxu0 }
 0x19c   : > { %v3744_v3 = vpop.f32.mrf.mxu1  ;;  %v2073_v35 = vadd.f32 %v2058_v63, %v1913_v6 }
 0x19d   : > { %v1903_v24 = vpop.f32.mrf.mxu0 }
 0x19e   : > { %v5032_v25 = vpop.f32.mrf.mxu1  ;;  %v1914_v19 = vadd.f32 %v1903_v24, %v5028_v60 }
 0x19f   : > { %v3719_v16 = vpop.f32.mrf.mxu0 }
 0x1a0   : > { %v3747_v29 = vpop.f32.mrf.mxu1 }
 0x1a1   : > { %v5034_v36 = vpop.f32.mrf.mxu0 }
 0x1a2   : > { %v5036_v30 = vpop.f32.mrf.mxu1 }
 0x1a3   : > { %v3720_v38 = vpop.f32.mrf.mxu0 }
 0x1a4   : > { %v3748_v28 = vpop.f32.mrf.mxu1  ;;  %v2074_v38 = vadd.f32 %v5032_v25, %v1914_v19 }
 0x1a5   : > { %v1915_v28 = vadd.f32 %v5034_v36, %v5030_v48 }
 0x1ad   : > { %v2184_v40 = vpop.f32.mrf.mxu0 }
 0x1ae   : > { %v2368_v41 = vpop.f32.mrf.mxu1  ;;  %v2207_v59 = vadd.f32 %v2184_v40, %v2070_v12 }
 0x1af   : > { %v3767_v15 = vpop.f32.mrf.mxu0 }
 0x1b0   : > { %v3795_v17 = vpop.f32.mrf.mxu1  ;;  %v2391_v43 = vadd.f32 %v2368_v41, %v2207_v59 }
 0x1b1   : > { %v2187_v11 = vpop.f32.mrf.mxu0 }
 0x1b2   : > { %v2371_v18 = vpop.f32.mrf.mxu1  ;;  %v2208_v62 = vadd.f32 %v2187_v11, %v2071_v61 }
 0x1b3   : > { %v3768_v42 = vpop.f32.mrf.mxu0 }
 0x1b4   : > { %v3796_v14 = vpop.f32.mrf.mxu1  ;;  %v2392_v4 = vadd.f32 %v2371_v18, %v2208_v62  ;;  %v2075_v42 = vadd.f32 %v5036_v30, %v1915_v28 }
 0x1b5   : > { %v2192_v26 = vpop.f32.mrf.mxu0 }
 0x1b6   : > { %v2376_v33 = vpop.f32.mrf.mxu1  ;;  %v2209_v45 = vadd.f32 %v2192_v26, %v2072_v7 }
 0x1b7   : > { %v3771_v13 = vpop.f32.mrf.mxu0 }
 0x1b8   : > { %v3799_v44 = vpop.f32.mrf.mxu1  ;;  %v2393_v21 = vadd.f32 %v2376_v33, %v2209_v45 }
 0x1b9   : > { %v2195_v27 = vpop.f32.mrf.mxu0 }
 0x1ba   : > { %v2379_v47 = vpop.f32.mrf.mxu1  ;;  %v2210_v58 = vadd.f32 %v2195_v27, %v2073_v35 }
 0x1bb   : > { %v3772_v39 = vpop.f32.mrf.mxu0 }
 0x1bc   : > { %v3800_v46 = vpop.f32.mrf.mxu1  ;;  %v2394_v41 = vadd.f32 %v2379_v47, %v2210_v58 }
 0x1bd   : > { %v2200_v49 = vpop.f32.mrf.mxu0 }
 0x1be   : > { %v2384_v50 = vpop.f32.mrf.mxu1  ;;  %v2211_v15 = vadd.f32 %v2200_v49, %v2074_v38 }
 0x1bf   : > { %v3775_v51 = vpop.f32.mrf.mxu0 }
 0x1c0   : > { %v3803_v52 = vpop.f32.mrf.mxu1  ;;  %v2395_v48 = vadd.f32 %v2384_v50, %v2211_v15 }
 0x1c1   : > { %v2203_v53 = vpop.f32.mrf.mxu0 }
 0x1c2   : > { %v5039_v34 = vpop.f32.mrf.mxu1  ;;  %v2212_v36 = vadd.f32 %v2203_v53, %v2075_v42 }
 0x1c3   : > { %v3776_v37 = vpop.f32.mrf.mxu0 }
 0x1c4   : > { %v3804_v56 = vpop.f32.mrf.mxu1  ;;  %v2396_v30 = vadd.f32 %v5039_v34, %v2212_v36 }
 0x1cd   : > { %v2510_v0 = vpop.f32.mrf.mxu0 }
 0x1ce   : > { %v2533_v54 = vadd.f32 %v2510_v0, %v2391_v43  ;;  %v2670_v10 = vpop.f32.mrf.mxu1 }
 0x1cf   : > { %v3823_v5 = vpop.f32.mrf.mxu0 }
 0x1d0   : > { %v2693_v8 = vadd.f32 %v2670_v10, %v2533_v54  ;;  %v3851_v9 = vpop.f32.mrf.mxu1 }
 0x1d1   : > { %v2513_v31 = vpop.f32.mrf.mxu0 }
 0x1d2   : > { %v2706_v20 = vadd.f32 %v3234_v2, %v2693_v8  ;;  %v2534_v22 = vadd.f32 %v2513_v31, %v2392_v4  ;;  %v2673_v1 = vpop.f32.mrf.mxu1 }
 0x1d3   : > { %v3824_v23 = vpop.f32.mrf.mxu0 }
 0x1d4   : > { %2713 = vst.msk [vmem:[%s5051_s11] sm:$0xff] %vm2712_vm4, %v2706_v20  ;;  %v2694_v3 = vadd.f32 %v2673_v1, %v2534_v22  ;;  %v3852_v16 = vpop.f32.mrf.mxu1 }
 0x1d5   : > { %v2518_v29 = vpop.f32.mrf.mxu0 }
 0x1d6   : > { %v2707_v63 = vadd.f32 %v3234_v2, %v2694_v3  ;;  %v2535_v40 = vadd.f32 %v2518_v29, %v2393_v21  ;;  %v2678_v60 = vpop.f32.mrf.mxu1 }
 0x1d7   : > { %v3827_v24 = vpop.f32.mrf.mxu0 }
 0x1d8   : > { %2714 = vst.msk [vmem:[%s5051_s11 + $0x8] sm:$0xff] %vm2712_vm4, %v2707_v63  ;;  %v2695_v17 = vadd.f32 %v2678_v60, %v2535_v40  ;;  %v3855_v11 = vpop.f32.mrf.mxu1 }
 0x1d9   : > { %v2521_v18 = vpop.f32.mrf.mxu0 }
 0x1da   : > { %v2708_v14 = vadd.f32 %v3234_v2, %v2695_v17  ;;  %v2536_v25 = vadd.f32 %v2521_v18, %v2394_v41  ;;  %v2681_v26 = vpop.f32.mrf.mxu1 }
 0x1db   : > { %v3828_v33 = vpop.f32.mrf.mxu0 }
 0x1dc   : > { %2715 = vst.msk [vmem:[%s5051_s11 + $0x10] sm:$0xff] %vm2712_vm4, %v2708_v14  ;;  %v2696_v13 = vadd.f32 %v2681_v26, %v2536_v25  ;;  %v3856_v44 = vpop.f32.mrf.mxu1 }
 0x1dd   : > { %v2526_v27 = vpop.f32.mrf.mxu0 }
 0x1de   : > { %v2709_v47 = vadd.f32 %v3234_v2, %v2696_v13  ;;  %v2537_v39 = vadd.f32 %v2526_v27, %v2395_v48  ;;  %v2686_v46 = vpop.f32.mrf.mxu1 }
 0x1df   : > { %v3831_v49 = vpop.f32.mrf.mxu0 }
 0x1e0   : > { %2716 = vst.msk [vmem:[%s5051_s11 + $0x18] sm:$0xff] %vm2712_vm4, %v2709_v47  ;;  %v2697_v51 = vadd.f32 %v2686_v46, %v2537_v39  ;;  %v3859_v52 = vpop.f32.mrf.mxu1 }
 0x1e1   : > { %v2529_v32 = vpop.f32.mrf.mxu0 }
 0x1e2   : > { %v2710_v50 = vadd.f32 %v3234_v2, %v2697_v51  ;;  %v2538_v53 = vadd.f32 %v2529_v32, %v2396_v30  ;;  %v2689_v37 = vpop.f32.mrf.mxu1 }
 0x1e3   : > { %v3832_v56 = vpop.f32.mrf.mxu0 }
 0x1e4   : > { %2717 = vst.msk [vmem:[%s5051_s11 + $0x20] sm:$0xff] %vm2712_vm4, %v2710_v50  ;;  %v2698_v12 = vadd.f32 %v2689_v37, %v2538_v53  ;;  %v3860_v57 = vpop.f32.mrf.mxu1 }
 0x1e6   : > { %v2711_v59 = vadd.f32 %v3234_v2, %v2698_v12 }
 0x1e8   : > { %2718 = vst.msk [vmem:[%s5051_s11 + $0x28] sm:$0xff] %vm2712_vm4, %v2711_v59 }
 0x1e9 PF: > { %s13_s14 = sadd.s32 1, %s4072_s14   ;;  %s5084_s12 = smov %s4068_s13 }
 0x1ea   : > { %p10_p5 = scmp.ge.s32.totalorder %s13_s14, 4   ;;  %s5085_s13 = smov %s5087_s15 }
 0x1ec   :  { %12 = sbr.rel (!%p10_p5) target bundleno = 2 (0x2), region = 83 }

</bundles_post_ra>
